<compile_context>
chip_gen: v7x
topology: tpu7x:2x2x1
jax: 0.10.0
libtpu: 0.0.40
codegen_flags: <defaults>
</compile_context>

<pallas_src>
import functools

import jax
import jax.numpy as jnp
from jax.experimental import pallas as pl
from jax.experimental.pallas import tpu as pltpu


def _round_up(x, m):
    return (x + m - 1) // m * m


def _conv_stats_kernel(x_ref, w_ref, y_ref, stats_ref, *,
                       KH, KW, stride, dilation, Ho, Wo):
    """One batch sample: direct conv via tap-reduction + per-channel partial BN stats.

    x_ref:     (Hp, Wp, Cin_p)          bf16, spatially pre-padded input (NHWC)
    w_ref:     (KH*KW, Cin_p, Cout_p)   bf16
    y_ref:     (Ho, Wo, Cout_p)         f32 conv output
    stats_ref: (2, Cout_p)              f32 [sum, sum of squares] over (Ho, Wo)
    """
    cout_p = y_ref.shape[-1]
    acc = jnp.zeros((Ho * Wo, cout_p), jnp.float32)
    tap_idx = 0
    for kh in range(KH):
        for kw in range(KW):
            h0 = kh * dilation
            w0 = kw * dilation
            if stride == 1:
                tap = x_ref[pl.ds(h0, Ho), pl.ds(w0, Wo), :]
            else:
                tap = x_ref[pl.ds(h0, Ho, stride=stride),
                            pl.ds(w0, Wo, stride=stride), :]
            a = tap.reshape(Ho * Wo, tap.shape[-1])
            acc = acc + jnp.dot(a, w_ref[tap_idx],
                                preferred_element_type=jnp.float32)
            tap_idx += 1

    y_ref[...] = acc.reshape(Ho, Wo, cout_p).astype(y_ref.dtype)
    s1 = jnp.sum(acc, axis=0, keepdims=True)
    s2 = jnp.sum(acc * acc, axis=0, keepdims=True)
    stats_ref[...] = jnp.concatenate([s1, s2], axis=0)


def _scale_shift_relu_kernel(y_ref, scale_ref, shift_ref, o_ref, *, apply_relu):
    z = y_ref[...] * scale_ref[...] + shift_ref[...]
    if apply_relu:
        z = jnp.maximum(z, 0.0)
    o_ref[...] = z.astype(o_ref.dtype)


def basic_conv(x_nchw, weight, gamma, beta, *, stride=1, padding=0, dilation=1,
               relu=True, bn=True, eps=1e-5):
    """Forward pass of BasicConv. x_nchw: (N, Cin, H, W); weight: (Cout, Cin, KH, KW)."""
    N, Cin, H, W = x_nchw.shape
    Cout, Cin_w, KH, KW = weight.shape
    assert Cin == Cin_w, "groups != 1 not supported"

    Ho = (H + 2 * padding - dilation * (KH - 1) - 1) // stride + 1
    Wo = (W + 2 * padding - dilation * (KW - 1) - 1) // stride + 1
    Hp = H + 2 * padding
    Wp = W + 2 * padding

    Cin_p = _round_up(Cin, 16)      # bf16 sublane packing alignment
    Cout_p = _round_up(Cout, 128)   # lane-dense channel axis

    # NCHW -> NHWC only at the API boundary (to match the PyTorch convention);
    # everything inside the kernels stays channel-last / lane-dense.
    x = jnp.transpose(x_nchw, (0, 2, 3, 1))
    x = jnp.pad(x, ((0, 0), (padding, padding), (padding, padding),
                    (0, Cin_p - Cin))).astype(jnp.bfloat16)

    # (Cout, Cin, KH, KW) -> (KH*KW, Cin_p, Cout_p), zero padded, bf16.
    w = jnp.transpose(weight, (2, 3, 1, 0)).reshape(KH * KW, Cin, Cout)
    w = jnp.pad(w, ((0, 0), (0, Cin_p - Cin), (0, Cout_p - Cout))).astype(jnp.bfloat16)

    conv_kernel = functools.partial(
        _conv_stats_kernel, KH=KH, KW=KW, stride=stride, dilation=dilation,
        Ho=Ho, Wo=Wo)

    y, stats = pl.pallas_call(
        conv_kernel,
        grid=(N,),
        in_specs=[
            pl.BlockSpec((None, Hp, Wp, Cin_p), lambda n: (n, 0, 0, 0)),
            pl.BlockSpec((KH * KW, Cin_p, Cout_p), lambda n: (0, 0, 0)),
        ],
        out_specs=[
            pl.BlockSpec((None, Ho, Wo, Cout_p), lambda n: (n, 0, 0, 0)),
            pl.BlockSpec((None, 2, Cout_p), lambda n: (n, 0, 0)),
        ],
        out_shape=[
            jax.ShapeDtypeStruct((N, Ho, Wo, Cout_p), jnp.float32),
            jax.ShapeDtypeStruct((N, 2, Cout_p), jnp.float32),
        ],
        compiler_params=pltpu.CompilerParams(
            dimension_semantics=("parallel",),
            vmem_limit_bytes=32 * 1024 * 1024),
    )(x, w)

    gamma_p = jnp.pad(gamma.astype(jnp.float32).reshape(Cout), (0, Cout_p - Cout))
    beta_p = jnp.pad(beta.astype(jnp.float32).reshape(Cout), (0, Cout_p - Cout))

    if bn:
        # Global batch statistics from the per-sample partial sums (train-mode
        # BatchNorm: biased variance over (N, Ho, Wo)).
        cnt = float(N * Ho * Wo)
        s1 = jnp.sum(stats[:, 0, :], axis=0)
        s2 = jnp.sum(stats[:, 1, :], axis=0)
        mean = s1 / cnt
        var = jnp.maximum(s2 / cnt - mean * mean, 0.0)
        inv = jax.lax.rsqrt(var + eps)
        scale = gamma_p * inv
        shift = beta_p - mean * scale
    else:
        scale = jnp.ones((Cout_p,), jnp.float32)
        shift = jnp.zeros((Cout_p,), jnp.float32)

    M = N * Ho * Wo
    if bn or relu:
        y2d = y.reshape(M, Cout_p)
        TR = min(512, M)  # >=512-row tiles amortize per-step overhead at real sizes
        bn_kernel = functools.partial(_scale_shift_relu_kernel, apply_relu=relu)
        y2d = pl.pallas_call(
            bn_kernel,
            grid=(pl.cdiv(M, TR),),
            in_specs=[
                pl.BlockSpec((TR, Cout_p), lambda i: (i, 0)),
                pl.BlockSpec((1, Cout_p), lambda i: (0, 0)),
                pl.BlockSpec((1, Cout_p), lambda i: (0, 0)),
            ],
            out_specs=pl.BlockSpec((TR, Cout_p), lambda i: (i, 0)),
            out_shape=jax.ShapeDtypeStruct((M, Cout_p), jnp.float32),
            compiler_params=pltpu.CompilerParams(
                dimension_semantics=("parallel",),
                vmem_limit_bytes=32 * 1024 * 1024),
        )(y2d, scale.reshape(1, Cout_p), shift.reshape(1, Cout_p))
        y = y2d.reshape(N, Ho, Wo, Cout_p)

    out = y[..., :Cout]
    return jnp.transpose(out, (0, 3, 1, 2))  # back to NCHW


if __name__ == "__main__":
    key = jax.random.PRNGKey(0)
    k_x, k_w = jax.random.split(key, 2)

    # BasicConv(in_planes=4, out_planes=8, kernel_size=3, stride=1, padding=1)
    N, Cin, H, W = 2, 4, 16, 16
    Cout, KH, KW = 8, 3, 3
    stride, padding, dilation = 1, 1, 1

    x = jax.random.normal(k_x, (N, Cin, H, W), dtype=jnp.float32)

    # Deterministic parameter init (PyTorch Conv2d default: U(-1/sqrt(fan_in), +)).
    fan_in = Cin * KH * KW
    bound = 1.0 / (fan_in ** 0.5)
    weight = jax.random.uniform(k_w, (Cout, Cin, KH, KW), jnp.float32, -bound, bound)
    gamma = jnp.ones((Cout,), jnp.float32)   # BatchNorm2d default affine init
    beta = jnp.zeros((Cout,), jnp.float32)

    out = basic_conv(x, weight, gamma, beta, stride=stride, padding=padding,
                     dilation=dilation, relu=True, bn=True)
    out = jax.block_until_ready(out)

    # Pure-JAX reference. The kernel feeds the MXU bf16 operands (with f32 accumulation),
    # so the reference conv uses the same bf16-cast operands to keep the comparison tight.
    conv_ref = jax.lax.conv_general_dilated(
        x.astype(jnp.bfloat16), weight.astype(jnp.bfloat16),
        window_strides=(stride, stride),
        padding=[(padding, padding), (padding, padding)],
        rhs_dilation=(dilation, dilation),
        dimension_numbers=("NCHW", "OIHW", "NCHW"),
        preferred_element_type=jnp.float32)
    mu = jnp.mean(conv_ref, axis=(0, 2, 3), keepdims=True)
    var = jnp.mean(jnp.square(conv_ref - mu), axis=(0, 2, 3), keepdims=True)
    bn_ref = (conv_ref - mu) * jax.lax.rsqrt(var + 1e-5)
    bn_ref = bn_ref * gamma.reshape(1, Cout, 1, 1) + beta.reshape(1, Cout, 1, 1)
    ref = jnp.maximum(bn_ref, 0.0)

    assert out.shape == (N, Cout, H, W), out.shape
    max_err = float(jnp.max(jnp.abs(out - ref)))
    assert jnp.allclose(out, ref, atol=5e-3, rtol=5e-3), max_err
    print("KERNEL_OK")
</pallas_src>

<mosaic_0001>
module attributes {stable_mosaic.version = 11 : i64} {
  func.func @_conv_stats_kernel(%arg0: i32, %arg1: memref<1x18x18x16xbf16, #tpu.memory_space<vmem>>, %arg2: memref<9x16x128xbf16, #tpu.memory_space<vmem>>, %arg3: memref<1x16x16x128xf32, #tpu.memory_space<vmem>>, %arg4: memref<1x2x128xf32, #tpu.memory_space<vmem>>) attributes {dimension_semantics = [#tpu.dimension_semantics<parallel>], iteration_bounds = array<i64: 2>, scalar_prefetch = 0 : i64, scratch_operands = 0 : i64, tpu.core_type = #tpu.core_type<tc>, window_params = [{transform_indices = @transform_0, window_bounds = array<i64: 1, 18, 18, 16>}, {pipeline_mode = #tpu.pipeline_mode<synchronous>, transform_indices = @transform_1, window_bounds = array<i64: 9, 16, 128>}, {transform_indices = @transform_2, window_bounds = array<i64: 1, 16, 16, 128>}, {transform_indices = @transform_3, window_bounds = array<i64: 1, 2, 128>}]} {
    %cst = arith.constant 0.000000e+00 : f32
    %0 = vector.broadcast %cst : f32 to vector<256x128xf32>
    %c0 = arith.constant 0 : index
    %c0_0 = arith.constant 0 : index
    %c0_1 = arith.constant 0 : index
    %c0_2 = arith.constant 0 : index
    %1 = vector.load %arg1[%c0, %c0_0, %c0_1, %c0_2] : memref<1x18x18x16xbf16, #tpu.memory_space<vmem>>, vector<1x16x16x16xbf16>
    %2 = vector.shape_cast %1 : vector<1x16x16x16xbf16> to vector<16x16x16xbf16>
    %3 = vector.shape_cast %2 : vector<16x16x16xbf16> to vector<256x16xbf16>
    %c0_3 = arith.constant 0 : index
    %c0_4 = arith.constant 0 : index
    %c0_5 = arith.constant 0 : index
    %4 = vector.load %arg2[%c0_3, %c0_4, %c0_5] : memref<9x16x128xbf16, #tpu.memory_space<vmem>>, vector<1x16x128xbf16>
    %5 = vector.shape_cast %4 : vector<1x16x128xbf16> to vector<16x128xbf16>
    %cst_6 = arith.constant dense<0.000000e+00> : vector<256x128xf32>
    %6 = tpu.matmul %3, %5, %cst_6 {dimension_numbers = #tpu.dot_dimension_numbers<[1], [0], [0], [1], [0, 0, 1, 1], [], []>} : vector<256x16xbf16>, vector<16x128xbf16>, vector<256x128xf32> -> vector<256x128xf32>
    %7 = arith.addf %0, %6 : vector<256x128xf32>
    %c0_7 = arith.constant 0 : index
    %c0_8 = arith.constant 0 : index
    %c1 = arith.constant 1 : index
    %c0_9 = arith.constant 0 : index
    %8 = vector.load %arg1[%c0_7, %c0_8, %c1, %c0_9] : memref<1x18x18x16xbf16, #tpu.memory_space<vmem>>, vector<1x16x16x16xbf16>
    %9 = vector.shape_cast %8 : vector<1x16x16x16xbf16> to vector<16x16x16xbf16>
    %10 = vector.shape_cast %9 : vector<16x16x16xbf16> to vector<256x16xbf16>
    %c1_10 = arith.constant 1 : index
    %c0_11 = arith.constant 0 : index
    %c0_12 = arith.constant 0 : index
    %11 = vector.load %arg2[%c1_10, %c0_11, %c0_12] : memref<9x16x128xbf16, #tpu.memory_space<vmem>>, vector<1x16x128xbf16>
    %12 = vector.shape_cast %11 : vector<1x16x128xbf16> to vector<16x128xbf16>
    %cst_13 = arith.constant dense<0.000000e+00> : vector<256x128xf32>
    %13 = tpu.matmul %10, %12, %cst_13 {dimension_numbers = #tpu.dot_dimension_numbers<[1], [0], [0], [1], [0, 0, 1, 1], [], []>} : vector<256x16xbf16>, vector<16x128xbf16>, vector<256x128xf32> -> vector<256x128xf32>
    %14 = arith.addf %7, %13 : vector<256x128xf32>
    %c0_14 = arith.constant 0 : index
    %c0_15 = arith.constant 0 : index
    %c2 = arith.constant 2 : index
    %c0_16 = arith.constant 0 : index
    %15 = vector.load %arg1[%c0_14, %c0_15, %c2, %c0_16] : memref<1x18x18x16xbf16, #tpu.memory_space<vmem>>, vector<1x16x16x16xbf16>
    %16 = vector.shape_cast %15 : vector<1x16x16x16xbf16> to vector<16x16x16xbf16>
    %17 = vector.shape_cast %16 : vector<16x16x16xbf16> to vector<256x16xbf16>
    %c2_17 = arith.constant 2 : index
    %c0_18 = arith.constant 0 : index
    %c0_19 = arith.constant 0 : index
    %18 = vector.load %arg2[%c2_17, %c0_18, %c0_19] : memref<9x16x128xbf16, #tpu.memory_space<vmem>>, vector<1x16x128xbf16>
    %19 = vector.shape_cast %18 : vector<1x16x128xbf16> to vector<16x128xbf16>
    %cst_20 = arith.constant dense<0.000000e+00> : vector<256x128xf32>
    %20 = tpu.matmul %17, %19, %cst_20 {dimension_numbers = #tpu.dot_dimension_numbers<[1], [0], [0], [1], [0, 0, 1, 1], [], []>} : vector<256x16xbf16>, vector<16x128xbf16>, vector<256x128xf32> -> vector<256x128xf32>
    %21 = arith.addf %14, %20 : vector<256x128xf32>
    %c0_21 = arith.constant 0 : index
    %c1_22 = arith.constant 1 : index
    %c0_23 = arith.constant 0 : index
    %c0_24 = arith.constant 0 : index
    %22 = vector.load %arg1[%c0_21, %c1_22, %c0_23, %c0_24] : memref<1x18x18x16xbf16, #tpu.memory_space<vmem>>, vector<1x16x16x16xbf16>
    %23 = vector.shape_cast %22 : vector<1x16x16x16xbf16> to vector<16x16x16xbf16>
    %24 = vector.shape_cast %23 : vector<16x16x16xbf16> to vector<256x16xbf16>
    %c3 = arith.constant 3 : index
    %c0_25 = arith.constant 0 : index
    %c0_26 = arith.constant 0 : index
    %25 = vector.load %arg2[%c3, %c0_25, %c0_26] : memref<9x16x128xbf16, #tpu.memory_space<vmem>>, vector<1x16x128xbf16>
    %26 = vector.shape_cast %25 : vector<1x16x128xbf16> to vector<16x128xbf16>
    %cst_27 = arith.constant dense<0.000000e+00> : vector<256x128xf32>
    %27 = tpu.matmul %24, %26, %cst_27 {dimension_numbers = #tpu.dot_dimension_numbers<[1], [0], [0], [1], [0, 0, 1, 1], [], []>} : vector<256x16xbf16>, vector<16x128xbf16>, vector<256x128xf32> -> vector<256x128xf32>
    %28 = arith.addf %21, %27 : vector<256x128xf32>
    %c0_28 = arith.constant 0 : index
    %c1_29 = arith.constant 1 : index
    %c1_30 = arith.constant 1 : index
    %c0_31 = arith.constant 0 : index
    %29 = vector.load %arg1[%c0_28, %c1_29, %c1_30, %c0_31] : memref<1x18x18x16xbf16, #tpu.memory_space<vmem>>, vector<1x16x16x16xbf16>
    %30 = vector.shape_cast %29 : vector<1x16x16x16xbf16> to vector<16x16x16xbf16>
    %31 = vector.shape_cast %30 : vector<16x16x16xbf16> to vector<256x16xbf16>
    %c4 = arith.constant 4 : index
    %c0_32 = arith.constant 0 : index
    %c0_33 = arith.constant 0 : index
    %32 = vector.load %arg2[%c4, %c0_32, %c0_33] : memref<9x16x128xbf16, #tpu.memory_space<vmem>>, vector<1x16x128xbf16>
    %33 = vector.shape_cast %32 : vector<1x16x128xbf16> to vector<16x128xbf16>
    %cst_34 = arith.constant dense<0.000000e+00> : vector<256x128xf32>
    %34 = tpu.matmul %31, %33, %cst_34 {dimension_numbers = #tpu.dot_dimension_numbers<[1], [0], [0], [1], [0, 0, 1, 1], [], []>} : vector<256x16xbf16>, vector<16x128xbf16>, vector<256x128xf32> -> vector<256x128xf32>
    %35 = arith.addf %28, %34 : vector<256x128xf32>
    %c0_35 = arith.constant 0 : index
    %c1_36 = arith.constant 1 : index
    %c2_37 = arith.constant 2 : index
    %c0_38 = arith.constant 0 : index
    %36 = vector.load %arg1[%c0_35, %c1_36, %c2_37, %c0_38] : memref<1x18x18x16xbf16, #tpu.memory_space<vmem>>, vector<1x16x16x16xbf16>
    %37 = vector.shape_cast %36 : vector<1x16x16x16xbf16> to vector<16x16x16xbf16>
    %38 = vector.shape_cast %37 : vector<16x16x16xbf16> to vector<256x16xbf16>
    %c5 = arith.constant 5 : index
    %c0_39 = arith.constant 0 : index
    %c0_40 = arith.constant 0 : index
    %39 = vector.load %arg2[%c5, %c0_39, %c0_40] : memref<9x16x128xbf16, #tpu.memory_space<vmem>>, vector<1x16x128xbf16>
    %40 = vector.shape_cast %39 : vector<1x16x128xbf16> to vector<16x128xbf16>
    %cst_41 = arith.constant dense<0.000000e+00> : vector<256x128xf32>
    %41 = tpu.matmul %38, %40, %cst_41 {dimension_numbers = #tpu.dot_dimension_numbers<[1], [0], [0], [1], [0, 0, 1, 1], [], []>} : vector<256x16xbf16>, vector<16x128xbf16>, vector<256x128xf32> -> vector<256x128xf32>
    %42 = arith.addf %35, %41 : vector<256x128xf32>
    %c0_42 = arith.constant 0 : index
    %c2_43 = arith.constant 2 : index
    %c0_44 = arith.constant 0 : index
    %c0_45 = arith.constant 0 : index
    %43 = vector.load %arg1[%c0_42, %c2_43, %c0_44, %c0_45] : memref<1x18x18x16xbf16, #tpu.memory_space<vmem>>, vector<1x16x16x16xbf16>
    %44 = vector.shape_cast %43 : vector<1x16x16x16xbf16> to vector<16x16x16xbf16>
    %45 = vector.shape_cast %44 : vector<16x16x16xbf16> to vector<256x16xbf16>
    %c6 = arith.constant 6 : index
    %c0_46 = arith.constant 0 : index
    %c0_47 = arith.constant 0 : index
    %46 = vector.load %arg2[%c6, %c0_46, %c0_47] : memref<9x16x128xbf16, #tpu.memory_space<vmem>>, vector<1x16x128xbf16>
    %47 = vector.shape_cast %46 : vector<1x16x128xbf16> to vector<16x128xbf16>
    %cst_48 = arith.constant dense<0.000000e+00> : vector<256x128xf32>
    %48 = tpu.matmul %45, %47, %cst_48 {dimension_numbers = #tpu.dot_dimension_numbers<[1], [0], [0], [1], [0, 0, 1, 1], [], []>} : vector<256x16xbf16>, vector<16x128xbf16>, vector<256x128xf32> -> vector<256x128xf32>
    %49 = arith.addf %42, %48 : vector<256x128xf32>
    %c0_49 = arith.constant 0 : index
    %c2_50 = arith.constant 2 : index
    %c1_51 = arith.constant 1 : index
    %c0_52 = arith.constant 0 : index
    %50 = vector.load %arg1[%c0_49, %c2_50, %c1_51, %c0_52] : memref<1x18x18x16xbf16, #tpu.memory_space<vmem>>, vector<1x16x16x16xbf16>
    %51 = vector.shape_cast %50 : vector<1x16x16x16xbf16> to vector<16x16x16xbf16>
    %52 = vector.shape_cast %51 : vector<16x16x16xbf16> to vector<256x16xbf16>
    %c7 = arith.constant 7 : index
    %c0_53 = arith.constant 0 : index
    %c0_54 = arith.constant 0 : index
    %53 = vector.load %arg2[%c7, %c0_53, %c0_54] : memref<9x16x128xbf16, #tpu.memory_space<vmem>>, vector<1x16x128xbf16>
    %54 = vector.shape_cast %53 : vector<1x16x128xbf16> to vector<16x128xbf16>
    %cst_55 = arith.constant dense<0.000000e+00> : vector<256x128xf32>
    %55 = tpu.matmul %52, %54, %cst_55 {dimension_numbers = #tpu.dot_dimension_numbers<[1], [0], [0], [1], [0, 0, 1, 1], [], []>} : vector<256x16xbf16>, vector<16x128xbf16>, vector<256x128xf32> -> vector<256x128xf32>
    %56 = arith.addf %49, %55 : vector<256x128xf32>
    %c0_56 = arith.constant 0 : index
    %c2_57 = arith.constant 2 : index
    %c2_58 = arith.constant 2 : index
    %c0_59 = arith.constant 0 : index
    %57 = vector.load %arg1[%c0_56, %c2_57, %c2_58, %c0_59] : memref<1x18x18x16xbf16, #tpu.memory_space<vmem>>, vector<1x16x16x16xbf16>
    %58 = vector.shape_cast %57 : vector<1x16x16x16xbf16> to vector<16x16x16xbf16>
    %59 = vector.shape_cast %58 : vector<16x16x16xbf16> to vector<256x16xbf16>
    %c8 = arith.constant 8 : index
    %c0_60 = arith.constant 0 : index
    %c0_61 = arith.constant 0 : index
    %60 = vector.load %arg2[%c8, %c0_60, %c0_61] : memref<9x16x128xbf16, #tpu.memory_space<vmem>>, vector<1x16x128xbf16>
    %61 = vector.shape_cast %60 : vector<1x16x128xbf16> to vector<16x128xbf16>
    %cst_62 = arith.constant dense<0.000000e+00> : vector<256x128xf32>
    %62 = tpu.matmul %59, %61, %cst_62 {dimension_numbers = #tpu.dot_dimension_numbers<[1], [0], [0], [1], [0, 0, 1, 1], [], []>} : vector<256x16xbf16>, vector<16x128xbf16>, vector<256x128xf32> -> vector<256x128xf32>
    %63 = arith.addf %56, %62 : vector<256x128xf32>
    %64 = vector.shape_cast %63 : vector<256x128xf32> to vector<16x16x128xf32>
    %c0_63 = arith.constant 0 : index
    %c0_64 = arith.constant 0 : index
    %c0_65 = arith.constant 0 : index
    %c0_66 = arith.constant 0 : index
    %65 = vector.load %arg3[%c0_63, %c0_64, %c0_65, %c0_66] : memref<1x16x16x128xf32, #tpu.memory_space<vmem>>, vector<1x16x16x128xf32>
    %66 = vector.shape_cast %65 : vector<1x16x16x128xf32> to vector<16x16x128xf32>
    %67 = vector.shape_cast %64 : vector<16x16x128xf32> to vector<1x16x16x128xf32>
    tpu.vector_store %arg3[%c0_63, %c0_64, %c0_65, %c0_66], %67 {strides = array<i32>} : memref<1x16x16x128xf32, #tpu.memory_space<vmem>>, vector<1x16x16x128xf32>,
    %cst_67 = arith.constant dense<0.000000e+00> : vector<128xf32>
    %68 = vector.multi_reduction <add>, %63, %cst_67 [0] : vector<256x128xf32> to vector<128xf32>
    %69 = vector.shape_cast %68 : vector<128xf32> to vector<1x128xf32>
    %70 = arith.mulf %63, %63 : vector<256x128xf32>
    %cst_68 = arith.constant dense<0.000000e+00> : vector<128xf32>
    %71 = vector.multi_reduction <add>, %70, %cst_68 [0] : vector<256x128xf32> to vector<128xf32>
    %72 = vector.shape_cast %71 : vector<128xf32> to vector<1x128xf32>
    %73 = tpu.concatenate %69, %72 in 0 : vector<1x128xf32>, vector<1x128xf32> -> vector<2x128xf32>
    %c0_69 = arith.constant 0 : index
    %c0_70 = arith.constant 0 : index
    %c0_71 = arith.constant 0 : index
    %74 = vector.load %arg4[%c0_69, %c0_70, %c0_71] : memref<1x2x128xf32, #tpu.memory_space<vmem>>, vector<1x2x128xf32>
    %75 = vector.shape_cast %74 : vector<1x2x128xf32> to vector<2x128xf32>
    %76 = vector.shape_cast %73 : vector<2x128xf32> to vector<1x2x128xf32>
    tpu.vector_store %arg4[%c0_69, %c0_70, %c0_71], %76 {strides = array<i32>} : memref<1x2x128xf32, #tpu.memory_space<vmem>>, vector<1x2x128xf32>,
    return
  }
  func.func @transform_0(%arg0: i32) -> (i32, i32, i32, i32) {
    %c0_i32 = arith.constant 0 : i32
    %c0_i32_0 = arith.constant 0 : i32
    %c0_i32_1 = arith.constant 0 : i32
    %c0_i32_2 = arith.constant 0 : i32
    return %arg0, %c0_i32, %c0_i32_0, %c0_i32_1 : i32, i32, i32, i32
  }
  func.func @transform_1(%arg0: i32) -> (i32, i32, i32) {
    %c0_i32 = arith.constant 0 : i32
    %c0_i32_0 = arith.constant 0 : i32
    %c0_i32_1 = arith.constant 0 : i32
    %c0_i32_2 = arith.constant 0 : i32
    return %c0_i32, %c0_i32_0, %c0_i32_1 : i32, i32, i32
  }
  func.func @transform_2(%arg0: i32) -> (i32, i32, i32, i32) {
    %c0_i32 = arith.constant 0 : i32
    %c0_i32_0 = arith.constant 0 : i32
    %c0_i32_1 = arith.constant 0 : i32
    %c0_i32_2 = arith.constant 0 : i32
    return %arg0, %c0_i32, %c0_i32_0, %c0_i32_1 : i32, i32, i32, i32
  }
  func.func @transform_3(%arg0: i32) -> (i32, i32, i32) {
    %c0_i32 = arith.constant 0 : i32
    %c0_i32_0 = arith.constant 0 : i32
    %c0_i32_1 = arith.constant 0 : i32
    return %arg0, %c0_i32, %c0_i32_0 : i32, i32, i32
  }
}

</mosaic_0001>

<bundles_post_ra>
// kernel: tpu_custom_call.1
= control target key start
LH: loop header
LB: loop body
LE: loop exit
PB: predicated region body
PF: predicated region fallthrough
CT: control target
= control target key end

     0   :  { %9 = vsyncpa [#allocation3], 0  ;;  %s8473_s0 = inlined_call_operand.vmem [shape: bf16[2,18,18,16], index: 0, kind: input, shape index: {}]   ;;  %s8474_s1 = inlined_call_operand.vmem [shape: bf16[9,16,128], index: 1, kind: input, shape index: {}]   ;;  %s8475_s2 = inlined_call_operand.hbm [shape: f32[2,16,16,128], index: 2, kind: output, shape index: {0}]   ;;  %s8476_s3 = inlined_call_operand.hbm [shape: f32[2,2,128], index: 3, kind: output, shape index: {1}]  }
   0x1   :  { %11 = vsyncpa [#allocation3 + $0x1], 0 }
   0x2   :  { %12 = vsyncpa [#allocation5], 0 }
   0x3   :  { %14 = vsyncpa [#allocation5 + $0x1], 0  ;;  %s6610_s12 = smov 0   ;;  %s6612_s13 = smov 0  }
   0x4   :  { %s6614_s14 = smov 0   ;;  %s6616_s15 = smov 0  }
   0x5 LB: > { %s6631_s16 = sadd.s32 4294967295, %s6584_s15   ;;  %s5042_s17 = sadd.s32 4294967294, %s6584_s15   ;;  %s6584_s15 = sphi %s6616_s15, %s8546_s15   ;;  %s6580_s14 = sphi %s6614_s14, %s8545_s14   ;;  %s6576_s13 = sphi %s6612_s13, %s8544_s13   ;;  %s6572_s12 = sphi %s6610_s12, %s8543_s12  }
   0x6   : > { %s6635_s18 = sadd.s32 1, %s6584_s15   ;;  %s74_s19 = sadd.s32 1, %s6580_s14 }
   0x7   : > { %s71_s20 = ssub.s32 %s6584_s15, %s6635_s18  ;;  %p84_p0 = scmp.ne.s32.totalorder %s6580_s14, %s6576_s13 }
   0x8   : > { %p72_p1 = scmp.eq.s32.totalorder %s71_s20, 0  ;;  %p85_p2 = scmp.eq.s32.totalorder %s6631_s16, 1 }
   0x9   : > { %p90_p3 = scmp.ne.s32.totalorder %s6576_s13, %s6572_s12  ;;  %p91_p4 = scmp.eq.s32.totalorder %s5042_s17, 1 }
   0xa   : > { %s6646_s21 = scalar_select %p72_p1, %s6580_s14, %s74_s19  }
   0xb   : > { %p6648_p5 = por %p85_p2, %p84_p0  ;;  %p6652_p6 = por %p91_p4, %p90_p3 }
   0xc   : > { %p5045_p7 = scmp.ge.s32.totalorder %s6584_s15, 1  ;;  %p146_p8 = scmp.lt.s32.totalorder %s6584_s15, 3 }
   0xe   : > { %p147_p9 = pnand %p5045_p7, %p146_p8 }
  0x10   : > { %150 = sbr.rel (%p147_p9) target bundleno = 639 (0x27f), region = 28 }
  0x17   : > { %v6374_v0 = vld [vmem:[%s8474_s1 + $0x8] sm:$0xff]   ;;  %p175_p10 = scmp.lt.s32.totalorder %s6631_s16, 1  ;;  %v6375_v1 = vld [vmem:[%s8474_s1 + $0x20] sm:$0xff]   ;;  %vm231_vm0 = vsmask.f32 3328  ;;  %vm675_vm3 = vcmask 130048  }
  0x18   : > { %5763 = vmatprep.subr.bf16.mxu1 %v6374_v0  ;;  %v6669_v2 = vld [vmem:[%s8474_s1] sm:$0xff]   ;;  %5899 = vmatprep.subr.bf16.mxu0 %v6375_v1  ;;  %v6675_v3 = vld [vmem:[%s8474_s1 + $0x28] sm:$0xff]   ;;  %vm232_vm1 = vsmask.f32 7440  ;;  %vm1228_vm4 = vcmask 1042432   ;;  %vm1229_vm5 = vcmask 1046532  }
  0x19   : > { %s176_s28 = scalar_select %p175_p10, %s6631_s16, 1  ;;  %5764 = vmatpush3.bf16.msra.mxu1 %v6374_v0  ;;  %5900 = vmatpush3.bf16.msra.mxu0 %v6375_v1  ;;  %vm6699_vm2 = vmor %vm231_vm0, %vm232_vm1 }
  0x1a   : > { %5797 = vmatprep.subr.bf16.mxu1 %v6669_v2  ;;  %5933 = vmatprep.subr.bf16.mxu0 %v6675_v3  ;;  %vm6921_vm6 = vmor %vm1228_vm4, %vm1229_vm5  ;;  %s8346_s6 = sand.u32 1, %s6576_s13   ;;  %s6586_s25 = smov [#allocation2]  }
  0x1b   : > { %s6327_s4 = smul.u32 216, %s176_s28  ;;  %s5046_s7 = sshll.u32 %s8346_s6, 8 }
  0x1c   : > { %s8353_s8 = scalar_lea.vmem [#allocation2], %s5046_s7  ;;  %s4917_s20 = scalar_lea.sflag [#allocation3], %s8346_s6 }
  0x1d   : > { %s6680_s9 = scalar_lea.vmem %s8473_s0, %s6327_s4  ;;  %s4935_s10 = sshll.u32 %s8353_s8, 4  ;;  %s8396_s10 = int_to_ptr.vmem [resolvable:$true] %s4935_s10 }
  0x1e   : > { %v181_v4 = vld [vmem:[%s6680_s9] sm:$0xf]  ;;  %v182_v5 = vld [vmem:[%s6680_s9 + $0x4] sm:$0xf]  ;;  %v215_v6 = vld [vmem:[%s6680_s9 + $0x8] sm:$0x1] }
  0x1f   : > { %v235_v7 = vshrl.u32 %v181_v4, 16  ;;  %v238_v8 = vshll.u32 %v181_v4, 16  ;;  %v244_v9 = vshll.u32 %v182_v5, 16  ;;  %v248_v10 = vshrl.u32 %v182_v5, 16  ;;  %v5235_v11 = vld [vmem:[%s6680_s9 + $0xc] sm:$0xf] }
  0x20   : > { %v254_v12 = vshll.u32 %v215_v6, 16  ;;  %v6688_v13 = vld [vmem:[%s6680_s9 + $0x10] sm:$0xf]  ;;  %v6691_v14 = vld [vmem:[%s6680_s9 + $0x14] sm:$0x1]  ;;  %v2053_v20 = vshrl.u32 %v5235_v11, 16 }
  0x21   : > { %v237_v15 = vrot.slane %v235_v7, 4  ;;  %v240_v16 = vrot.slane %v238_v8, 5  ;;  %v246_v17 = vrot.slane %v244_v9, 5  ;;  %v250_v18 = vrot.slane %v248_v10, 4  ;;  %v183_v27 = vld [vmem:[%s6680_s9 + $0xc] sm:$0xf] }
  0x22   : > { %v256_v19 = vrot.slane %v254_v12, 5  ;;  %v2056_v21 = vshll.u32 %v5235_v11, 16  ;;  %v2062_v22 = vshll.u32 %v6688_v13, 16  ;;  %v2066_v25 = vshrl.u32 %v6688_v13, 16  ;;  %v184_v32 = vld [vmem:[%s6680_s9 + $0x10] sm:$0xf] }
  0x23   : > { %v241_v23 = vor.u32 %v240_v16, %v237_v15  ;;  %v251_v24 = vor.u32 %v250_v18, %v246_v17  ;;  %v2072_v26 = vshll.u32 %v6691_v14, 16  ;;  %v2055_v29 = vrot.slane %v2053_v20, 4  ;;  %v216_v38 = vld [vmem:[%s6680_s9 + $0x14] sm:$0x1]  ;;  %v5238_v49 = vld [vmem:[%s6680_s9 + $0x18] sm:$0xf] }
  0x24   : > { %v2058_v30 = vrot.slane %v2056_v21, 5  ;;  %v2064_v31 = vrot.slane %v2062_v22, 5  ;;  %v2068_v35 = vrot.slane %v2066_v25, 4  ;;  %v259_v39 = vshrl.u32 %v183_v27, 16  ;;  %v6711_v54 = vld [vmem:[%s6680_s9 + $0x1c] sm:$0xf] }
  0x25   : > { %v242_v33 = vrot.slane %v241_v23, 4  ;;  %v252_v34 = vrot.slane %v251_v24, 4  ;;  %v2074_v37 = vrot.slane %v2072_v26, 5  ;;  %v262_v40 = vshll.u32 %v183_v27, 16  ;;  %v6719_v59 = vld [vmem:[%s6680_s9 + $0x20] sm:$0x1] }
  0x26   : > { %v2059_v36 = vor.u32 %v2058_v30, %v2055_v29  ;;  %v2069_v43 = vor.u32 %v2068_v35, %v2064_v31  ;;  %v268_v44 = vshll.u32 %v184_v32, 16  ;;  %v261_v47 = vrot.slane %v259_v39, 4  ;;  %v185_v10 = vld [vmem:[%s6680_s9 + $0x18] sm:$0xf]  ;;  %v217_v24 = vld [vmem:[%s6680_s9 + $0x20] sm:$0x1] }
  0x27   : > { %v247_v41 = vsel %vm6699_vm2, %v242_v33, %v246_v17  ;;  %v257_v42 = vsel %vm6699_vm2, %v252_v34, %v256_v19  ;;  %v264_v48 = vrot.slane %v262_v40, 5  ;;  %v272_v52 = vshrl.u32 %v184_v32, 16  ;;  %v186_v17 = vld [vmem:[%s6680_s9 + $0x1c] sm:$0xf]  ;;  %v5241_v32 = vld [vmem:[%s6680_s9 + $0x24] sm:$0xf] }
  0x28   : > { %v5051_v45 = vcombine.low %v247_v41, %v257_v42  ;;  %v2060_v46 = vrot.slane %v2059_v36, 4  ;;  %v2070_v50 = vrot.slane %v2069_v43, 4  ;;  %v270_v51 = vrot.slane %v268_v44, 5  ;;  %s6490_s24 = scalar_lea.vmem %s8396_s10, 4096  ;;  %s6494_s26 = sshll.u32 %s6586_s25, 4  ;;  %s6495_s26 = int_to_ptr.vmem [resolvable:$false] %s6494_s26 }
  0x29   : > { %v278_v53 = vshll.u32 %v216_v38, 16  ;;  %v2800_v56 = vrot.slane %v6688_v13, 5  ;;  %v2803_v57 = vrot.slane %v6691_v14, 5  ;;  %v265_v58 = vor.u32 %v264_v48, %v261_v47  ;;  %v6380_v38 = vld [vmem:[%s8474_s1 + $0x10] sm:$0xff]   ;;  %v6954_v14 = vld [vmem:[%s6680_s9 + $0x7c] sm:$0xf]  ;;  %p6491_p11 = scmp.ne.s32.totalorder %s8396_s10, %s6490_s24  ;;  %p6497_p0 = scmp.lt.s32.totalorder %s8396_s10, %s6495_s26 }
  0x2a   : > { %5765 = vmatprep.mubr.msk.bf16.mxu1 %vm675_vm3, %v5051_v45  ;;  %v2065_v55 = vsel %vm6699_vm2, %v2060_v46, %v2064_v31  ;;  %v2075_v60 = vsel %vm6699_vm2, %v2070_v50, %v2074_v37  ;;  %v274_v61 = vrot.slane %v272_v52, 4  ;;  %v2077_v63 = vshrl.u32 %v5238_v49, 16  ;;  %v6742_v37 = vld [vmem:[%s6680_s9 + $0x28] sm:$0xf]  ;;  %v6751_v45 = vld [vmem:[%s6680_s9 + $0x2c] sm:$0x1] }
  0x2b   : > { %v280_v62 = vrot.slane %v278_v53, 5  ;;  %v5285_v0 = vcombine.low %v2065_v55, %v2075_v60  ;;  %v266_v1 = vrot.slane %v265_v58, 4  ;;  %v2080_v4 = vshll.u32 %v5238_v49, 16  ;;  %v187_v52 = vld [vmem:[%s6680_s9 + $0x24] sm:$0xf]  ;;  %p6492_p12 = pnand %p6491_p11, %p6648_p5  ;;  %s6496_s27 = scalar_lea.vmem %s6495_s26, 8192 }
  0x2c   : > { %v2086_v5 = vshll.u32 %v6711_v54, 16  ;;  %v275_v6 = vor.u32 %v274_v61, %v270_v51  ;;  %v2079_v7 = vrot.slane %v2077_v63, 4  ;;  %v2090_v8 = vshrl.u32 %v6711_v54, 16  ;;  %v188_v61 = vld [vmem:[%s6680_s9 + $0x28] sm:$0xf]  ;;  %p6498_p1 = scmp.lt.s32.totalorder %s6496_s27, %s6490_s24 }
  0x2d   : > { %v2096_v9 = vshll.u32 %v6719_v59, 16  ;;  %5901 = vmatprep.mubr.msk.bf16.mxu0 %vm675_vm3, %v5285_v0  ;;  %v271_v11 = vsel %vm6699_vm2, %v266_v1, %v270_v51  ;;  %v2082_v12 = vrot.slane %v2080_v4, 5  ;;  %v2807_v16 = vrot.slane %v6711_v54, 5  ;;  %p6493_p13 = pneg %p6492_p12 }
  0x2e   : > { %v2088_v15 = vrot.slane %v2086_v5, 5  ;;  %v276_v18 = vrot.slane %v275_v6, 4  ;;  %v2092_v19 = vrot.slane %v2090_v8, 4  ;;  %v2810_v21 = vrot.slane %v6719_v59, 5  ;;  %v218_v6 = vld [vmem:[%s6680_s9 + $0x2c] sm:$0x1]  ;;  %p6499_p2 = por %p6498_p1, %p6497_p0 }
  0x2f   : > { %v2098_v20 = vrot.slane %v2096_v9, 5  ;;  %v2083_v22 = vor.u32 %v2082_v12, %v2079_v7  ;;  %v6735_v23 = vrot.slane %v2807_v16, 4  ;;  %v283_v25 = vshrl.u32 %v185_v10, 16 }
  0x30   : > { %v286_v26 = vshll.u32 %v185_v10, 16  ;;  %v281_v27 = vsel %vm6699_vm2, %v276_v18, %v280_v62  ;;  %v2093_v29 = vor.u32 %v2092_v19, %v2088_v15  ;;  %v292_v30 = vshll.u32 %v186_v17, 16  ;;  %v6762_v62 = vld [vmem:[%s8474_s1 + $0x30] sm:$0xff]   ;;  %p6500_p3 = pnand %p6499_p2, %p6493_p13 }
  0x31   : > { %v296_v31 = vshrl.u32 %v186_v17, 16  ;;  %v5052_v33 = vcombine.low %v271_v11, %v281_v27  ;;  %v2084_v34 = vrot.slane %v2083_v22, 4  ;;  %v285_v35 = vrot.slane %v283_v25, 4  ;;  %v6775_v22 = vld [vmem:[%s6680_s9 + $0x34] sm:$0xf] }
  0x32   : > { %v288_v36 = vrot.slane %v286_v26, 5  ;;  %v2094_v39 = vrot.slane %v2093_v29, 4  ;;  %v294_v40 = vrot.slane %v292_v30, 5  ;;  %v302_v42 = vshll.u32 %v217_v24, 16  ;;  %v6782_v30 = vld [vmem:[%s6680_s9 + $0x38] sm:$0x1] }
  0x33   : > { %v298_v41 = vrot.slane %v296_v31, 4  ;;  %5766 = vmatmul.mubr.msk.bf16.vlgmr.msra.gmra.mrb[0].mxu1 %vm675_vm3, %v5052_v33  ;;  %v2089_v43 = vsel %vm6699_vm2, %v2084_v34, %v2088_v15  ;;  %v2101_v46 = vshrl.u32 %v5241_v32, 16  ;;  %v2104_v47 = vshll.u32 %v5241_v32, 16  ;;  %v5244_v15 = vld [vmem:[%s6680_s9 + $0x30] sm:$0xf] }
  0x34   : > { %v289_v44 = vor.u32 %v288_v36, %v285_v35  ;;  %5798 = vmatpush3.bf16.msra.mxu1 %v6669_v2  ;;  %v2099_v48 = vsel %vm6699_vm2, %v2094_v39, %v2098_v20  ;;  %v304_v50 = vrot.slane %v302_v42, 5  ;;  %v2110_v51 = vshll.u32 %v6742_v37, 16  ;;  %v189_v42 = vld [vmem:[%s6680_s9 + $0x30] sm:$0xf] }
  0x35   : > { %v299_v49 = vor.u32 %v298_v41, %v294_v40  ;;  %v5286_v53 = vcombine.low %v2089_v43, %v2099_v48  ;;  %v2103_v58 = vrot.slane %v2101_v46, 4  ;;  %v2106_v60 = vrot.slane %v2104_v47, 5  ;;  %5831 = vmatprep.subr.bf16.mxu1 %v6380_v38  ;;  %v190_v48 = vld [vmem:[%s6680_s9 + $0x34] sm:$0xf] }
  0x36   : > { %v290_v55 = vrot.slane %v289_v44, 4  ;;  %v2112_v63 = vrot.slane %v2110_v51, 5  ;;  %v2114_v0 = vshrl.u32 %v6742_v37, 16  ;;  %v2120_v1 = vshll.u32 %v6751_v45, 16 }
  0x37   : > { %v300_v2 = vrot.slane %v299_v49, 4  ;;  %5902 = vmatmul.mubr.msk.bf16.vlgmr.msra.gmra.mrb[0].mxu0 %vm675_vm3, %v5286_v53  ;;  %v2107_v5 = vor.u32 %v2106_v60, %v2103_v58  ;;  %v307_v7 = vshrl.u32 %v187_v52, 16  ;;  %v310_v8 = vshll.u32 %v187_v52, 16  ;;  %v219_v53 = vld [vmem:[%s6680_s9 + $0x38] sm:$0x1] }
  0x38   : > { %v295_v4 = vsel %vm6699_vm2, %v290_v55, %v294_v40  ;;  %5934 = vmatpush3.bf16.msra.mxu0 %v6675_v3  ;;  %v2116_v10 = vrot.slane %v2114_v0, 4  ;;  %v2122_v11 = vrot.slane %v2120_v1, 5  ;;  %v316_v12 = vshll.u32 %v188_v61, 16 }
  0x39   : > { %v305_v9 = vsel %vm6699_vm2, %v300_v2, %v304_v50  ;;  %v2108_v18 = vrot.slane %v2107_v5, 4  ;;  %v309_v19 = vrot.slane %v307_v7, 4  ;;  %v312_v20 = vrot.slane %v310_v8, 5  ;;  %5967 = vmatprep.subr.bf16.mxu0 %v6762_v62 }
  0x3a   : > { %v5053_v17 = vcombine.low %v295_v4, %v305_v9  ;;  %v2117_v24 = vor.u32 %v2116_v10, %v2112_v63  ;;  %v318_v25 = vrot.slane %v316_v12, 5  ;;  %v320_v26 = vshrl.u32 %v188_v61, 16  ;;  %v5247_v4 = vld [vmem:[%s6680_s9 + $0x3c] sm:$0xf]  ;;  %v6799_v9 = vld [vmem:[%s6680_s9 + $0x40] sm:$0xf] }
  0x3b   : > { %v326_v3 = vshll.u32 %v218_v6, 16  ;;  %v2113_v27 = vsel %vm6699_vm2, %v2108_v18, %v2112_v63  ;;  %v313_v29 = vor.u32 %v312_v20, %v309_v19  ;;  %v2125_v31 = vshrl.u32 %v5244_v15, 16  ;;  %v6804_v20 = vld [vmem:[%s6680_s9 + $0x44] sm:$0x1] }
  0x3c   : > { %5769 = vmatprep.mubr.msk.bf16.mxu1 %vm675_vm3, %v5053_v17  ;;  %v2128_v32 = vshll.u32 %v5244_v15, 16  ;;  %v2118_v33 = vrot.slane %v2117_v24, 4  ;;  %v322_v34 = vrot.slane %v320_v26, 4  ;;  %v2134_v36 = vshll.u32 %v6775_v22, 16 }
  0x3d   : > { %v328_v35 = vrot.slane %v326_v3, 5  ;;  %v314_v38 = vrot.slane %v313_v29, 4  ;;  %v2127_v39 = vrot.slane %v2125_v31, 4  ;;  %v2138_v41 = vshrl.u32 %v6775_v22, 16  ;;  %v191_v29 = vld [vmem:[%s6680_s9 + $0x3c] sm:$0xf] }
  0x3e   : > { %v2130_v40 = vrot.slane %v2128_v32, 5  ;;  %v2123_v43 = vsel %vm6699_vm2, %v2118_v33, %v2122_v11  ;;  %v323_v44 = vor.u32 %v322_v34, %v318_v25  ;;  %v2136_v46 = vrot.slane %v2134_v36, 5 }
  0x3f   : > { %v2144_v47 = vshll.u32 %v6782_v30, 16  ;;  %v5287_v49 = vcombine.low %v2113_v27, %v2123_v43  ;;  %v319_v50 = vsel %vm6699_vm2, %v314_v38, %v318_v25  ;;  %v2140_v52 = vrot.slane %v2138_v41, 4 }
  0x40   : > { %v2131_v51 = vor.u32 %v2130_v40, %v2127_v39  ;;  %v324_v55 = vrot.slane %v323_v44, 4  ;;  %v331_v60 = vshrl.u32 %v189_v42, 16  ;;  %v334_v61 = vshll.u32 %v189_v42, 16 }
  0x41   : > { %v2146_v58 = vrot.slane %v2144_v47, 5  ;;  %5905 = vmatprep.mubr.msk.bf16.mxu0 %vm675_vm3, %v5287_v49  ;;  %v2141_v63 = vor.u32 %v2140_v52, %v2136_v46  ;;  %v340_v0 = vshll.u32 %v190_v48, 16  ;;  %v344_v1 = vshrl.u32 %v190_v48, 16  ;;  %v220_v49 = vld [vmem:[%s6680_s9 + $0x44] sm:$0x1] }
  0x42   : > { %v2132_v2 = vrot.slane %v2131_v51, 4  ;;  %v329_v5 = vsel %vm6699_vm2, %v324_v55, %v328_v35  ;;  %v333_v6 = vrot.slane %v331_v60, 4  ;;  %v336_v7 = vrot.slane %v334_v61, 5  ;;  %v192_v35 = vld [vmem:[%s6680_s9 + $0x40] sm:$0xf] }
  0x43   : > { %v350_v8 = vshll.u32 %v219_v53, 16  ;;  %v5054_v10 = vcombine.low %v319_v50, %v329_v5  ;;  %v2142_v12 = vrot.slane %v2141_v63, 4  ;;  %v342_v15 = vrot.slane %v340_v0, 5  ;;  %v5250_v51 = vld [vmem:[%s6680_s9 + $0x48] sm:$0xf] }
  0x44   : > { %v2137_v11 = vsel %vm6699_vm2, %v2132_v2, %v2136_v46  ;;  %v337_v17 = vor.u32 %v336_v7, %v333_v6  ;;  %v346_v18 = vrot.slane %v344_v1, 4  ;;  %v2149_v24 = vshrl.u32 %v5247_v4, 16  ;;  %v6822_v60 = vld [vmem:[%s6680_s9 + $0x4c] sm:$0xf] }
  0x45   : > { %v352_v19 = vrot.slane %v350_v8, 5  ;;  %5770 = vmatmul.mubr.msk.bf16.gmra.mrb[4].mxu1 %vm675_vm3, %v5054_v10  ;;  %v2147_v25 = vsel %vm6699_vm2, %v2142_v12, %v2146_v58  ;;  %v2152_v26 = vshll.u32 %v5247_v4, 16  ;;  %v2158_v3 = vshll.u32 %v6799_v9, 16  ;;  %v6830_v10 = vld [vmem:[%s6680_s9 + $0x50] sm:$0x1] }
  0x46   : > { %v2162_v27 = vshrl.u32 %v6799_v9, 16  ;;  %v5288_v31 = vcombine.low %v2137_v11, %v2147_v25  ;;  %v338_v32 = vrot.slane %v337_v17, 4  ;;  %v347_v33 = vor.u32 %v346_v18, %v342_v15  ;;  %v6837_v25 = vld [vmem:[%s6680_s9 + $0x4c] sm:$0xf] }
  0x47   : > { %v2151_v34 = vrot.slane %v2149_v24, 4  ;;  %v2154_v36 = vrot.slane %v2152_v26, 5  ;;  %v2160_v38 = vrot.slane %v2158_v3, 5  ;;  %v2168_v40 = vshll.u32 %v6804_v20, 16 }
  0x48   : > { %v2164_v39 = vrot.slane %v2162_v27, 4  ;;  %5906 = vmatmul.mubr.msk.bf16.gmra.mrb[4].mxu0 %vm675_vm3, %v5288_v31  ;;  %v343_v41 = vsel %vm6699_vm2, %v338_v32, %v342_v15  ;;  %v348_v42 = vrot.slane %v347_v33, 4  ;;  %v355_v43 = vshrl.u32 %v191_v29, 16  ;;  %v6834_v15 = vld [vmem:[%s6680_s9 + $0x48] sm:$0xf] }
  0x49   : > { %v358_v44 = vshll.u32 %v191_v29, 16  ;;  %v2155_v46 = vor.u32 %v2154_v36, %v2151_v34  ;;  %v2170_v48 = vrot.slane %v2168_v40, 5  ;;  %v364_v50 = vshll.u32 %v192_v35, 16  ;;  %v221_v34 = vld [vmem:[%s6680_s9 + $0x50] sm:$0x1] }
  0x4a   : > { %v2165_v47 = vor.u32 %v2164_v39, %v2160_v38  ;;  %v353_v52 = vsel %vm6699_vm2, %v348_v42, %v352_v19  ;;  %v357_v53 = vrot.slane %v355_v43, 4  ;;  %v368_v58 = vshrl.u32 %v192_v35, 16 }
  0x4b   : > { %v360_v55 = vrot.slane %v358_v44, 5  ;;  %v5055_v61 = vcombine.low %v343_v41, %v353_v52  ;;  %v2156_v2 = vrot.slane %v2155_v46, 4  ;;  %v366_v0 = vrot.slane %v364_v50, 5  ;;  %v5253_v41 = vld [vmem:[%s6680_s9 + $0x54] sm:$0xf] }
  0x4c   : > { %v2166_v63 = vrot.slane %v2165_v47, 4  ;;  %v370_v4 = vrot.slane %v368_v58, 4  ;;  %v374_v5 = vshll.u32 %v220_v49, 16  ;;  %v2173_v6 = vshrl.u32 %v5250_v51, 16 }
  0x4d   : > { %v361_v1 = vor.u32 %v360_v55, %v357_v53  ;;  %5773 = vmatprep.mubr.msk.bf16.mxu1 %vm675_vm3, %v5055_v61  ;;  %v2161_v7 = vsel %vm6699_vm2, %v2156_v2, %v2160_v38  ;;  %v2176_v11 = vshll.u32 %v5250_v51, 16  ;;  %v2182_v12 = vshll.u32 %v6822_v60, 16  ;;  %v6853_v51 = vld [vmem:[%s6680_s9 + $0x58] sm:$0xf] }
  0x4e   : > { %v2171_v8 = vsel %vm6699_vm2, %v2166_v63, %v2170_v48  ;;  %v371_v19 = vor.u32 %v370_v4, %v366_v0  ;;  %v376_v24 = vrot.slane %v374_v5, 5  ;;  %v2175_v26 = vrot.slane %v2173_v6, 4 }
  0x4f   : > { %v5289_v17 = vcombine.low %v2161_v7, %v2171_v8  ;;  %v362_v18 = vrot.slane %v361_v1, 4  ;;  %v2178_v3 = vrot.slane %v2176_v11, 5  ;;  %v2184_v27 = vrot.slane %v2182_v12, 5  ;;  %v6863_v8 = vld [vmem:[%s6680_s9 + $0x54] sm:$0xf] }
  0x50   : > { %v2186_v29 = vshrl.u32 %v6822_v60, 16  ;;  %v372_v32 = vrot.slane %v371_v19, 4  ;;  %v2192_v33 = vshll.u32 %v6830_v10, 16  ;;  %v379_v35 = vshrl.u32 %v6834_v15, 16  ;;  %v6869_v19 = vld [vmem:[%s6680_s9 + $0x58] sm:$0xf] }
  0x51   : > { %5909 = vmatprep.mubr.msk.bf16.mxu0 %vm675_vm3, %v5289_v17  ;;  %v367_v31 = vsel %vm6699_vm2, %v362_v18, %v366_v0  ;;  %v2179_v36 = vor.u32 %v2178_v3, %v2175_v26  ;;  %v382_v39 = vshll.u32 %v6834_v15, 16  ;;  %v388_v40 = vshll.u32 %v6837_v25, 16  ;;  %v6859_v0 = vld [vmem:[%s6680_s9 + $0x5c] sm:$0x1] }
  0x52   : > { %v2188_v38 = vrot.slane %v2186_v29, 4  ;;  %v377_v42 = vsel %vm6699_vm2, %v372_v32, %v376_v24  ;;  %v2194_v43 = vrot.slane %v2192_v33, 5  ;;  %v381_v44 = vrot.slane %v379_v35, 4  ;;  %v222_v33 = vld [vmem:[%s6680_s9 + $0x5c] sm:$0x1] }
  0x53   : > { %v392_v46 = vshrl.u32 %v6837_v25, 16  ;;  %v5056_v47 = vcombine.low %v367_v31, %v377_v42  ;;  %v2180_v48 = vrot.slane %v2179_v36, 4  ;;  %v384_v50 = vrot.slane %v382_v39, 5 }
  0x54   : > { %v2189_v49 = vor.u32 %v2188_v38, %v2184_v27  ;;  %v390_v52 = vrot.slane %v388_v40, 5  ;;  %v398_v55 = vshll.u32 %v221_v34, 16  ;;  %v2197_v58 = vshrl.u32 %v5253_v41, 16  ;;  %v5256_v40 = vld [vmem:[%s6680_s9 + $0x60] sm:$0xf] }
  0x55   : > { %v394_v53 = vrot.slane %v392_v46, 4  ;;  %5774 = vmatmul.mubr.msk.bf16.gmra.mrb[8].mxu1 %vm675_vm3, %v5056_v47  ;;  %v2185_v61 = vsel %vm6699_vm2, %v2180_v48, %v2184_v27  ;;  %v385_v63 = vor.u32 %v384_v50, %v381_v44  ;;  %v2200_v1 = vshll.u32 %v5253_v41, 16  ;;  %v6883_v46 = vld [vmem:[%s6680_s9 + $0x64] sm:$0xf] }
  0x56   : > { %v2190_v2 = vrot.slane %v2189_v49, 4  ;;  %v400_v5 = vrot.slane %v398_v55, 5  ;;  %v2199_v6 = vrot.slane %v2197_v58, 4  ;;  %v2206_v7 = vshll.u32 %v6853_v51, 16  ;;  %v6890_v55 = vld [vmem:[%s6680_s9 + $0x68] sm:$0x1] }
  0x57   : > { %v395_v4 = vor.u32 %v394_v53, %v390_v52  ;;  %v386_v12 = vrot.slane %v385_v63, 4  ;;  %v2202_v17 = vrot.slane %v2200_v1, 5  ;;  %v2210_v18 = vshrl.u32 %v6853_v51, 16 }
  0x58   : > { %v2195_v11 = vsel %vm6699_vm2, %v2190_v2, %v2194_v43  ;;  %v2208_v3 = vrot.slane %v2206_v7, 5  ;;  %v2216_v27 = vshll.u32 %v6859_v0, 16  ;;  %v403_v34 = vshrl.u32 %v6863_v8, 16 }
  0x59   : > { %v5290_v24 = vcombine.low %v2185_v61, %v2195_v11  ;;  %v396_v26 = vrot.slane %v395_v4, 4  ;;  %v391_v29 = vsel %vm6699_vm2, %v386_v12, %v390_v52  ;;  %v2203_v31 = vor.u32 %v2202_v17, %v2199_v6  ;;  %v6900_v17 = vld [vmem:[%s6680_s9 + $0x64] sm:$0xf] }
  0x5a   : > { %v2212_v32 = vrot.slane %v2210_v18, 4  ;;  %v2218_v36 = vrot.slane %v2216_v27, 5  ;;  %v406_v38 = vshll.u32 %v6863_v8, 16  ;;  %v412_v39 = vshll.u32 %v6869_v19, 16 }
  0x5b   : > { %5910 = vmatmul.mubr.msk.bf16.gmra.mrb[8].mxu0 %vm675_vm3, %v5290_v24  ;;  %v401_v35 = vsel %vm6699_vm2, %v396_v26, %v400_v5  ;;  %v2204_v42 = vrot.slane %v2203_v31, 4  ;;  %v405_v44 = vrot.slane %v403_v34, 4  ;;  %v416_v49 = vshrl.u32 %v6869_v19, 16  ;;  %v6894_v5 = vld [vmem:[%s6680_s9 + $0x60] sm:$0xf] }
  0x5c   : > { %v5057_v41 = vcombine.low %v391_v29, %v401_v35  ;;  %v2213_v43 = vor.u32 %v2212_v32, %v2208_v3  ;;  %v408_v47 = vrot.slane %v406_v38, 5  ;;  %v414_v48 = vrot.slane %v412_v39, 5  ;;  %v223_v35 = vld [vmem:[%s6680_s9 + $0x68] sm:$0x1] }
  0x5d   : > { %v422_v50 = vshll.u32 %v222_v33, 16  ;;  %v2209_v52 = vsel %vm6699_vm2, %v2204_v42, %v2208_v3  ;;  %v2221_v58 = vshrl.u32 %v5256_v40, 16  ;;  %v2224_v61 = vshll.u32 %v5256_v40, 16 }
  0x5e   : > { %5777 = vmatprep.mubr.msk.bf16.mxu1 %vm675_vm3, %v5057_v41  ;;  %v2214_v53 = vrot.slane %v2213_v43, 4  ;;  %v409_v2 = vor.u32 %v408_v47, %v405_v44  ;;  %v418_v63 = vrot.slane %v416_v49, 4  ;;  %v2230_v4 = vshll.u32 %v6883_v46, 16  ;;  %v5318_v43 = vld [vmem:[%s6680_s9 + $0xc] sm:$0xe] }
  0x5f   : > { %v424_v1 = vrot.slane %v422_v50, 5  ;;  %v2223_v7 = vrot.slane %v2221_v58, 4  ;;  %v2226_v11 = vrot.slane %v2224_v61, 5  ;;  %v2234_v12 = vshrl.u32 %v6883_v46, 16 }
  0x60   : > { %v2219_v6 = vsel %vm6699_vm2, %v2214_v53, %v2218_v36  ;;  %v410_v24 = vrot.slane %v409_v2, 4  ;;  %v419_v26 = vor.u32 %v418_v63, %v414_v48  ;;  %v2232_v3 = vrot.slane %v2230_v4, 5 }
  0x61   : > { %v5291_v18 = vcombine.low %v2209_v52, %v2219_v6  ;;  %v2227_v27 = vor.u32 %v2226_v11, %v2223_v7  ;;  %v2236_v29 = vrot.slane %v2234_v12, 4  ;;  %v2240_v31 = vshll.u32 %v6890_v55, 16  ;;  %v6928_v7 = vld [vmem:[%s6680_s9 + $0x70] sm:$0xf] }
  0x62   : > { %v427_v32 = vshrl.u32 %v6894_v5, 16  ;;  %v415_v33 = vsel %vm6699_vm2, %v410_v24, %v414_v48  ;;  %v420_v34 = vrot.slane %v419_v26, 4  ;;  %v430_v36 = vshll.u32 %v6894_v5, 16  ;;  %v6915_v48 = vld [vmem:[%s6680_s9 + $0x6c] sm:$0xf] }
  0x63   : > { %5913 = vmatprep.mubr.msk.bf16.mxu0 %vm675_vm3, %v5291_v18  ;;  %v436_v38 = vshll.u32 %v6900_v17, 16  ;;  %v2228_v39 = vrot.slane %v2227_v27, 4  ;;  %v2237_v40 = vor.u32 %v2236_v29, %v2232_v3  ;;  %v2242_v41 = vrot.slane %v2240_v31, 5  ;;  %v224_v31 = vld [vmem:[%s6680_s9 + $0x74] sm:$0x1] }
  0x64   : > { %v429_v42 = vrot.slane %v427_v32, 4  ;;  %v425_v44 = vsel %vm6699_vm2, %v420_v34, %v424_v1  ;;  %v432_v47 = vrot.slane %v430_v36, 5  ;;  %v440_v50 = vshrl.u32 %v6900_v17, 16  ;;  %v5319_v32 = vld [vmem:[%s6680_s9 + $0x18] sm:$0xe] }
  0x65   : > { %v438_v49 = vrot.slane %v436_v38, 5  ;;  %v5058_v52 = vcombine.low %v415_v33, %v425_v44  ;;  %v2233_v53 = vsel %vm6699_vm2, %v2228_v39, %v2232_v3  ;;  %v2238_v58 = vrot.slane %v2237_v40, 4  ;;  %v6947_v38 = vld [vmem:[%s6680_s9 + $0x78] sm:$0xf] }
  0x66   : > { %v446_v61 = vshll.u32 %v223_v35, 16  ;;  %v433_v63 = vor.u32 %v432_v47, %v429_v42  ;;  %v442_v1 = vrot.slane %v440_v50, 4  ;;  %v5334_v4 = vrot.slane %v5318_v43, 9  ;;  %v5320_v47 = vld [vmem:[%s6680_s9 + $0x24] sm:$0xe] }
  0x67   : > { %v2802_v6 = vrot.slane %v2800_v56, 4  ;;  %5778 = vmatmul.mubr.msk.bf16.gmra.mrb[12].mxu1 %vm675_vm3, %v5058_v52  ;;  %v2243_v11 = vsel %vm6699_vm2, %v2238_v58, %v2242_v41  ;;  %v451_v18 = vshrl.u32 %v6915_v48, 16  ;;  %v454_v24 = vshll.u32 %v6915_v48, 16  ;;  %v225_v41 = vld [vmem:[%s6680_s9 + $0x80] sm:$0x1] }
  0x68   : > { %v448_v12 = vrot.slane %v446_v61, 5  ;;  %v5292_v26 = vcombine.low %v2233_v53, %v2243_v11  ;;  %v434_v3 = vrot.slane %v433_v63, 4  ;;  %v443_v27 = vor.u32 %v442_v1, %v438_v49 }
  0x69   : > { %v2801_v29 = vsel %vm6921_vm6, %v5334_v4, %v2800_v56  ;;  %v2804_v33 = vsel %vm6921_vm6, %v2802_v6, %v2803_v57  ;;  %v453_v34 = vrot.slane %v451_v18, 4  ;;  %v456_v35 = vrot.slane %v454_v24, 5  ;;  %v6981_v24 = vld [vmem:[%s6680_s9 + $0x88] sm:$0xf] }
  0x6a   : > { %v460_v36 = vshll.u32 %v6928_v7, 16  ;;  %5914 = vmatmul.mubr.msk.bf16.gmra.mrb[12].mxu0 %vm675_vm3, %v5292_v26  ;;  %v439_v13 = vsel %vm6699_vm2, %v434_v3, %v438_v49  ;;  %v444_v56 = vrot.slane %v443_v27, 4  ;;  %v5352_v39 = vcombine.low %v2801_v29, %v2804_v33 }
  0x6b   : > { %v464_v40 = vshrl.u32 %v6928_v7, 16  ;;  %v457_v57 = vor.u32 %v456_v35, %v453_v34  ;;  %v470_v43 = vshll.u32 %v224_v31, 16  ;;  %v5335_v44 = vrot.slane %v5319_v32, 9  ;;  %v226_v35 = vld [vmem:[%s6680_s9 + $0x8c] sm:$0x1] }
  0x6c   : > { %v462_v42 = vrot.slane %v460_v36, 5  ;;  %v449_v50 = vsel %vm6699_vm2, %v444_v56, %v448_v12  ;;  %5935 = vmatprep.mubr.msk.bf16.mxu0 %vm675_vm3, %v5352_v39  ;;  %v2811_v49 = vsel %vm6921_vm6, %v6735_v23, %v2810_v21  ;;  %v475_v53 = vshrl.u32 %v6947_v38, 16  ;;  %v6973_v12 = vld [vmem:[%s6680_s9 + $0x84] sm:$0xf] }
  0x6d   : > { %v466_v52 = vrot.slane %v464_v40, 4  ;;  %v5059_v58 = vcombine.low %v439_v13, %v449_v50  ;;  %v458_v61 = vrot.slane %v457_v57, 4  ;;  %v472_v63 = vrot.slane %v470_v43, 5  ;;  %v5321_v40 = vld [vmem:[%s6680_s9 + $0x30] sm:$0xe] }
  0x6e   : > { %v2808_v1 = vsel %vm6921_vm6, %v5335_v44, %v2807_v16  ;;  %v477_v11 = vrot.slane %v475_v53, 4  ;;  %v478_v59 = vshll.u32 %v6947_v38, 16  ;;  %v484_v23 = vshll.u32 %v6954_v14, 16  ;;  %v6986_v16 = vld [vmem:[%s8474_s1 + $0x38] sm:$0xff]   ;;  %v7005_v50 = vld [vmem:[%s6680_s9 + $0x90] sm:$0xf] }
  0x6f   : > { %v467_v4 = vor.u32 %v466_v52, %v462_v42  ;;  %v5353_v6 = vcombine.low %v2808_v1, %v2811_v49  ;;  %5781 = vmatprep.mubr.msk.bf16.mxu1 %vm675_vm3, %v5059_v58  ;;  %v463_v21 = vsel %vm6699_vm2, %v458_v61, %v462_v42  ;;  %v488_v54 = vshrl.u32 %v6954_v14, 16  ;;  %v7010_v58 = vld [vmem:[%s6680_s9 + $0x94] sm:$0xf] }
  0x70   : > { %v494_v18 = vshll.u32 %v225_v41, 16  ;;  %v480_v3 = vrot.slane %v478_v59, 5  ;;  %v5336_v27 = vrot.slane %v5320_v47, 9  ;;  %v2814_v29 = vrot.slane %v6742_v37, 5 }
  0x71   : > { %v468_v26 = vrot.slane %v467_v4, 4  ;;  %v486_v31 = vrot.slane %v484_v23, 5  ;;  %v490_v32 = vrot.slane %v488_v54, 4  ;;  %v2817_v34 = vrot.slane %v6751_v45, 5  ;;  %v227_v23 = vld [vmem:[%s6680_s9 + $0x98] sm:$0x1] }
  0x72   : > { %v496_v33 = vrot.slane %v494_v18, 5  ;;  %5936 = vmatmul.mubr.msk.bf16.vlgmr.msra.gmra.mrb[0].mxu0 %vm675_vm3, %v5353_v6  ;;  %v481_v13 = vor.u32 %v480_v3, %v477_v11  ;;  %v2815_v56 = vsel %vm6921_vm6, %v5336_v27, %v2814_v29  ;;  %v2816_v39 = vrot.slane %v2814_v29, 4  ;;  %v5322_v27 = vld [vmem:[%s6680_s9 + $0x3c] sm:$0xe] }
  0x73   : > { %v473_v36 = vsel %vm6699_vm2, %v468_v26, %v472_v63  ;;  %5968 = vmatpush3.bf16.msra.mxu0 %v6762_v62  ;;  %v491_v37 = vor.u32 %v490_v32, %v486_v31  ;;  %v499_v45 = vshrl.u32 %v6973_v12, 16  ;;  %v502_v57 = vshll.u32 %v6973_v12, 16 }
  0x74   : > { %v5060_v41 = vcombine.low %v463_v21, %v473_v36  ;;  %v482_v42 = vrot.slane %v481_v13, 4  ;;  %v2818_v43 = vsel %vm6921_vm6, %v2816_v39, %v2817_v34  ;;  %v508_v44 = vshll.u32 %v6981_v24, 16  ;;  %6001 = vmatprep.subr.bf16.mxu0 %v6986_v16 }
  0x75   : > { %v512_v47 = vshrl.u32 %v6981_v24, 16  ;;  %v492_v62 = vrot.slane %v491_v37, 4  ;;  %v5354_v52 = vcombine.low %v2815_v56, %v2818_v43  ;;  %v501_v49 = vrot.slane %v499_v45, 4 }
  0x76   : > { %5782 = vmatmul.mubr.msk.bf16.gmra.mrb[16].mxu1 %vm675_vm3, %v5060_v41  ;;  %v504_v53 = vrot.slane %v502_v57, 5  ;;  %v487_v61 = vsel %vm6699_vm2, %v482_v42, %v486_v31  ;;  %v510_v63 = vrot.slane %v508_v44, 5  ;;  %v518_v4 = vshll.u32 %v226_v35, 16  ;;  %v7038_v42 = vld [vmem:[%s6680_s9 + $0xa0] sm:$0xf] }
  0x77   : > { %v514_v1 = vrot.slane %v512_v47, 4  ;;  %v497_v6 = vsel %vm6699_vm2, %v492_v62, %v496_v33  ;;  %5939 = vmatprep.mubr.msk.bf16.mxu0 %vm675_vm3, %v5354_v52  ;;  %v5337_v59 = vrot.slane %v5321_v40, 9  ;;  %v2821_v21 = vrot.slane %v6775_v22, 5  ;;  %v7033_v40 = vld [vmem:[%s6680_s9 + $0x9c] sm:$0xf] }
  0x78   : > { %v505_v11 = vor.u32 %v504_v53, %v501_v49  ;;  %v5061_v54 = vcombine.low %v487_v61, %v497_v6  ;;  %v520_v26 = vrot.slane %v518_v4, 5  ;;  %v2824_v3 = vrot.slane %v6782_v30, 5  ;;  %v228_v52 = vld [vmem:[%s6680_s9 + $0xa4] sm:$0x1] }
  0x79   : > { %v515_v18 = vor.u32 %v514_v1, %v510_v63  ;;  %v2822_v31 = vsel %vm6921_vm6, %v5337_v59, %v2821_v21  ;;  %v2823_v32 = vrot.slane %v2821_v21, 4  ;;  %v523_v33 = vshrl.u32 %v7005_v50, 16  ;;  %v5323_v59 = vld [vmem:[%s6680_s9 + $0x48] sm:$0xe] }
  0x7a   : > { %v506_v29 = vrot.slane %v505_v11, 4  ;;  %5785 = vmatprep.mubr.msk.bf16.mxu1 %vm675_vm3, %v5061_v54  ;;  %v526_v22 = vshll.u32 %v7005_v50, 16  ;;  %v532_v35 = vshll.u32 %v7010_v58, 16  ;;  %v536_v36 = vshrl.u32 %v7010_v58, 16 }
  0x7b   : > { %v516_v34 = vrot.slane %v515_v18, 4  ;;  %v2825_v13 = vsel %vm6921_vm6, %v2823_v32, %v2824_v3  ;;  %v525_v56 = vrot.slane %v523_v33, 4  ;;  %v542_v39 = vshll.u32 %v227_v23, 16  ;;  %v7057_v33 = vld [vmem:[%s6680_s9 + $0xa8] sm:$0xf] }
  0x7c   : > { %v511_v30 = vsel %vm6699_vm2, %v506_v29, %v510_v63  ;;  %v5355_v37 = vcombine.low %v2822_v31, %v2825_v13  ;;  %v528_v45 = vrot.slane %v526_v22, 5  ;;  %v534_v57 = vrot.slane %v532_v35, 5 }
  0x7d   : > { %v521_v41 = vsel %vm6699_vm2, %v516_v34, %v520_v26  ;;  %v538_v44 = vrot.slane %v536_v36, 4  ;;  %v544_v47 = vrot.slane %v542_v39, 5  ;;  %v5338_v62 = vrot.slane %v5322_v27, 9 }
  0x7e   : > { %v5062_v43 = vcombine.low %v511_v30, %v521_v41  ;;  %5940 = vmatmul.mubr.msk.bf16.gmra.mrb[4].mxu0 %vm675_vm3, %v5355_v37  ;;  %v529_v49 = vor.u32 %v528_v45, %v525_v56  ;;  %v2828_v53 = vrot.slane %v6799_v9, 5  ;;  %v2831_v61 = vrot.slane %v6804_v20, 5  ;;  %v7062_v30 = vld [vmem:[%s6680_s9 + $0xac] sm:$0xf]  ;;  %v229_v37 = vld [vmem:[%s6680_s9 + $0xb0] sm:$0x1] }
  0x7f   : > { %v547_v63 = vshrl.u32 %v7033_v40, 16  ;;  %v539_v1 = vor.u32 %v538_v44, %v534_v57  ;;  %v550_v4 = vshll.u32 %v7033_v40, 16  ;;  %v556_v6 = vshll.u32 %v7038_v42, 16  ;;  %v5324_v45 = vld [vmem:[%s6680_s9 + $0x54] sm:$0xe] }
  0x80   : > { %5786 = vmatmul.mubr.msk.bf16.gmra.mrb[20].mxu1 %vm675_vm3, %v5062_v43  ;;  %v560_v11 = vshrl.u32 %v7038_v42, 16  ;;  %v530_v21 = vrot.slane %v529_v49, 4  ;;  %v2829_v23 = vsel %vm6921_vm6, %v5338_v62, %v2828_v53  ;;  %v2830_v9 = vrot.slane %v2828_v53, 4  ;;  %v7072_v62 = vld [vmem:[%s6680_s9 + $0xb4] sm:$0xf] }
  0x81   : > { %v549_v20 = vrot.slane %v547_v63, 4  ;;  %v540_v54 = vrot.slane %v539_v1, 4  ;;  %v552_v18 = vrot.slane %v550_v4, 5  ;;  %v558_v26 = vrot.slane %v556_v6, 5  ;;  %v7084_v4 = vld [vmem:[%s6680_s9 + $0xb8] sm:$0xf] }
  0x82   : > { %v562_v3 = vrot.slane %v560_v11, 4  ;;  %v535_v27 = vsel %vm6699_vm2, %v530_v21, %v534_v57  ;;  %v2832_v29 = vsel %vm6921_vm6, %v2830_v9, %v2831_v61  ;;  %v566_v31 = vshll.u32 %v228_v52, 16 }
  0x83   : > { %v5339_v32 = vrot.slane %v5323_v59, 9  ;;  %v545_v34 = vsel %vm6699_vm2, %v540_v54, %v544_v47  ;;  %v5356_v22 = vcombine.low %v2829_v23, %v2832_v29  ;;  %v553_v35 = vor.u32 %v552_v18, %v549_v20  ;;  %v230_v18 = vld [vmem:[%s6680_s9 + $0xbc] sm:$0x1] }
  0x84   : > { %v563_v36 = vor.u32 %v562_v3, %v558_v26  ;;  %v5063_v13 = vcombine.low %v535_v27, %v545_v34  ;;  %v568_v56 = vrot.slane %v566_v31, 5  ;;  %v2835_v39 = vrot.slane %v6822_v60, 5  ;;  %v5325_v31 = vld [vmem:[%s6680_s9 + $0x60] sm:$0xe] }
  0x85   : > { %v2838_v41 = vrot.slane %v6830_v10, 5  ;;  %5943 = vmatprep.mubr.msk.bf16.mxu0 %vm675_vm3, %v5356_v22  ;;  %v554_v57 = vrot.slane %v553_v35, 4  ;;  %v571_v44 = vshrl.u32 %v7057_v33, 16  ;;  %v574_v47 = vshll.u32 %v7057_v33, 16 }
  0x86   : > { %v564_v43 = vrot.slane %v563_v36, 4  ;;  %5789 = vmatprep.mubr.msk.bf16.mxu1 %vm675_vm3, %v5063_v13  ;;  %v2836_v60 = vsel %vm6921_vm6, %v5339_v32, %v2835_v39  ;;  %v2837_v52 = vrot.slane %v2835_v39, 4  ;;  %v580_v10 = vshll.u32 %v7062_v30, 16  ;;  %v5326_v36 = vld [vmem:[%s6680_s9 + $0x6c] sm:$0xe] }
  0x87   : > { %v584_v49 = vshrl.u32 %v7062_v30, 16  ;;  %v559_v53 = vsel %vm6699_vm2, %v554_v57, %v558_v26  ;;  %v573_v63 = vrot.slane %v571_v44, 4  ;;  %v576_v1 = vrot.slane %v574_v47, 5 }
  0x88   : > { %v569_v61 = vsel %vm6699_vm2, %v564_v43, %v568_v56  ;;  %v2839_v11 = vsel %vm6921_vm6, %v2837_v52, %v2838_v41  ;;  %v582_v59 = vrot.slane %v580_v10, 5  ;;  %v590_v20 = vshll.u32 %v229_v37, 16  ;;  %v5261_v52 = vld [vmem:[%s6680_s9 + $0x74] sm:$0x1] }
  0x89   : > { %v5064_v6 = vcombine.low %v559_v53, %v569_v61  ;;  %v586_v21 = vrot.slane %v584_v49, 4  ;;  %v5357_v23 = vcombine.low %v2836_v60, %v2839_v11  ;;  %v577_v9 = vor.u32 %v576_v1, %v573_v63  ;;  %v5260_v60 = vld [vmem:[%s6680_s9 + $0x70] sm:$0xf] }
  0x8a   : > { %v5340_v54 = vrot.slane %v5324_v45, 9  ;;  %v2842_v3 = vrot.slane %v6853_v51, 5  ;;  %v2845_v27 = vrot.slane %v6859_v0, 5  ;;  %v595_v29 = vshrl.u32 %v7072_v62, 16 }
  0x8b   : > { %5790 = vmatmul.mubr.msk.bf16.gmra.mrb[24].mxu1 %vm675_vm3, %v5064_v6  ;;  %v587_v26 = vor.u32 %v586_v21, %v582_v59  ;;  %5944 = vmatmul.mubr.msk.bf16.gmra.mrb[8].mxu0 %vm675_vm3, %v5357_v23  ;;  %v578_v32 = vrot.slane %v577_v9, 4  ;;  %v592_v34 = vrot.slane %v590_v20, 5  ;;  %v598_v22 = vshll.u32 %v7072_v62, 16 }
  0x8c   : > { %v604_v35 = vshll.u32 %v7084_v4, 16  ;;  %v2843_v51 = vsel %vm6921_vm6, %v5340_v54, %v2842_v3  ;;  %v2844_v56 = vrot.slane %v2842_v3, 4  ;;  %v597_v0 = vrot.slane %v595_v29, 4  ;;  %v5327_v54 = vld [vmem:[%s6680_s9 + $0x78] sm:$0xe] }
  0x8d   : > { %v588_v13 = vrot.slane %v587_v26, 4  ;;  %v583_v39 = vsel %vm6699_vm2, %v578_v32, %v582_v59  ;;  %v600_v41 = vrot.slane %v598_v22, 5  ;;  %v608_v45 = vshrl.u32 %v7084_v4, 16  ;;  %v6431_v29 = vld [vmem:[%s6680_s9] sm:$0xf] }
  0x8e   : > { %v606_v37 = vrot.slane %v604_v35, 5  ;;  %v2846_v43 = vsel %vm6921_vm6, %v2844_v56, %v2845_v27  ;;  %v614_v44 = vshll.u32 %v230_v18, 16  ;;  %v5341_v47 = vrot.slane %v5325_v31, 9  ;;  %v7124_v31 = vld [vmem:[%s6680_s9 + $0x4] sm:$0xf] }
  0x8f   : > { %v593_v57 = vsel %vm6699_vm2, %v588_v13, %v592_v34  ;;  %v5358_v49 = vcombine.low %v2843_v51, %v2846_v43  ;;  %v601_v53 = vor.u32 %v600_v41, %v597_v0  ;;  %v610_v61 = vrot.slane %v608_v45, 4  ;;  %v7128_v34 = vld [vmem:[%s6680_s9 + $0x7c] sm:$0xf]  ;;  %v7131_v22 = vld [vmem:[%s6680_s9 + $0x80] sm:$0x1] }
  0x90   : > { %v5065_v10 = vcombine.low %v583_v39, %v593_v57  ;;  %v616_v63 = vrot.slane %v614_v44, 5  ;;  %v2849_v1 = vrot.slane %v6883_v46, 5  ;;  %v2852_v6 = vrot.slane %v6890_v55, 5  ;;  %v5328_v35 = vld [vmem:[%s6680_s9 + $0x84] sm:$0xe] }
  0x91   : > { %v5342_v11 = vrot.slane %v5326_v36, 9  ;;  %5947 = vmatprep.mubr.msk.bf16.mxu0 %vm675_vm3, %v5358_v49  ;;  %v602_v59 = vrot.slane %v601_v53, 4  ;;  %v611_v21 = vor.u32 %v610_v61, %v606_v37  ;;  %v2856_v23 = vrot.slane %v5260_v60, 5  ;;  %v5266_v0 = vld [vmem:[%s6680_s9 + $0x88] sm:$0xf] }
  0x92   : > { %5793 = vmatprep.mubr.msk.bf16.mxu1 %vm675_vm3, %v5065_v10  ;;  %v2859_v9 = vrot.slane %v5261_v52, 5  ;;  %v2850_v20 = vsel %vm6921_vm6, %v5341_v47, %v2849_v1  ;;  %v2851_v46 = vrot.slane %v2849_v1, 4  ;;  %v5084_v32 = vcombine.low %v6431_v29, %v7124_v31  ;;  %v5267_v39 = vld [vmem:[%s6680_s9 + $0x8c] sm:$0x1]  ;;  %v5269_v45 = vld [vmem:[%s6680_s9 + $0x94] sm:$0xf] }
  0x93   : > { %v607_v55 = vsel %vm6699_vm2, %v602_v59, %v606_v37  ;;  %v612_v18 = vrot.slane %v611_v21, 4  ;;  %v2857_v26 = vsel %vm6921_vm6, %v5342_v11, %v2856_v23  ;;  %v2858_v3 = vrot.slane %v2856_v23, 4  ;;  %v5270_v52 = vld [vmem:[%s6680_s9 + $0x98] sm:$0x1]  ;;  %v5329_v10 = vld [vmem:[%s6680_s9 + $0x90] sm:$0xe] }
  0x94   : > { %v2853_v27 = vsel %vm6921_vm6, %v2851_v46, %v2852_v6  ;;  %v5343_v56 = vrot.slane %v5327_v54, 9  ;;  %v2863_v57 = vrot.slane %v7128_v34, 5  ;;  %v2866_v43 = vrot.slane %v7131_v22, 5  ;;  %v5273_v11 = vld [vmem:[%s6680_s9 + $0xa4] sm:$0x1] }
  0x95   : > { %v617_v36 = vsel %vm6699_vm2, %v612_v18, %v616_v63  ;;  %v5359_v13 = vcombine.low %v2850_v20, %v2853_v27  ;;  %v2860_v51 = vsel %vm6921_vm6, %v2858_v3, %v2859_v9  ;;  %v5344_v44 = vrot.slane %v5328_v35, 9  ;;  %v5272_v63 = vld [vmem:[%s6680_s9 + $0xa0] sm:$0xf]  ;;  %v5330_v59 = vld [vmem:[%s6680_s9 + $0x9c] sm:$0xe] }
  0x96   : > { %v5066_v41 = vcombine.low %v607_v55, %v617_v36  ;;  %v5360_v37 = vcombine.low %v2857_v26, %v2860_v51  ;;  %v2870_v47 = vrot.slane %v5266_v0, 5  ;;  %v2873_v60 = vrot.slane %v5267_v39, 5  ;;  %v6433_v21 = vld [vmem:[%s6680_s9 + $0xc] sm:$0xf]  ;;  %v7158_v23 = vld [vmem:[%s6680_s9 + $0x10] sm:$0xf] }
  0x97   : > { %5948 = vmatmul.mubr.msk.bf16.gmra.mrb[12].mxu0 %vm675_vm3, %v5359_v13  ;;  %v2864_v49 = vsel %vm6921_vm6, %v5343_v56, %v2863_v57  ;;  %v2865_v53 = vrot.slane %v2863_v57, 4  ;;  %v2877_v61 = vrot.slane %v5269_v45, 5  ;;  %v5085_v9 = vcombine.low %v6433_v21, %v7158_v23  ;;  %v6435_v27 = vld [vmem:[%s6680_s9 + $0x18] sm:$0xf]  ;;  %v7167_v29 = vld [vmem:[%s6680_s9 + $0x1c] sm:$0xf] }
  0x98   : > { %5794 = vmatmul.mubr.msk.bf16.gmra.mrb[28].mxu1 %vm675_vm3, %v5066_v41  ;;  %5951 = vmatprep.mubr.msk.bf16.mxu0 %vm675_vm3, %v5360_v37  ;;  %v2871_v1 = vsel %vm6921_vm6, %v5344_v44, %v2870_v47  ;;  %v2872_v6 = vrot.slane %v2870_v47, 4  ;;  %v5345_v46 = vrot.slane %v5329_v10, 9  ;;  %v2880_v54 = vrot.slane %v5270_v52, 5  ;;  %v5275_v51 = vld [vmem:[%s6680_s9 + $0xac] sm:$0xf]  ;;  %v7175_v39 = vld [vmem:[%s8474_s1 + $0x18] sm:$0xff]  }
  0x99   : > { %5799 = vmatprep.mubr.msk.bf16.mxu1 %vm675_vm3, %v5084_v32  ;;  %v2867_v20 = vsel %vm6921_vm6, %v2865_v53, %v2866_v43  ;;  %v2879_v26 = vrot.slane %v2877_v61, 4  ;;  %v2884_v3 = vrot.slane %v5272_v63, 5  ;;  %v5086_v32 = vcombine.low %v6435_v27, %v7167_v29  ;;  %v5278_v0 = vld [vmem:[%s6680_s9 + $0xb8] sm:$0xf]  ;;  %v6437_v57 = vld [vmem:[%s8474_s1 + $0x10] sm:$0xff]  }
  0x9a   : > { %v5361_v55 = vcombine.low %v2864_v49, %v2867_v20  ;;  %v2874_v18 = vsel %vm6921_vm6, %v2872_v6, %v2873_v60  ;;  %v5346_v36 = vrot.slane %v5330_v59, 9  ;;  %v2887_v13 = vrot.slane %v5273_v11, 5  ;;  %v5276_v47 = vld [vmem:[%s6680_s9 + $0xb0] sm:$0x1]  ;;  %v5331_v60 = vld [vmem:[%s6680_s9 + $0xa8] sm:$0xe] }
  0x9b   : > { %v5362_v35 = vcombine.low %v2871_v1, %v2874_v18  ;;  %v2886_v56 = vrot.slane %v2884_v3, 4  ;;  %v2878_v41 = vsel %vm6921_vm6, %v5345_v46, %v2877_v61  ;;  %v2881_v37 = vsel %vm6921_vm6, %v2879_v26, %v2880_v54  ;;  %v5279_v10 = vld [vmem:[%s6680_s9 + $0xbc] sm:$0x1]  ;;  %v5332_v49 = vld [vmem:[%s6680_s9 + $0xb4] sm:$0xe] }
  0x9c   : > { %v2891_v45 = vrot.slane %v5275_v51, 5  ;;  %v2885_v43 = vsel %vm6921_vm6, %v5346_v36, %v2884_v3  ;;  %v2898_v52 = vrot.slane %v5278_v0, 5  ;;  %v6438_v53 = vld [vmem:[%s6680_s9 + $0x24] sm:$0xf]  ;;  %v7199_v61 = vld [vmem:[%s6680_s9 + $0x28] sm:$0xf]  ;;  %v5363_v1 = vcombine.low %v2878_v41, %v2881_v37 }
  0x9d   : > { %v2888_v44 = vsel %vm6921_vm6, %v2886_v56, %v2887_v13  ;;  %v5087_v63 = vcombine.low %v6438_v53, %v7199_v61  ;;  %v5281_v6 = vld [vmem:[%s6680_s9 + $0xc4] sm:$0xf]  ;;  %v5347_v59 = vrot.slane %v5331_v60, 9  ;;  %v6440_v20 = vld [vmem:[%s6680_s9 + $0x30] sm:$0xf]  ;;  %v2901_v26 = vrot.slane %v5279_v10, 5 }
  0x9e   : > { %v5364_v11 = vcombine.low %v2885_v43, %v2888_v44  ;;  %v2893_v21 = vrot.slane %v2891_v45, 4  ;;  %v7205_v46 = vld [vmem:[%s6680_s9 + $0x34] sm:$0xf]  ;;  %v2900_v18 = vrot.slane %v2898_v52, 4  ;;  %v5282_v13 = vld [vmem:[%s6680_s9 + $0xc8] sm:$0x1] }
  0x9f   : > { %5952 = vmatmul.mubr.msk.bf16.gmra.mrb[16].mxu0 %vm675_vm3, %v5361_v55  ;;  %v5088_v54 = vcombine.low %v6440_v20, %v7205_v46  ;;  %v5348_v55 = vrot.slane %v5332_v49, 9  ;;  %v2892_v3 = vsel %vm6921_vm6, %v5347_v59, %v2891_v45  ;;  %v5333_v51 = vld [vmem:[%s6680_s9 + $0xc0] sm:$0xe]  ;;  %v6442_v56 = vld [vmem:[%s6680_s9 + $0x3c] sm:$0xf]  ;;  %v2908_v44 = vrot.slane %v5282_v13, 5 }
  0xa0   : > { %5800 = vmatmul.mubr.msk.bf16.vlgmr.msra.gmra.mrb[0].mxu1 %vm675_vm3, %v5085_v9  ;;  %5955 = vmatprep.mubr.msk.bf16.mxu0 %vm675_vm3, %v5362_v35  ;;  %v2894_v9 = vrot.slane %v5276_v47, 5  ;;  %v2902_v36 = vsel %vm6921_vm6, %v2900_v18, %v2901_v26  ;;  %v7224_v0 = vld [vmem:[%s6680_s9 + $0x40] sm:$0xf]  ;;  %v5090_v47 = vcombine.low %v6834_v15, %v6837_v25  ;;  %v2278_v10 = vshll.u32 %v7128_v34, 16  ;;  %v6389_v53 = vld [vmem:[%s6680_s9 + $0x18] sm:$0xff]  }
  0xa1   : > { %5832 = vmatpush3.bf16.msra.mxu1 %v6437_v57  ;;  %5803 = vmatprep.mubr.msk.bf16.mxu1 %vm675_vm3, %v5086_v32  ;;  %v2905_v32 = vrot.slane %v5281_v6, 5  ;;  %v2899_v35 = vsel %vm6921_vm6, %v5348_v55, %v2898_v52  ;;  %v5089_v41 = vcombine.low %v6442_v56, %v7224_v0  ;;  %v5349_v57 = vrot.slane %v5333_v51, 9 }
  0xa2   : > { %5865 = vmatprep.subr.bf16.mxu1 %v7175_v39  ;;  %v2895_v27 = vsel %vm6921_vm6, %v2893_v21, %v2894_v9  ;;  %v5366_v45 = vcombine.low %v2899_v35, %v2902_v36  ;;  %v2282_v15 = vshrl.u32 %v7128_v34, 16  ;;  %v5091_v49 = vcombine.low %v6863_v8, %v6869_v19  ;;  %v1180_v8 = vld [vmem:[%s6680_s9] sm:$0xe]  ;;  %v1181_v19 = vld [vmem:[%s6680_s9 + $0xc] sm:$0xe] }
  0xa3   : > { %v5365_v37 = vcombine.low %v2892_v3, %v2895_v27  ;;  %v2907_v43 = vrot.slane %v2905_v32, 4  ;;  %v2906_v60 = vsel %vm6921_vm6, %v5349_v57, %v2905_v32  ;;  %v1240_v21 = vrot.slane %v7158_v23, 5  ;;  %v1182_v34 = vld [vmem:[%s6680_s9 + $0x18] sm:$0xe]  ;;  %v6392_v27 = vld [vmem:[%s6680_s9 + $0x24] sm:$0xff]   ;;  %v6394_v32 = vld [vmem:[%s6680_s9 + $0x30] sm:$0xff]  }
  0xa4   : > { %v2284_v6 = vrot.slane %v2282_v15, 4  ;;  %v2288_v9 = vshll.u32 %v7131_v22, 16  ;;  %v1233_v23 = vrot.slane %v7124_v31, 5  ;;  %v1247_v20 = vrot.slane %v7167_v29, 5  ;;  %v1184_v36 = vld [vmem:[%s6680_s9 + $0x30] sm:$0xe] }
  0xa5   : > { %v2909_v52 = vsel %vm6921_vm6, %v2907_v43, %v2908_v44  ;;  %v5093_v18 = vcombine.low %v6915_v48, %v6928_v7  ;;  %v1254_v26 = vrot.slane %v7199_v61, 5  ;;  %v1261_v3 = vrot.slane %v7205_v46, 5  ;;  %v6446_v48 = vld [vmem:[%s6680_s9 + $0x20] sm:$0x1]  ;;  %v6447_v57 = vld [vmem:[%s6680_s9 + $0x2c] sm:$0x1] }
  0xa6   : > { %v5367_v25 = vcombine.low %v2906_v60, %v2909_v52  ;;  %v5094_v22 = vcombine.low %v6947_v38, %v6954_v14  ;;  %v5095_v31 = vcombine.low %v6973_v12, %v6981_v24  ;;  %v5117_v29 = vrot.slane %v1180_v8, 9  ;;  %v7276_v46 = vld [vmem:[%s8474_s1 + $0x40] sm:$0xff]  }
  0xa7   : > { %5956 = vmatmul.mubr.msk.bf16.gmra.mrb[20].mxu0 %vm675_vm3, %v5363_v1  ;;  %v7244_v1 = vrot.slane %v2278_v10, 5  ;;  %v5118_v35 = vrot.slane %v1181_v19, 9  ;;  %v1242_v13 = vrot.slane %v1240_v21, 4  ;;  %v5119_v51 = vrot.slane %v1182_v34, 9  ;;  %v6448_v10 = vld [vmem:[%s6680_s9 + $0x38] sm:$0x1] }
  0xa8   : > { %5804 = vmatmul.mubr.msk.bf16.gmra.mrb[4].mxu1 %vm675_vm3, %v5087_v63  ;;  %5959 = vmatprep.mubr.msk.bf16.mxu0 %vm675_vm3, %v5364_v11  ;;  %v5092_v63 = vcombine.low %v6894_v5, %v6900_v17  ;;  %v6444_v11 = vld [vmem:[%s6680_s9 + $0x8] sm:$0x1]  ;;  %v6445_v5 = vld [vmem:[%s6680_s9 + $0x14] sm:$0x1]  ;;  %v1250_v7 = vrot.slane %v6446_v48, 5  ;;  %v5096_v38 = vcombine.low %v7005_v50, %v7010_v58  ;;  %v5097_v14 = vcombine.low %v7033_v40, %v7038_v42 }
  0xa9   : > { %5807 = vmatprep.mubr.msk.bf16.mxu1 %vm675_vm3, %v5088_v54  ;;  %8495 = vst [vmem:[#allocation8_spill] sm:$0xff] %v7244_v1  ;;  %v1236_v59 = vrot.slane %v6444_v11, 5  ;;  %v1243_v17 = vrot.slane %v6445_v5, 5  ;;  %v1183_v54 = vld [vmem:[%s6680_s9 + $0x24] sm:$0xe]  ;;  %v2285_v55 = vor.u32 %v2284_v6, %v7244_v1  ;;  %v1235_v56 = vrot.slane %v1233_v23, 4 }
  0xaa   : > { %v5120_v61 = vrot.slane %v1183_v54, 9  ;;  %v1257_v43 = vrot.slane %v6447_v57, 5  ;;  %v5121_v44 = vrot.slane %v1184_v36, 9  ;;  %v5098_v60 = vcombine.low %v7057_v33, %v7062_v30  ;;  %v1186_v6 = vld [vmem:[%s6680_s9 + $0x48] sm:$0xe]  ;;  %v6400_v58 = vld [vmem:[%s6680_s9 + $0x54] sm:$0xff]  }
  0xab   : > { %v7289_v52 = vsel %vm6921_vm6, %v5117_v29, %v1233_v23  ;;  %v1264_v15 = vrot.slane %v6448_v10, 5  ;;  %v7310_v11 = vrot.slane %v2285_v55, 4  ;;  %v5452_v34 = vld [vmem:[%s6680_s9 + $0x18] sm:$0xf]  ;;  %v6398_v5 = vld [vmem:[%s6680_s9 + $0x48] sm:$0xff]  }
  0xac   : > { %v7325_v19 = vsel %vm6921_vm6, %v5120_v61, %v1254_v26  ;;  %v6449_v23 = vld [vmem:[%s6680_s9 + $0x44] sm:$0x1]  ;;  %v1187_v55 = vld [vmem:[%s6680_s9 + $0x54] sm:$0xe]  ;;  %v3623_v48 = vshll.u32 %v5452_v34, 16 }
  0xad   : > { %8497 = vst [vmem:[#allocation10_spill] sm:$0xff] %v7310_v11  ;;  %v5124_v10 = vrot.slane %v1187_v55, 9  ;;  %v5458_v55 = vld [vmem:[%s6680_s9 + $0x30] sm:$0xf]  ;;  %v5459_v50 = vld [vmem:[%s6680_s9 + $0x34] sm:$0xf] }
  0xae   : > { %v3625_v24 = vrot.slane %v3623_v48, 5 }
  0xaf   : > { %5960 = vmatmul.mubr.msk.bf16.gmra.mrb[24].mxu0 %vm675_vm3, %v5365_v37  ;;  %v1185_v37 = vld [vmem:[%s6680_s9 + $0x3c] sm:$0xe] }
  0xb0   : > { %5808 = vmatmul.mubr.msk.bf16.gmra.mrb[8].mxu1 %vm675_vm3, %v5089_v41  ;;  %5963 = vmatprep.mubr.msk.bf16.mxu0 %vm675_vm3, %v5366_v45  ;;  %v1249_v41 = vrot.slane %v1247_v20, 4  ;;  %v1256_v45 = vrot.slane %v1254_v26, 4 }
  0xb1   : > { %5811 = vmatprep.mubr.msk.bf16.mxu1 %vm675_vm3, %v5090_v47  ;;  %v1263_v47 = vrot.slane %v1261_v3, 4 }
  0xb2   : > { %v7321_v8 = vsel %vm6921_vm6, %v1249_v41, %v1250_v7  ;;  %v7340_v26 = vsel %vm6921_vm6, %v1256_v45, %v1257_v43  ;;  %v6451_v45 = vld [vmem:[%s6680_s9 + $0x50] sm:$0x1]  ;;  %v3677_v41 = vshll.u32 %v5459_v50, 16 }
  0xb3   : > { %v1278_v57 = vrot.slane %v6451_v45, 5  ;;  %v8505_v11 = vcombine.low %v7325_v19, %v7340_v26 }
  0xb7   : > { %5964 = vmatmul.mubr.msk.bf16.gmra.mrb[28].mxu0 %vm675_vm3, %v5367_v25  ;;  %v1268_v25 = vrot.slane %v7224_v0, 5  ;;  %v7307_v0 = vsel %vm6921_vm6, %v5119_v51, %v1247_v20  ;;  %v1271_v20 = vrot.slane %v6449_v23, 5  ;;  %v3620_v51 = vshrl.u32 %v5452_v34, 16  ;;  %v7384_v34 = vld [vmem:[%s6680_s9 + $0x5c] sm:$0x1] }
  0xb8   : > { %5812 = vmatmul.mubr.msk.bf16.gmra.mrb[12].mxu1 %vm675_vm3, %v5091_v49  ;;  %5969 = vmatprep.mubr.msk.bf16.mxu0 %vm675_vm3, %v6389_v53  ;;  %v7293_v49 = vrot.slane %v2288_v9, 5  ;;  %v7299_v53 = vsel %vm6921_vm6, %v5118_v35, %v1240_v21  ;;  %v7317_v21 = vsel %vm6921_vm6, %v1235_v56, %v1236_v59  ;;  %v5122_v9 = vrot.slane %v1185_v37, 9  ;;  %v6450_v59 = vld [vmem:[%s6680_s9 + $0x4c] sm:$0xf] }
  0xb9   : > { %5815 = vmatprep.mubr.msk.bf16.mxu1 %vm675_vm3, %v5092_v63  ;;  %v7303_v63 = vsel %vm6921_vm6, %v1242_v13, %v1243_v17  ;;  %v7331_v17 = vsel %vm6921_vm6, %v5121_v44, %v1261_v3  ;;  %v1275_v54 = vrot.slane %v6450_v59, 5  ;;  %v1270_v3 = vrot.slane %v1268_v25, 4  ;;  %v7355_v13 = vld [vmem:[%s6680_s9 + $0x60] sm:$0xe] }
  0xba   : > { %8496 = vst [vmem:[#allocation9_spill] sm:$0xff] %v7293_v49  ;;  %v7365_v43 = vsel %vm6921_vm6, %v5122_v9, %v1268_v25  ;;  %v6452_v25 = vld [vmem:[%s6680_s9 + $0x58] sm:$0xf]  ;;  %v1285_v9 = vrot.slane %v7384_v34, 5  ;;  %v5125_v23 = vrot.slane %v7355_v13, 9  ;;  %v3622_v12 = vrot.slane %v3620_v51, 4 }
  0xbb   : > { %v1277_v37 = vrot.slane %v1275_v54, 4  ;;  %v7369_v44 = vsel %vm6921_vm6, %v1270_v3, %v1271_v20  ;;  %v6454_v20 = vld [vmem:[%s6680_s9 + $0x64] sm:$0xf]  ;;  %v6455_v34 = vld [vmem:[%s6680_s9 + $0x70] sm:$0xf]  ;;  %v3681_v56 = vshrl.u32 %v5459_v50, 16 }
  0xbc   : > { %v1289_v59 = vrot.slane %v6454_v20, 5  ;;  %v1296_v20 = vrot.slane %v6455_v34, 5  ;;  %v5457_v34 = vld [vmem:[%s6680_s9 + $0x2c] sm:$0x1] }
  0xbd   : > { %v7401_v3 = vsel %vm6921_vm6, %v1277_v37, %v1278_v57  ;;  %v3668_v37 = vshrl.u32 %v5458_v55, 16  ;;  %v3671_v57 = vshll.u32 %v5458_v55, 16 }
  0xbe   : > { %v1291_v36 = vrot.slane %v1289_v59, 4 }
  0xbf   : > { %5970 = vmatmul.mubr.msk.bf16.vlgmr.msra.gmra.mrb[0].mxu0 %vm675_vm3, %v6392_v27  ;;  %v7344_v27 = vsel %vm6921_vm6, %v1263_v47, %v1264_v15  ;;  %v5454_v15 = vld [vmem:[%s6680_s9 + $0x20] sm:$0x1]  ;;  %v3673_v50 = vrot.slane %v3671_v57, 5  ;;  %v6406_v57 = vld [vmem:[%s6680_s9 + $0x78] sm:$0xff]  }
  0xc0   : > { %5816 = vmatmul.mubr.msk.bf16.gmra.mrb[16].mxu1 %vm675_vm3, %v5093_v18  ;;  %6002 = vmatpush3.bf16.msra.mxu0 %v6986_v16  ;;  %v6396_v16 = vld [vmem:[%s6680_s9 + $0x3c] sm:$0xff]   ;;  %v3639_v48 = vshll.u32 %v5454_v15, 16 }
  0xc1   : > { %5819 = vmatprep.mubr.msk.bf16.mxu1 %vm675_vm3, %v5094_v22  ;;  %5973 = vmatprep.mubr.msk.bf16.mxu0 %vm675_vm3, %v6394_v32  ;;  %v5453_v18 = vld [vmem:[%s6680_s9 + $0x1c] sm:$0xf]  ;;  %v5123_v22 = vrot.slane %v1186_v6, 9  ;;  %v5455_v6 = vld [vmem:[%s6680_s9 + $0x24] sm:$0xf] }
  0xc2   : > { %6035 = vmatprep.subr.bf16.mxu0 %v7276_v46  ;;  %v3629_v7 = vshll.u32 %v5453_v18, 16  ;;  %v3633_v61 = vshrl.u32 %v5453_v18, 16  ;;  %v3647_v13 = vshll.u32 %v5455_v6, 16  ;;  %v3626_v18 = vor.u32 %v3625_v24, %v3622_v12 }
  0xc3   : > { %v7373_v47 = vsel %vm6921_vm6, %v5123_v22, %v1275_v54  ;;  %v5456_v54 = vld [vmem:[%s6680_s9 + $0x28] sm:$0xf]  ;;  %v3644_v22 = vshrl.u32 %v5455_v6, 16  ;;  %v1298_v24 = vrot.slane %v1296_v20, 4 }
  0xc4   : > { %v3649_v29 = vrot.slane %v3647_v13, 5  ;;  %v3670_v13 = vrot.slane %v3668_v37, 4  ;;  %v3627_v40 = vrot.slane %v3626_v18, 4 }
  0xc5   : > { %v3646_v15 = vrot.slane %v3644_v22, 4  ;;  %v5460_v22 = vld [vmem:[%s6680_s9 + $0x38] sm:$0x1] }
  0xc6   : > { %v3687_v37 = vshll.u32 %v5460_v22, 16 }
  0xc7   : > { %5974 = vmatmul.mubr.msk.bf16.gmra.mrb[4].mxu0 %vm675_vm3, %v6396_v16  ;;  %v1282_v16 = vrot.slane %v6452_v25, 5  ;;  %v1189_v25 = vld [vmem:[%s6680_s9 + $0x6c] sm:$0xe] }
  0xc8   : > { %5820 = vmatmul.mubr.msk.bf16.gmra.mrb[20].mxu1 %vm675_vm3, %v5095_v31  ;;  %5977 = vmatprep.mubr.msk.bf16.mxu0 %vm675_vm3, %v6398_v5  ;;  %v7394_v31 = vrot.slane %v3629_v7, 5  ;;  %v3635_v5 = vrot.slane %v3633_v61, 4  ;;  %v3653_v7 = vshll.u32 %v5456_v54, 16  ;;  %v3657_v61 = vshrl.u32 %v5456_v54, 16 }
  0xc9   : > { %5823 = vmatprep.mubr.msk.bf16.mxu1 %vm675_vm3, %v5096_v38  ;;  %v6402_v38 = vld [vmem:[%s6680_s9 + $0x60] sm:$0xff]   ;;  %v7408_v51 = vsel %vm6921_vm6, %v5124_v10, %v1282_v16  ;;  %v1284_v45 = vrot.slane %v1282_v16, 4  ;;  %v6456_v10 = vld [vmem:[%s6680_s9 + $0x68] sm:$0x1]  ;;  %v7415_v16 = vrot.slane %v3639_v48, 5  ;;  %v5126_v54 = vrot.slane %v1189_v25, 9 }
  0xca   : > { %v3636_v6 = vor.u32 %v3635_v5, %v7394_v31  ;;  %v1292_v35 = vrot.slane %v6456_v10, 5  ;;  %v7418_v32 = vrot.slane %v3653_v7, 5  ;;  %v3659_v12 = vrot.slane %v3657_v61, 4  ;;  %v6457_v5 = vld [vmem:[%s6680_s9 + $0x74] sm:$0x1]  ;;  %v6404_v25 = vld [vmem:[%s6680_s9 + $0x6c] sm:$0xff]  }
  0xcb   : > { %v1299_v55 = vrot.slane %v6457_v5, 5  ;;  %v7437_v48 = vsel %vm6921_vm6, %v5125_v23, %v1289_v59  ;;  %v3650_v7 = vor.u32 %v3649_v29, %v3646_v15  ;;  %v3663_v61 = vshll.u32 %v5457_v34, 16  ;;  %v6459_v10 = vld [vmem:[%s6680_s9 + $0x88] sm:$0xf] }
  0xcc   : > { %v3637_v42 = vrot.slane %v3636_v6, 4  ;;  %v7442_v33 = vsel %vm6921_vm6, %v1284_v45, %v1285_v9  ;;  %v7450_v23 = vsel %vm6921_vm6, %v1291_v36, %v1292_v35  ;;  %v7454_v29 = vsel %vm6921_vm6, %v5126_v54, %v1296_v20  ;;  %v1191_v45 = vld [vmem:[%s6680_s9 + $0x84] sm:$0xe]  ;;  %v5461_v20 = vld [vmem:[%s6680_s9 + $0x3c] sm:$0xf] }
  0xcd   : > { %v7458_v9 = vsel %vm6921_vm6, %v1298_v24, %v1299_v55  ;;  %v3674_v59 = vor.u32 %v3673_v50, %v3670_v13  ;;  %v3632_v6 = vsel %vm6699_vm2, %v3627_v40, %v7394_v31  ;;  %v1310_v15 = vrot.slane %v6459_v10, 5  ;;  %v6460_v24 = vld [vmem:[%s6680_s9 + $0x80] sm:$0x1] }
  0xce   : > { %v3642_v35 = vsel %vm6699_vm2, %v3637_v42, %v7415_v16  ;;  %v3651_v54 = vrot.slane %v3650_v7, 4  ;;  %v3665_v34 = vrot.slane %v3663_v61, 5  ;;  %v1306_v5 = vrot.slane %v6460_v24, 5  ;;  %v7472_v55 = vld [vmem:[%s6680_s9 + $0x40] sm:$0xf] }
  0xcf   : > { %5978 = vmatmul.mubr.msk.bf16.gmra.mrb[8].mxu0 %vm675_vm3, %v6400_v58  ;;  %v3683_v58 = vrot.slane %v3681_v56, 4  ;;  %v1190_v56 = vld [vmem:[%s6680_s9 + $0x78] sm:$0xe]  ;;  %8498 = vst [vmem:[#allocation11_spill] sm:$0xff] %v7472_v55  ;;  %v3689_v13 = vrot.slane %v3687_v37, 5  ;;  %v5128_v16 = vrot.slane %v1191_v45, 9  ;;  %v8499_v50 = vcombine.low %v7072_v62, %v7084_v4 }
  0xd0   : > { %5824 = vmatmul.mubr.msk.bf16.gmra.mrb[24].mxu1 %vm675_vm3, %v5097_v14  ;;  %5981 = vmatprep.mubr.msk.bf16.mxu0 %vm675_vm3, %v6402_v38  ;;  %v7431_v14 = vrot.slane %v3677_v41, 5  ;;  %v6458_v41 = vld [vmem:[%s6680_s9 + $0x7c] sm:$0xf]  ;;  %v3675_v40 = vrot.slane %v3674_v59, 4  ;;  %v6461_v42 = vld [vmem:[%s6680_s9 + $0x8c] sm:$0x1]  ;;  %v3656_v45 = vsel %vm6699_vm2, %v3651_v54, %v7418_v32 }
  0xd1   : > { %5827 = vmatprep.mubr.msk.bf16.mxu1 %vm675_vm3, %v5098_v60  ;;  %v3660_v60 = vor.u32 %v3659_v12, %v7418_v32  ;;  %v1303_v18 = vrot.slane %v6458_v41, 5  ;;  %v5127_v12 = vrot.slane %v1190_v56, 9  ;;  %v3692_v7 = vshrl.u32 %v5461_v20, 16  ;;  %v6407_v41 = vld [vmem:[%s6680_s9 + $0x84] sm:$0xff]   ;;  %v6408_v59 = vld [vmem:[%s6680_s9 + $0x90] sm:$0xff]  }
  0xd2   : > { %v3684_v36 = vor.u32 %v3683_v58, %v7431_v14  ;;  %v1313_v58 = vrot.slane %v6461_v42, 5  ;;  %v3695_v61 = vshll.u32 %v5461_v20, 16  ;;  %v1312_v56 = vrot.slane %v1310_v15, 4  ;;  %v7512_v20 = vld [vmem:[%s6680_s9 + $0x4c] sm:$0xf] }
  0xd3   : > { %v3661_v31 = vrot.slane %v3660_v60, 4  ;;  %v1305_v22 = vrot.slane %v1303_v18, 4  ;;  %v3701_v62 = vshll.u32 %v7472_v55, 16  ;;  %v3705_v4 = vshrl.u32 %v7472_v55, 16  ;;  %v7590_v37 = vld [vmem:[%s6680_s9 + $0x5c] sm:$0x1] }
  0xd4   : > { %v3685_v60 = vrot.slane %v3684_v36, 4  ;;  %v7504_v10 = vsel %vm6921_vm6, %v5127_v12, %v1303_v18  ;;  %v3680_v24 = vsel %vm6699_vm2, %v3675_v40, %v7431_v14  ;;  %v7519_v32 = vsel %vm6921_vm6, %v5128_v16, %v1310_v15  ;;  %v7523_v18 = vld [vmem:[%s6680_s9 + $0x58] sm:$0xf]  ;;  %v7537_v40 = vld [vmem:[%s6680_s9 + $0x90] sm:$0xe] }
  0xd5   : > { %v3666_v36 = vsel %vm6699_vm2, %v3661_v31, %v3665_v34  ;;  %v3694_v54 = vrot.slane %v3692_v7, 4  ;;  %v3697_v34 = vrot.slane %v3695_v61, 5  ;;  %v5467_v31 = vld [vmem:[%s6680_s9 + $0x54] sm:$0xf]  ;;  %v3707_v14 = vrot.slane %v3705_v4, 4 }
  0xd6   : > { %v3690_v12 = vsel %vm6699_vm2, %v3685_v60, %v3689_v13  ;;  %v3725_v42 = vshll.u32 %v7512_v20, 16  ;;  %v3729_v7 = vshrl.u32 %v7512_v20, 16  ;;  %v3740_v13 = vshrl.u32 %v5467_v31, 16  ;;  %v1193_v38 = vld [vmem:[%s6680_s9 + $0x9c] sm:$0xe] }
  0xd7   : > { %5982 = vmatmul.mubr.msk.bf16.gmra.mrb[12].mxu0 %vm675_vm3, %v6404_v25  ;;  %v8500_v25 = vcombine.low %v7289_v52, %v7317_v21  ;;  %v7492_v52 = vcombine.low %v3632_v6, %v3642_v35  ;;  %v7508_v6 = vsel %vm6921_vm6, %v1305_v22, %v1306_v5  ;;  %v5464_v35 = vld [vmem:[%s6680_s9 + $0x48] sm:$0xf]  ;;  %v7529_v5 = vsel %vm6921_vm6, %v1312_v56, %v1313_v58  ;;  %v7532_v22 = vld [vmem:[%s6680_s9 + $0x44] sm:$0x1] }
  0xd8   : > { %5828 = vmatmul.mubr.msk.bf16.gmra.mrb[28].mxu1 %vm675_vm3, %v8499_v50  ;;  %5985 = vmatprep.mubr.msk.bf16.mxu0 %vm675_vm3, %v6406_v57  ;;  %8501 = vst [vmem:[#allocation12_spill] sm:$0xff] %v7532_v22  ;;  %v7534_v50 = vrot.slane %v3701_v62, 5  ;;  %v3716_v15 = vshrl.u32 %v5464_v35, 16  ;;  %v3719_v16 = vshll.u32 %v5464_v35, 16  ;;  %v3743_v61 = vshll.u32 %v5467_v31, 16 }
  0xd9   : > { %5833 = vmatprep.mubr.msk.bf16.mxu1 %vm675_vm3, %v8500_v25  ;;  %v3749_v58 = vshll.u32 %v7523_v18, 16  ;;  %v3753_v25 = vshrl.u32 %v7523_v18, 16  ;;  %v8502_v60 = vcombine.low %v7299_v53, %v7303_v63  ;;  %v7549_v56 = vcombine.low %v3656_v45, %v3666_v36  ;;  %v7566_v35 = vld [vmem:[%s6680_s9 + $0x50] sm:$0x1]  ;;  %v6464_v62 = vld [vmem:[%s6680_s9 + $0x98] sm:$0x1] }
  0xda   : > { %v7553_v4 = vcombine.low %v3680_v24, %v3690_v12  ;;  %v8503_v53 = vcombine.low %v7307_v0, %v7321_v8  ;;  %v3708_v45 = vor.u32 %v3707_v14, %v7534_v50  ;;  %v5470_v24 = vld [vmem:[%s6680_s9 + $0x60] sm:$0xf]  ;;  %v3718_v31 = vrot.slane %v3716_v15, 4  ;;  %v7572_v8 = vld [vmem:[%s6680_s9 + $0x64] sm:$0xf]  ;;  %v6410_v14 = vld [vmem:[%s6680_s9 + $0xa8] sm:$0xff]  }
  0xdb   : > { %v7569_v12 = vrot.slane %v3725_v42, 5  ;;  %v3731_v0 = vrot.slane %v3729_v7, 4  ;;  %v3745_v15 = vrot.slane %v3743_v61, 5  ;;  %v6463_v7 = vld [vmem:[%s6680_s9 + $0x94] sm:$0xf]  ;;  %v1320_v21 = vrot.slane %v6464_v62, 5 }
  0xdc   : > { %v1317_v63 = vrot.slane %v6463_v7, 5  ;;  %v3735_v57 = vshll.u32 %v7566_v35, 16  ;;  %v3764_v36 = vshrl.u32 %v5470_v24, 16  ;;  %v3777_v61 = vshrl.u32 %v7572_v8, 16  ;;  %v6465_v7 = vld [vmem:[%s6680_s9 + $0xa0] sm:$0xf] }
  0xdd   : > { %v1324_v55 = vrot.slane %v6465_v7, 5  ;;  %v3709_v62 = vrot.slane %v3708_v45, 4  ;;  %v1331_v45 = vrot.slane %v7062_v30, 5  ;;  %v7617_v7 = vld [vmem:[%s6680_s9 + $0x68] sm:$0x1]  ;;  %v6411_v30 = vld [vmem:[%s6680_s9 + $0xb4] sm:$0xff]  }
  0xde   : > { %v3766_v19 = vrot.slane %v3764_v36, 4  ;;  %8507 = vst [vmem:[#allocation14_spill] sm:$0xff] %v7617_v7  ;;  %v6412_v36 = vld [vmem:[%s6680_s9 + $0xc0] sm:$0xff]  }
  0xdf   : > { %5986 = vmatmul.mubr.msk.bf16.gmra.mrb[16].mxu0 %vm675_vm3, %v6407_v41  ;;  %v3711_v41 = vshll.u32 %v7532_v22, 16  ;;  %v3767_v22 = vshll.u32 %v5470_v24, 16  ;;  %v3759_v24 = vshll.u32 %v7590_v37, 16 }
  0xe0   : > { %5834 = vmatmul.mubr.msk.bf16.vlgmr.msra.gmra.mrb[0].mxu1 %vm675_vm3, %v8502_v60  ;;  %5989 = vmatprep.mubr.msk.bf16.mxu0 %vm675_vm3, %v6408_v59  ;;  %v3698_v59 = vor.u32 %v3697_v34, %v3694_v54  ;;  %v7577_v54 = vld [vmem:[%s8474_s1 + $0x20] sm:$0xff]   ;;  %v3742_v60 = vrot.slane %v3740_v13, 4  ;;  %v3773_v13 = vshll.u32 %v7572_v8, 16 }
  0xe1   : > { %5866 = vmatpush3.bf16.msra.mxu1 %v7175_v39  ;;  %5837 = vmatprep.mubr.msk.bf16.mxu1 %vm675_vm3, %v8503_v53  ;;  %v3721_v39 = vrot.slane %v3719_v16, 5  ;;  %8504 = vst [vmem:[#allocation13_spill] sm:$0xff] %v7577_v54  ;;  %v6409_v34 = vld [vmem:[%s6680_s9 + $0x9c] sm:$0xff]   ;;  %v7582_v53 = vrot.slane %v3749_v58, 5  ;;  %v3755_v16 = vrot.slane %v3753_v25, 4  ;;  %v7584_v42 = vrot.slane %v3711_v41, 5 }
  0xe2   : > { %6069 = vmatprep.subr.bf16.mxu1 %v7577_v54  ;;  %v7595_v58 = vrot.slane %v3698_v59, 4  ;;  %v3732_v41 = vor.u32 %v3731_v0, %v7569_v12  ;;  %v3746_v54 = vor.u32 %v3745_v15, %v3742_v60  ;;  %v1319_v59 = vrot.slane %v1317_v63, 4  ;;  %v1194_v0 = vld [vmem:[%s6680_s9 + $0xa8] sm:$0xe] }
  0xe3   : > { %v3722_v25 = vor.u32 %v3721_v39, %v3718_v31  ;;  %v3756_v1 = vor.u32 %v3755_v16, %v7582_v53  ;;  %v3737_v31 = vrot.slane %v3735_v57, 5  ;;  %v5130_v39 = vrot.slane %v1193_v38, 9  ;;  %v6466_v57 = vld [vmem:[%s6680_s9 + $0xa4] sm:$0x1] }
  0xe4   : > { %v3769_v26 = vrot.slane %v3767_v22, 5  ;;  %v7613_v60 = vrot.slane %v3773_v13, 5  ;;  %v3733_v15 = vrot.slane %v3732_v41, 4  ;;  %v1326_v16 = vrot.slane %v1324_v55, 4  ;;  %v6467_v41 = vld [vmem:[%s6680_s9 + $0xb0] sm:$0x1] }
  0xe5   : > { %v1327_v38 = vrot.slane %v6466_v57, 5  ;;  %v5131_v49 = vrot.slane %v1194_v0, 9  ;;  %v3704_v22 = vsel %vm6699_vm2, %v7595_v58, %v7534_v50  ;;  %v8508_v13 = vrot.slane %v7537_v40, 9  ;;  %v1195_v50 = vld [vmem:[%s6680_s9 + $0xb4] sm:$0xe] }
  0xe6   : > { %v1334_v57 = vrot.slane %v6467_v41, 5  ;;  %v3783_v0 = vshll.u32 %v7617_v7, 16  ;;  %v5473_v58 = vld [vmem:[%s6680_s9 + $0x6c] sm:$0xf]  ;;  %v7641_v40 = vsel %vm6921_vm6, %v1319_v59, %v1320_v21  ;;  %v8510_v59 = vcombine.low %v7365_v43, %v7369_v44 }
  0xe7   : > { %5990 = vmatmul.mubr.msk.bf16.gmra.mrb[20].mxu0 %vm675_vm3, %v6409_v34  ;;  %v8506_v34 = vcombine.low %v7331_v17, %v7344_v27  ;;  %v3747_v17 = vrot.slane %v3746_v54, 4  ;;  %v3757_v27 = vrot.slane %v3756_v1, 4  ;;  %v3714_v1 = vsel %vm6699_vm2, %v3709_v62, %v7584_v42 }
  0xe8   : > { %5838 = vmatmul.mubr.msk.bf16.gmra.mrb[4].mxu1 %vm675_vm3, %v8505_v11  ;;  %5993 = vmatprep.mubr.msk.bf16.mxu0 %vm675_vm3, %v6410_v14  ;;  %v3779_v11 = vrot.slane %v3777_v61, 4  ;;  %v3723_v14 = vrot.slane %v3722_v25, 4  ;;  %v7629_v61 = vsel %vm6921_vm6, %v8508_v13, %v1317_v63  ;;  %v1333_v25 = vrot.slane %v1331_v45, 4 }
  0xe9   : > { %5841 = vmatprep.mubr.msk.bf16.mxu1 %vm675_vm3, %v8506_v34  ;;  %v3761_v34 = vrot.slane %v3759_v24, 5  ;;  %v3770_v54 = vor.u32 %v3769_v26, %v3766_v19  ;;  %v7648_v42 = vsel %vm6921_vm6, %v5130_v39, %v1324_v55  ;;  %v7652_v62 = vsel %vm6921_vm6, %v1326_v16, %v1327_v38  ;;  %v6468_v39 = vld [vmem:[%s6680_s9 + $0xb8] sm:$0xf] }
  0xea   : > { %v3780_v24 = vor.u32 %v3779_v11, %v7613_v60  ;;  %v3728_v63 = vsel %vm6699_vm2, %v3723_v14, %v7569_v12  ;;  %v3738_v19 = vsel %vm6699_vm2, %v3733_v15, %v3737_v31  ;;  %v3752_v21 = vsel %vm6699_vm2, %v3747_v17, %v7582_v53  ;;  %v7701_v17 = vld [vmem:[%s6680_s9 + $0x7c] sm:$0xf] }
  0xeb   : > { %v3762_v12 = vsel %vm6699_vm2, %v3757_v27, %v3761_v34  ;;  %v7664_v55 = vsel %vm6921_vm6, %v5131_v49, %v1331_v45  ;;  %v7673_v31 = vsel %vm6921_vm6, %v1333_v25, %v1334_v57  ;;  %v5132_v53 = vrot.slane %v1195_v50, 9  ;;  %v7677_v49 = vld [vmem:[%s6680_s9 + $0x70] sm:$0xf]  ;;  %8514 = vst [vmem:[#allocation18_spill] sm:$0xff] %v7701_v17  ;;  %v5479_v27 = vld [vmem:[%s6680_s9 + $0x84] sm:$0xf] }
  0xec   : > { %8509 = vst [vmem:[#allocation15_spill] sm:$0xff] %v7664_v55  ;;  %8511 = vst [vmem:[#allocation16_spill] sm:$0xff] %v7673_v31  ;;  %v1338_v26 = vrot.slane %v6468_v39, 5  ;;  %v3788_v45 = vshrl.u32 %v5473_v58, 16  ;;  %v8513_v43 = vcombine.low %v7373_v47, %v7401_v3  ;;  %v7683_v44 = vcombine.low %v3704_v22, %v3714_v1  ;;  %v5476_v3 = vld [vmem:[%s6680_s9 + $0x78] sm:$0xf] }
  0xed   : > { %8512 = vst [vmem:[#allocation17_spill] sm:$0xff] %v7677_v49  ;;  %v7685_v11 = vrot.slane %v3770_v54, 4  ;;  %v7687_v14 = vrot.slane %v3780_v24, 4  ;;  %v7689_v15 = vrot.slane %v3783_v0, 5  ;;  %v7693_v38 = vcombine.low %v3728_v63, %v3738_v19  ;;  %v6413_v34 = vld [vmem:[%s6680_s9 + $0xcc] sm:$0xff]  }
  0xee   : > { %v7697_v47 = vcombine.low %v3752_v21, %v3762_v12  ;;  %v7708_v22 = vld [vmem:[%s6680_s9 + $0xbc] sm:$0x1]  ;;  %v3791_v25 = vshll.u32 %v5473_v58, 16  ;;  %v3797_v41 = vshll.u32 %v7677_v49, 16  ;;  %v7713_v57 = vld [vmem:[%s6680_s9 + $0x88] sm:$0xf]  ;;  %v7717_v1 = vsel %vm6921_vm6, %v5132_v53, %v1338_v26 }
  0xef   : > { %5994 = vmatmul.mubr.msk.bf16.gmra.mrb[24].mxu0 %vm675_vm3, %v6411_v30  ;;  %8515 = vst [vmem:[#allocation19_spill] sm:$0xff] %v7713_v57  ;;  %v7719_v54 = vrot.slane %v1338_v26, 4  ;;  %v7721_v24 = vrot.slane %v3788_v45, 4  ;;  %v3801_v0 = vshrl.u32 %v7677_v49, 16  ;;  %v5482_v50 = vld [vmem:[%s6680_s9 + $0x90] sm:$0xf]  ;;  %v8518_v58 = vcombine.low %v7408_v51, %v7442_v33 }
  0xf0   : > { %5842 = vmatmul.mubr.msk.bf16.gmra.mrb[8].mxu1 %vm675_vm3, %v8510_v59  ;;  %5997 = vmatprep.mubr.msk.bf16.mxu0 %vm675_vm3, %v6412_v36  ;;  %v3812_v19 = vshrl.u32 %v5476_v3, 16  ;;  %v3815_v21 = vshll.u32 %v5476_v3, 16  ;;  %v7734_v12 = vld [vmem:[%s6680_s9 + $0x94] sm:$0xf]  ;;  %v3821_v53 = vshll.u32 %v7701_v17, 16  ;;  %v3825_v39 = vshrl.u32 %v7701_v17, 16 }
  0xf1   : > { %5845 = vmatprep.mubr.msk.bf16.mxu1 %vm675_vm3, %v8513_v43  ;;  %8516 = vst [vmem:[#allocation20_spill] sm:$0xff] %v7734_v12  ;;  %v7737_v59 = vld [vmem:[%s6680_s9 + $0x74] sm:$0x1]  ;;  %v3836_v26 = vshrl.u32 %v5479_v27, 16  ;;  %v3839_v45 = vshll.u32 %v5479_v27, 16  ;;  %v3845_v43 = vshll.u32 %v7713_v57, 16 }
  0xf2   : > { %8517 = vst [vmem:[#allocation21_spill] sm:$0xff] %v7737_v59  ;;  %v3849_v36 = vshrl.u32 %v7713_v57, 16  ;;  %v3860_v30 = vshrl.u32 %v5482_v50, 16  ;;  %v3863_v3 = vshll.u32 %v5482_v50, 16  ;;  %v3793_v63 = vrot.slane %v3791_v25, 5 }
  0xf3   : > { %v7750_v27 = vrot.slane %v3797_v41, 5  ;;  %v3869_v16 = vshll.u32 %v7734_v12, 16  ;;  %v3873_v13 = vshrl.u32 %v7734_v12, 16  ;;  %v8519_v50 = vcombine.low %v7437_v48, %v7450_v23  ;;  %v5485_v41 = vld [vmem:[%s6680_s9 + $0x9c] sm:$0xf] }
  0xf4   : > { %v3803_v51 = vrot.slane %v3801_v0, 4  ;;  %v3807_v33 = vshll.u32 %v7737_v59, 16  ;;  %v3817_v25 = vrot.slane %v3815_v21, 5  ;;  %v3827_v57 = vrot.slane %v3825_v39, 4  ;;  %v7766_v17 = vld [vmem:[%s6680_s9 + $0x8c] sm:$0x1] }
  0xf5   : > { %v3838_v49 = vrot.slane %v3836_v26, 4  ;;  %v3841_v12 = vrot.slane %v3839_v45, 5  ;;  %v7768_v31 = vrot.slane %v3845_v43, 5  ;;  %v3851_v48 = vrot.slane %v3849_v36, 4  ;;  %v7774_v0 = vld [vmem:[%s6680_s9 + $0x98] sm:$0x1] }
  0xf6   : > { %v3862_v23 = vrot.slane %v3860_v30, 4  ;;  %v3865_v55 = vrot.slane %v3863_v3, 5  ;;  %v7776_v59 = vrot.slane %v3869_v16, 5  ;;  %v3884_v21 = vshrl.u32 %v5485_v41, 16 }
  0xf7   : > { %5998 = vmatmul.mubr.msk.bf16.gmra.mrb[28].mxu0 %vm675_vm3, %v6413_v34  ;;  %v7753_v34 = vld [vmem:[%s6680_s9 + $0x80] sm:$0x1]  ;;  %v3794_v39 = vor.u32 %v3793_v63, %v7721_v24  ;;  %v3804_v7 = vor.u32 %v3803_v51, %v7750_v27  ;;  %v3842_v30 = vor.u32 %v3841_v12, %v3838_v49  ;;  %v3852_v16 = vor.u32 %v3851_v48, %v7768_v31 }
  0xf8   : > { %5846 = vmatmul.mubr.msk.bf16.gmra.mrb[12].mxu1 %vm675_vm3, %v8518_v58  ;;  %6003 = vmatprep.mubr.msk.bf16.mxu0 %vm675_vm3, %v7492_v52  ;;  %v3814_v52 = vrot.slane %v3812_v19, 4  ;;  %v7763_v58 = vrot.slane %v3821_v53, 5  ;;  %v3875_v19 = vrot.slane %v3873_v13, 4  ;;  %v3887_v53 = vshll.u32 %v5485_v41, 16 }
  0xf9   : > { %5849 = vmatprep.mubr.msk.bf16.mxu1 %vm675_vm3, %v8519_v50  ;;  %v7771_v50 = vld [vmem:[%s6680_s9 + $0xa0] sm:$0xf]  ;;  %v3831_v45 = vshll.u32 %v7753_v34, 16  ;;  %v3855_v13 = vshll.u32 %v7766_v17, 16  ;;  %v3866_v24 = vor.u32 %v3865_v55, %v3862_v23  ;;  %v3879_v63 = vshll.u32 %v7774_v0, 16 }
  0xfa   : > { %v3818_v26 = vor.u32 %v3817_v25, %v3814_v52  ;;  %v3828_v36 = vor.u32 %v3827_v57, %v7763_v58  ;;  %v3893_v43 = vshll.u32 %v7771_v50, 16  ;;  %v3897_v3 = vshrl.u32 %v7771_v50, 16 }
  0xfb   : > { %v8520_v51 = vcombine.low %v7454_v29, %v7458_v9  ;;  %v3809_v49 = vrot.slane %v3807_v33, 5  ;;  %v3876_v57 = vor.u32 %v3875_v19, %v7776_v59  ;;  %v3886_v12 = vrot.slane %v3884_v21, 4 }
  0xfc   : > { %v8521_v52 = vcombine.low %v7504_v10, %v7508_v6  ;;  %v3795_v55 = vrot.slane %v3794_v39, 4  ;;  %v3805_v29 = vrot.slane %v3804_v7, 4  ;;  %v3819_v9 = vrot.slane %v3818_v26, 4 }
  0xfd   : > { %v3833_v25 = vrot.slane %v3831_v45, 5  ;;  %v3829_v33 = vrot.slane %v3828_v36, 4  ;;  %v3843_v41 = vrot.slane %v3842_v30, 4  ;;  %v7802_v48 = vrot.slane %v3893_v43, 5 }
  0xfe   : > { %v3899_v23 = vrot.slane %v3897_v3, 4  ;;  %v3853_v19 = vrot.slane %v3852_v16, 4  ;;  %v3857_v21 = vrot.slane %v3855_v13, 5  ;;  %v3867_v10 = vrot.slane %v3866_v24, 4 }
  0xff   : > { %6004 = vmatmul.mubr.msk.bf16.vlgmr.msra.gmra.mrb[0].mxu0 %vm675_vm3, %v7549_v56  ;;  %v3889_v56 = vrot.slane %v3887_v53, 5  ;;  %v3881_v6 = vrot.slane %v3879_v63, 5  ;;  %v7805_v53 = vld [vmem:[%s6680_s9 + $0xa4] sm:$0x1]  ;;  %v8522_v26 = vrot.slane %v7708_v22, 5  ;;  %v3800_v36 = vsel %vm6699_vm2, %v3795_v55, %v7750_v27 }
 0x100   : > { %5850 = vmatmul.mubr.msk.bf16.gmra.mrb[16].mxu1 %vm675_vm3, %v8520_v51  ;;  %6036 = vmatpush3.bf16.msra.mxu0 %v7276_v46  ;;  %v5488_v46 = vld [vmem:[%s6680_s9 + $0xa8] sm:$0xf]  ;;  %v3877_v51 = vrot.slane %v3876_v57, 4  ;;  %v3810_v30 = vsel %vm6699_vm2, %v3805_v29, %v3809_v49  ;;  %v3824_v43 = vsel %vm6699_vm2, %v3819_v9, %v7763_v58  ;;  %v3834_v22 = vsel %vm6699_vm2, %v3829_v33, %v3833_v25 }
 0x101   : > { %5853 = vmatprep.mubr.msk.bf16.mxu1 %vm675_vm3, %v8521_v52  ;;  %6007 = vmatprep.mubr.msk.bf16.mxu0 %vm675_vm3, %v7553_v4  ;;  %v3890_v52 = vor.u32 %v3889_v56, %v3886_v12  ;;  %v7808_v4 = vld [vmem:[%s6680_s9 + $0xac] sm:$0xf]  ;;  %v3908_v7 = vshrl.u32 %v5488_v46, 16  ;;  %v3911_v39 = vshll.u32 %v5488_v46, 16  ;;  %v7815_v45 = vsel %vm6921_vm6, %v7719_v54, %v8522_v26 }
 0x102   : > { %v3848_v54 = vsel %vm6699_vm2, %v3843_v41, %v7768_v31  ;;  %v3900_v3 = vor.u32 %v3899_v23, %v7802_v48  ;;  %v3903_v16 = vshll.u32 %v7805_v53, 16  ;;  %v3858_v27 = vsel %vm6699_vm2, %v3853_v19, %v3857_v21  ;;  %v5539_v31 = vld [vmem:[%s6680_s9 + $0x48] sm:$0xe]  ;;  %v5542_v26 = vld [vmem:[%s6680_s9 + $0x6c] sm:$0xe] }
 0x103   : > { %v3872_v58 = vsel %vm6699_vm2, %v3867_v10, %v7776_v59  ;;  %v3917_v13 = vshll.u32 %v7808_v4, 16  ;;  %v3921_v24 = vshrl.u32 %v7808_v4, 16  ;;  %v8523_v63 = vcombine.low %v7519_v32, %v7529_v5  ;;  %v7851_v59 = vld [vmem:[%s6680_s9 + $0xb0] sm:$0x1] }
 0x104   : > { %v3891_v49 = vrot.slane %v3890_v52, 4  ;;  %v3910_v57 = vrot.slane %v3908_v7, 4  ;;  %v3913_v12 = vrot.slane %v3911_v39, 5  ;;  %v8524_v56 = vcombine.low %v7629_v61, %v7641_v40  ;;  %v5491_v40 = vld [vmem:[%s6680_s9 + $0xb4] sm:$0xf] }
 0x105   : > { %v8525_v32 = vsel %vm6699_vm2, %v7687_v14, %v7689_v15  ;;  %v8526_v5 = vsel %vm6699_vm2, %v7685_v11, %v7613_v60  ;;  %v5150_v55 = vcombine.low %v7717_v1, %v7815_v45  ;;  %v7869_v29 = vcombine.low %v3800_v36, %v3810_v30  ;;  %v5540_v15 = vld [vmem:[%s6680_s9 + $0x54] sm:$0xe] }
 0x106   : > { %v7871_v61 = vcombine.low %v3824_v43, %v3834_v22  ;;  %v7874_v9 = vcombine.low %v3848_v54, %v3858_v27  ;;  %v3901_v25 = vrot.slane %v3900_v3, 4  ;;  %v3905_v46 = vrot.slane %v3903_v16, 5  ;;  %v8528_v16 = vld [vmem:[#allocation14_spill] sm:$0xff] }
 0x107   : > { %6008 = vmatmul.mubr.msk.bf16.gmra.mrb[4].mxu0 %vm675_vm3, %v7683_v44  ;;  %v3882_v44 = vsel %vm6699_vm2, %v3877_v51, %v3881_v6  ;;  %v5555_v14 = vrot.slane %v5539_v31, 9  ;;  %v7879_v60 = vrot.slane %v3917_v13, 5  ;;  %v3923_v11 = vrot.slane %v3921_v24, 4  ;;  %v5541_v6 = vld [vmem:[%s6680_s9 + $0x60] sm:$0xe]  ;;  %v8530_v24 = vld [vmem:[#allocation16_spill] sm:$0xff] }
 0x108   : > { %5854 = vmatmul.mubr.msk.bf16.gmra.mrb[20].mxu1 %vm675_vm3, %v8523_v63  ;;  %6011 = vmatprep.mubr.msk.bf16.mxu0 %vm675_vm3, %v7693_v38  ;;  %v5508_v38 = vcombine.low %v8526_v5, %v8525_v32  ;;  %v7877_v33 = vcombine.low %v3872_v58, %v3882_v44  ;;  %v3927_v41 = vshll.u32 %v7851_v59, 16  ;;  %v3896_v23 = vsel %vm6699_vm2, %v3891_v49, %v7802_v48  ;;  %v8529_v13 = vld [vmem:[#allocation15_spill] sm:$0xff]  ;;  %v8532_v63 = vld [vmem:[#allocation17_spill] sm:$0xff] }
 0x109   : > { %5857 = vmatprep.mubr.msk.bf16.mxu1 %vm675_vm3, %v8524_v56  ;;  %v3914_v19 = vor.u32 %v3913_v12, %v3910_v57  ;;  %v4395_v21 = vrot.slane %v7512_v20, 5  ;;  %v4398_v10 = vrot.slane %v7566_v35, 5  ;;  %v3932_v51 = vshrl.u32 %v5491_v40, 16  ;;  %v7901_v35 = vld [vmem:[%s6680_s9 + $0xb8] sm:$0xf]  ;;  %v8533_v49 = vld [vmem:[#allocation21_spill] sm:$0xff] }
 0x10a   : > { %v5556_v52 = vrot.slane %v5540_v15, 9  ;;  %v4402_v7 = vrot.slane %v7523_v18, 5  ;;  %v4405_v39 = vrot.slane %v7590_v37, 5  ;;  %v3906_v36 = vsel %vm6699_vm2, %v3901_v25, %v3905_v46  ;;  %v5494_v12 = vld [vmem:[%s6680_s9 + $0xc0] sm:$0xf] }
 0x10b   : > { %v3935_v30 = vshll.u32 %v5491_v40, 16  ;;  %v7895_v48 = vsel %vm6921_vm6, %v5555_v14, %v4395_v21  ;;  %v4397_v43 = vrot.slane %v4395_v21, 4  ;;  %v3924_v20 = vor.u32 %v3923_v11, %v7879_v60  ;;  %v5543_v14 = vld [vmem:[%s6680_s9 + $0x78] sm:$0xe] }
 0x10c   : > { %v7905_v37 = vsel %vm6921_vm6, %v5556_v52, %v4402_v7  ;;  %v4404_v18 = vrot.slane %v4402_v7, 4  ;;  %v5557_v22 = vrot.slane %v5541_v6, 9  ;;  %v8527_v54 = vcombine.low %v7648_v42, %v7652_v62  ;;  %v6415_v6 = vld [vmem:[%s6680_s9 + $0xc] sm:$0xff]  }
 0x10d   : > { %v4409_v3 = vrot.slane %v7572_v8, 5  ;;  %v4412_v27 = vrot.slane %v8528_v16, 5  ;;  %v5558_v58 = vrot.slane %v5542_v26, 9  ;;  %v8531_v31 = vcombine.low %v8529_v13, %v8530_v24  ;;  %v8535_v13 = vld [vmem:[#allocation9_spill] sm:$0xff]  ;;  %v8536_v24 = vld [vmem:[#allocation10_spill] sm:$0xff] }
 0x10e   : > { %v7926_v62 = vsel %vm6921_vm6, %v4404_v18, %v4405_v39  ;;  %v4416_v44 = vrot.slane %v8532_v63, 5  ;;  %v4419_v8 = vrot.slane %v8533_v49, 5  ;;  %v3941_v57 = vshll.u32 %v7901_v35, 16  ;;  %v7963_v39 = vld [vmem:[%s6680_s9 + $0xc4] sm:$0xf]  ;;  %v8537_v49 = vld [vmem:[#allocation19_spill] sm:$0xff] }
 0x10f   : > { %6012 = vmatmul.mubr.msk.bf16.gmra.mrb[8].mxu0 %vm675_vm3, %v7697_v47  ;;  %v7914_v47 = vsel %vm6921_vm6, %v4397_v43, %v4398_v10  ;;  %v5574_v56 = vcombine.low %v7905_v37, %v7926_v62  ;;  %v7936_v32 = vsel %vm6921_vm6, %v5557_v22, %v4409_v3  ;;  %v4411_v5 = vrot.slane %v4409_v3, 4  ;;  %v5262_v10 = vld [vmem:[%s6680_s9 + $0x78] sm:$0xf]  ;;  %v6480_v62 = vld [vmem:[%s6680_s9 + $0xa0] sm:$0xf] }
 0x110   : > { %5858 = vmatmul.mubr.msk.bf16.gmra.mrb[24].mxu1 %vm675_vm3, %v8527_v54  ;;  %6015 = vmatprep.mubr.msk.bf16.mxu0 %vm675_vm3, %v5508_v38  ;;  %v5573_v42 = vcombine.low %v7895_v48, %v7914_v47  ;;  %v7938_v38 = vrot.slane %v3927_v41, 5  ;;  %v3945_v40 = vshrl.u32 %v7901_v35, 16  ;;  %v7943_v25 = vsel %vm6921_vm6, %v5558_v58, %v4416_v44  ;;  %v8534_v22 = vld [vmem:[#allocation18_spill] sm:$0xff] }
 0x111   : > { %5861 = vmatprep.mubr.msk.bf16.mxu1 %vm675_vm3, %v8531_v31  ;;  %v4418_v46 = vrot.slane %v4416_v44, 4  ;;  %v7946_v15 = vcombine.low %v3896_v23, %v3906_v36  ;;  %v7948_v11 = vrot.slane %v3914_v19, 4  ;;  %v7950_v21 = vrot.slane %v3932_v51, 4 }
 0x112   : > { %v7954_v41 = vsel %vm6921_vm6, %v4411_v5, %v4412_v27  ;;  %v7958_v52 = vrot.slane %v3924_v20, 4  ;;  %v7960_v7 = vrot.slane %v3935_v30, 5  ;;  %v7971_v51 = vrot.slane %v3941_v57, 5  ;;  %v5544_v20 = vld [vmem:[%s6680_s9 + $0x84] sm:$0xe] }
 0x113   : > { %v5575_v23 = vcombine.low %v7936_v32, %v7954_v41  ;;  %v7969_v19 = vsel %vm6921_vm6, %v4418_v46, %v4419_v8  ;;  %v3956_v26 = vshrl.u32 %v5494_v12, 16  ;;  %v5559_v43 = vrot.slane %v5543_v14, 9  ;;  %v7979_v30 = vld [vmem:[%s6680_s9 + $0xbc] sm:$0x1]  ;;  %v5497_v5 = vld [vmem:[%s6680_s9 + $0xcc] sm:$0xf] }
 0x114   : > { %v5576_v36 = vcombine.low %v7943_v25, %v7969_v19  ;;  %v3959_v18 = vshll.u32 %v5494_v12, 16  ;;  %v4423_v54 = vrot.slane %v8534_v22, 5  ;;  %v4426_v3 = vrot.slane %v7753_v34, 5  ;;  %v6416_v14 = vld [vmem:[%s6680_s9 + $0x18] sm:$0xff]   ;;  %v5545_v22 = vld [vmem:[%s6680_s9 + $0x90] sm:$0xe] }
 0x115   : > { %v2269_v16 = vshrl.u32 %v5262_v10, 16  ;;  %v3965_v27 = vshll.u32 %v7963_v39, 16  ;;  %v2272_v58 = vshll.u32 %v5262_v10, 16  ;;  %v2291_v34 = vsel %vm6699_vm2, %v8536_v24, %v8535_v13  ;;  %v8538_v24 = vld [vmem:[#allocation20_spill] sm:$0xff]  ;;  %v6484_v19 = vld [vmem:[%s6680_s9 + $0xac] sm:$0xf] }
 0x116   : > { %v7998_v1 = vsel %vm6921_vm6, %v5559_v43, %v4423_v54  ;;  %v4425_v45 = vrot.slane %v4423_v54, 4  ;;  %v3947_v31 = vrot.slane %v3945_v40, 4  ;;  %v3951_v63 = vshll.u32 %v7979_v30, 16 }
 0x117   : > { %6016 = vmatmul.mubr.msk.bf16.gmra.mrb[12].mxu0 %vm675_vm3, %v7869_v29  ;;  %v3969_v29 = vshrl.u32 %v7963_v39, 16  ;;  %v2274_v44 = vrot.slane %v2272_v58, 5  ;;  %v4430_v8 = vrot.slane %v8537_v49, 5  ;;  %v3920_v57 = vsel %vm6699_vm2, %v7948_v11, %v7879_v60  ;;  %v6417_v60 = vld [vmem:[%s6680_s9 + $0x24] sm:$0xff]  }
 0x118   : > { %5862 = vmatmul.mubr.msk.bf16.gmra.mrb[28].mxu1 %vm675_vm3, %v5150_v55  ;;  %6019 = vmatprep.mubr.msk.bf16.mxu0 %vm675_vm3, %v7871_v61  ;;  %v2271_v55 = vrot.slane %v2269_v16, 4  ;;  %v5560_v61 = vrot.slane %v5544_v20, 9  ;;  %v3938_v12 = vor.u32 %v7960_v7, %v7950_v21  ;;  %v8011_v46 = vsel %vm6921_vm6, %v4425_v45, %v4426_v3  ;;  %v8022_v7 = vld [vmem:[%s6680_s9 + $0xd0] sm:$0xf] }
 0x119   : > { %5867 = vmatprep.mubr.msk.bf16.mxu1 %vm675_vm3, %v6415_v6  ;;  %v4433_v40 = vrot.slane %v7766_v17, 5  ;;  %v3958_v10 = vrot.slane %v3956_v26, 4  ;;  %v3961_v6 = vrot.slane %v3959_v18, 5  ;;  %v5577_v43 = vcombine.low %v7998_v1, %v8011_v46  ;;  %v8034_v18 = vld [vmem:[%s6680_s9 + $0xc8] sm:$0x1] }
 0x11a   : > { %v2275_v20 = vor.u32 %v2274_v44, %v2271_v55  ;;  %v8019_v11 = vrot.slane %v3965_v27, 5  ;;  %v3971_v21 = vrot.slane %v3969_v29, 4  ;;  %v8026_v54 = vsel %vm6921_vm6, %v5560_v61, %v4430_v8  ;;  %v8539_v55 = vld [vmem:[#allocation8_spill] sm:$0xff] }
 0x11b   : > { %v4432_v3 = vrot.slane %v4430_v8, 4  ;;  %v3930_v17 = vsel %vm6699_vm2, %v7958_v52, %v7938_v38  ;;  %v3948_v26 = vor.u32 %v3947_v31, %v7971_v51  ;;  %v3980_v16 = vshrl.u32 %v5497_v5, 16  ;;  %v8540_v31 = vld [vmem:[#allocation13_spill] sm:$0xff] }
 0x11c   : > { %v2276_v27 = vrot.slane %v2275_v20, 4  ;;  %v3983_v29 = vshll.u32 %v5497_v5, 16  ;;  %v5561_v13 = vrot.slane %v5545_v22, 9  ;;  %v4437_v45 = vrot.slane %v8538_v24, 5 }
 0x11d   : > { %v8040_v58 = vsel %vm6921_vm6, %v4432_v3, %v4433_v40  ;;  %v3989_v38 = vshll.u32 %v8022_v7, 16  ;;  %v3993_v52 = vshrl.u32 %v8022_v7, 16  ;;  %v3962_v44 = vor.u32 %v3961_v6, %v3958_v10  ;;  %v5546_v10 = vld [vmem:[%s6680_s9 + $0x9c] sm:$0xe]  ;;  %v6418_v6 = vld [vmem:[%s6680_s9 + $0x30] sm:$0xff]  }
 0x11e   : > { %v5578_v61 = vcombine.low %v8026_v54, %v8040_v58  ;;  %v3975_v49 = vshll.u32 %v8034_v18, 16  ;;  %v3953_v5 = vrot.slane %v3951_v63, 5  ;;  %v8061_v40 = vsel %vm6921_vm6, %v5561_v13, %v4437_v45  ;;  %v6419_v13 = vld [vmem:[%s6680_s9 + $0x3c] sm:$0xff]  }
 0x11f   : > { %6020 = vmatmul.mubr.msk.bf16.gmra.mrb[16].mxu0 %vm675_vm3, %v7874_v9  ;;  %v2281_v9 = vsel %vm6699_vm2, %v2276_v27, %v8539_v55  ;;  %v4440_v20 = vrot.slane %v7774_v0, 5  ;;  %v5514_v22 = vcombine.low %v3920_v57, %v3930_v17  ;;  %v3939_v3 = vrot.slane %v3938_v12, 4 }
 0x120   : > { %5868 = vmatmul.mubr.msk.bf16.vlgmr.msra.gmra.mrb[0].mxu1 %vm675_vm3, %v6416_v14  ;;  %6023 = vmatprep.mubr.msk.bf16.mxu0 %vm675_vm3, %v7877_v33  ;;  %v3972_v33 = vor.u32 %v3971_v21, %v8019_v11  ;;  %v8057_v8 = vcombine.low %v2281_v9, %v2291_v34  ;;  %v4439_v14 = vrot.slane %v4437_v45, 4  ;;  %v3949_v27 = vrot.slane %v3948_v26, 4  ;;  %v8067_v21 = vld [vmem:[%s6680_s9 + $0xd4] sm:$0x1]  ;;  %v5535_v9 = vld [vmem:[%s6680_s9 + $0x18] sm:$0xe] }
 0x121   : > { %6070 = vmatpush3.bf16.msra.mxu1 %v8540_v31  ;;  %5871 = vmatprep.mubr.msk.bf16.mxu1 %vm675_vm3, %v6417_v60  ;;  %v3982_v60 = vrot.slane %v3980_v16, 4  ;;  %v3985_v24 = vrot.slane %v3983_v29, 5  ;;  %v8069_v34 = vrot.slane %v3989_v38, 5  ;;  %v3995_v55 = vrot.slane %v3993_v52, 4 }
 0x122   : > { %v8073_v63 = vsel %vm6921_vm6, %v4439_v14, %v4440_v20  ;;  %v3963_v45 = vrot.slane %v3962_v44, 4  ;;  %v3973_v0 = vrot.slane %v3972_v33, 4  ;;  %v3977_v57 = vrot.slane %v3975_v49, 5  ;;  %v6470_v33 = vld [vmem:[%s6680_s9 + $0x1c] sm:$0xf] }
 0x123   : > { %v5579_v12 = vcombine.low %v8061_v40, %v8073_v63  ;;  %v5562_v17 = vrot.slane %v5546_v10, 9  ;;  %v4444_v26 = vrot.slane %v7771_v50, 5  ;;  %v3944_v16 = vsel %vm6699_vm2, %v3939_v3, %v7971_v51  ;;  %v5547_v14 = vld [vmem:[%s6680_s9 + $0xa8] sm:$0xe] }
 0x124   : > { %v3954_v29 = vsel %vm6699_vm2, %v3949_v27, %v3953_v5  ;;  %v3999_v38 = vshll.u32 %v8067_v21, 16  ;;  %v4447_v52 = vrot.slane %v7805_v53, 5  ;;  %v3986_v50 = vor.u32 %v3985_v24, %v3982_v60  ;;  %v6420_v60 = vld [vmem:[%s6680_s9 + $0x48] sm:$0xff]   ;;  %v6471_v24 = vld [vmem:[%s6680_s9 + $0x20] sm:$0x1] }
 0x125   : > { %v8094_v51 = vsel %vm6921_vm6, %v5562_v17, %v4444_v26  ;;  %v4446_v31 = vrot.slane %v4444_v26, 4  ;;  %v3968_v53 = vsel %vm6699_vm2, %v3963_v45, %v8019_v11  ;;  %v3978_v44 = vsel %vm6699_vm2, %v3973_v0, %v3977_v57  ;;  %v5548_v26 = vld [vmem:[%s6680_s9 + $0xb4] sm:$0xe] }
 0x126   : > { %v4367_v49 = vrot.slane %v6470_v33, 5  ;;  %v5515_v20 = vcombine.low %v3944_v16, %v3954_v29  ;;  %v5551_v3 = vrot.slane %v5535_v9, 9  ;;  %v5516_v11 = vcombine.low %v3968_v53, %v3978_v44  ;;  %v5537_v33 = vld [vmem:[%s6680_s9 + $0x30] sm:$0xe] }
 0x127   : > { %6024 = vmatmul.mubr.msk.bf16.gmra.mrb[20].mxu0 %vm675_vm3, %v7946_v15  ;;  %v3996_v15 = vor.u32 %v3995_v55, %v8069_v34  ;;  %v8105_v5 = vsel %vm6921_vm6, %v4446_v31, %v4447_v52  ;;  %v3987_v10 = vrot.slane %v3986_v50, 4  ;;  %v4370_v55 = vrot.slane %v6471_v24, 5  ;;  %v5536_v52 = vld [vmem:[%s6680_s9 + $0x24] sm:$0xe]  ;;  %v6472_v50 = vld [vmem:[%s6680_s9 + $0x28] sm:$0xf] }
 0x128   : > { %5872 = vmatmul.mubr.msk.bf16.gmra.mrb[4].mxu1 %vm675_vm3, %v6418_v6  ;;  %6027 = vmatprep.mubr.msk.bf16.mxu0 %vm675_vm3, %v5514_v22  ;;  %v4001_v22 = vrot.slane %v3999_v38, 5  ;;  %v5580_v27 = vcombine.low %v8094_v51, %v8105_v5  ;;  %v4369_v45 = vrot.slane %v4367_v49, 4  ;;  %v5563_v0 = vrot.slane %v5547_v14, 9  ;;  %v6473_v31 = vld [vmem:[%s6680_s9 + $0x34] sm:$0xf] }
 0x129   : > { %5875 = vmatprep.mubr.msk.bf16.mxu1 %vm675_vm3, %v6419_v13  ;;  %v3997_v6 = vrot.slane %v3996_v15, 4  ;;  %v6421_v13 = vld [vmem:[%s6680_s9 + $0x54] sm:$0xff]   ;;  %v4451_v57 = vrot.slane %v7808_v4, 5  ;;  %v4454_v17 = vrot.slane %v7851_v59, 5  ;;  %v3992_v4 = vsel %vm6699_vm2, %v3987_v10, %v8069_v34  ;;  %v6422_v10 = vld [vmem:[%s6680_s9 + $0x60] sm:$0xff]  }
 0x12a   : > { %v4368_v38 = vsel %vm6921_vm6, %v5551_v3, %v4367_v49  ;;  %v4374_v15 = vrot.slane %v6472_v50, 5  ;;  %v4371_v9 = vsel %vm6921_vm6, %v4369_v45, %v4370_v55  ;;  %v4381_v53 = vrot.slane %v6473_v31, 5  ;;  %v6474_v3 = vld [vmem:[%s6680_s9 + $0x2c] sm:$0x1]  ;;  %v6489_v51 = vld [vmem:[%s6680_s9 + $0xc8] sm:$0x1] }
 0x12b   : > { %v8119_v16 = vsel %vm6921_vm6, %v5563_v0, %v4451_v57  ;;  %v4453_v29 = vrot.slane %v4451_v57, 4  ;;  %v4002_v59 = vsel %vm6699_vm2, %v3997_v6, %v4001_v22  ;;  %v5564_v44 = vrot.slane %v5548_v26, 9  ;;  %v6423_v45 = vld [vmem:[%s6680_s9 + $0x6c] sm:$0xff]   ;;  %v5549_v26 = vld [vmem:[%s6680_s9 + $0xc0] sm:$0xe] }
 0x12c   : > { %v4458_v14 = vrot.slane %v7901_v35, 5  ;;  %v5552_v22 = vrot.slane %v5536_v52, 9  ;;  %v5569_v6 = vcombine.low %v4368_v38, %v4371_v9  ;;  %v4376_v24 = vrot.slane %v4374_v15, 4  ;;  %v6475_v35 = vld [vmem:[%s6680_s9 + $0x38] sm:$0x1]  ;;  %v8541_v38 = vld [vmem:[#allocation11_spill] sm:$0xff] }
 0x12d   : > { %v8138_v34 = vsel %vm6921_vm6, %v4453_v29, %v4454_v17  ;;  %v5553_v0 = vrot.slane %v5537_v33, 9  ;;  %v4383_v57 = vrot.slane %v4381_v53, 4  ;;  %v4384_v17 = vrot.slane %v6475_v35, 5 }
 0x12e   : > { %v5581_v49 = vcombine.low %v8119_v16, %v8138_v34  ;;  %v8149_v55 = vsel %vm6921_vm6, %v5564_v44, %v4458_v14  ;;  %v4388_v52 = vrot.slane %v8541_v38, 5  ;;  %v5565_v50 = vrot.slane %v5549_v26, 9  ;;  %v5538_v44 = vld [vmem:[%s6680_s9 + $0x3c] sm:$0xe]  ;;  %v6476_v38 = vld [vmem:[%s6680_s9 + $0x70] sm:$0xf] }
 0x12f   : > { %6028 = vmatmul.mubr.msk.bf16.gmra.mrb[24].mxu0 %vm675_vm3, %v5515_v20  ;;  %v5517_v20 = vcombine.low %v3992_v4, %v4002_v59  ;;  %v4375_v4 = vsel %vm6921_vm6, %v5552_v22, %v4374_v15  ;;  %v4382_v9 = vsel %vm6921_vm6, %v5553_v0, %v4381_v53  ;;  %v4385_v31 = vsel %vm6921_vm6, %v4383_v57, %v4384_v17  ;;  %v5259_v22 = vld [vmem:[%s6680_s9 + $0x6c] sm:$0xf] }
 0x130   : > { %5876 = vmatmul.mubr.msk.bf16.gmra.mrb[8].mxu1 %vm675_vm3, %v6420_v60  ;;  %6031 = vmatprep.mubr.msk.bf16.mxu0 %vm675_vm3, %v5516_v11  ;;  %v4377_v60 = vrot.slane %v6474_v3, 5  ;;  %v4461_v11 = vrot.slane %v7979_v30, 5  ;;  %v4465_v33 = vrot.slane %v7963_v39, 5  ;;  %v4468_v15 = vrot.slane %v8034_v18, 5 }
 0x131   : > { %5879 = vmatprep.mubr.msk.bf16.mxu1 %vm675_vm3, %v6421_v13  ;;  %v4460_v13 = vrot.slane %v4458_v14, 4  ;;  %v5550_v14 = vld [vmem:[%s6680_s9 + $0xcc] sm:$0xe]  ;;  %v4390_v53 = vrot.slane %v4388_v52, 4  ;;  %v2245_v0 = vshrl.u32 %v5259_v22, 16  ;;  %v2248_v57 = vshll.u32 %v5259_v22, 16 }
 0x132   : > { %v4378_v59 = vsel %vm6921_vm6, %v4376_v24, %v4377_v60  ;;  %v8180_v3 = vsel %vm6921_vm6, %v5565_v50, %v4465_v33  ;;  %v4467_v60 = vrot.slane %v4465_v33, 4  ;;  %v8542_v24 = vld [vmem:[#allocation12_spill] sm:$0xff]  ;;  %v5566_v18 = vrot.slane %v5550_v14, 9 }
 0x133   : > { %v8156_v29 = vsel %vm6921_vm6, %v4460_v13, %v4461_v11  ;;  %v6424_v11 = vld [vmem:[%s6680_s9 + $0x78] sm:$0xff]   ;;  %v4391_v13 = vrot.slane %v8542_v24, 5  ;;  %v4472_v17 = vrot.slane %v8022_v7, 5  ;;  %v4475_v26 = vrot.slane %v8067_v21, 5 }
 0x134   : > { %v5582_v30 = vcombine.low %v8149_v55, %v8156_v29  ;;  %v8187_v39 = vsel %vm6921_vm6, %v4467_v60, %v4468_v15  ;;  %v2254_v50 = vshll.u32 %v6476_v38, 16  ;;  %v6426_v15 = vld [vmem:[%s6680_s9 + $0x90] sm:$0xff]   ;;  %v6427_v60 = vld [vmem:[%s6680_s9 + $0x9c] sm:$0xff]   ;;  %v2432_v5 = vshll.u32 %v6489_v51, 16 }
 0x135   : > { %v5583_v35 = vcombine.low %v8180_v3, %v8187_v39  ;;  %v8204_v7 = vsel %vm6921_vm6, %v5566_v18, %v4472_v17  ;;  %v4474_v21 = vrot.slane %v4472_v17, 4  ;;  %v5268_v17 = vld [vmem:[%s6680_s9 + $0x90] sm:$0xf] }
 0x136   : > { %v2256_v14 = vrot.slane %v2254_v50, 5 }
 0x137   : > { %6032 = vmatmul.mubr.msk.bf16.gmra.mrb[28].mxu0 %vm675_vm3, %v5517_v20  ;;  %v5570_v20 = vcombine.low %v4375_v4, %v4378_v59  ;;  %v4392_v59 = vsel %vm6921_vm6, %v4390_v53, %v4391_v13 }
 0x138   : > { %5880 = vmatmul.mubr.msk.bf16.gmra.mrb[12].mxu1 %vm675_vm3, %v6422_v10  ;;  %6037 = vmatprep.mubr.msk.bf16.mxu0 %vm675_vm3, %v5569_v6  ;;  %v5571_v10 = vcombine.low %v4382_v9, %v4385_v31  ;;  %v5554_v6 = vrot.slane %v5538_v44, 9  ;;  %v2258_v9 = vshrl.u32 %v6476_v38, 16  ;;  %v2247_v31 = vrot.slane %v2245_v0, 4  ;;  %v6429_v38 = vld [vmem:[%s6680_s9 + $0xb4] sm:$0xff]  }
 0x139   : > { %5883 = vmatprep.mubr.msk.bf16.mxu1 %vm675_vm3, %v6423_v45  ;;  %v6425_v45 = vld [vmem:[%s6680_s9 + $0x84] sm:$0xff]   ;;  %v2250_v44 = vrot.slane %v2248_v57, 5 }
 0x13a   : > { %v4389_v4 = vsel %vm6921_vm6, %v5554_v6, %v4388_v52  ;;  %v8208_v52 = vsel %vm6921_vm6, %v4474_v21, %v4475_v26  ;;  %v6477_v6 = vld [vmem:[%s6680_s9 + $0x74] sm:$0x1]  ;;  %v6428_v26 = vld [vmem:[%s6680_s9 + $0xa8] sm:$0xff]   ;;  %v2317_v21 = vshrl.u32 %v5268_v17, 16 }
 0x13b   : > { %v5572_v33 = vcombine.low %v4389_v4, %v4392_v59  ;;  %v5584_v22 = vcombine.low %v8204_v7, %v8208_v52  ;;  %v2264_v53 = vshll.u32 %v6477_v6, 16  ;;  %v5271_v59 = vld [vmem:[%s6680_s9 + $0x9c] sm:$0xf]  ;;  %v6481_v6 = vld [vmem:[%s6680_s9 + $0x8c] sm:$0x1] }
 0x13d   : > { %v2266_v48 = vrot.slane %v2264_v53, 5  ;;  %v2312_v53 = vshll.u32 %v6481_v6, 16 }
 0x13f   : > { %6038 = vmatmul.mubr.msk.bf16.vlgmr.msra.gmra.mrb[0].mxu0 %vm675_vm3, %v5570_v20  ;;  %v2260_v20 = vrot.slane %v2258_v9, 4 }
 0x140   : > { %5884 = vmatmul.mubr.msk.bf16.gmra.mrb[16].mxu1 %vm675_vm3, %v6424_v11  ;;  %6041 = vmatprep.mubr.msk.bf16.mxu0 %vm675_vm3, %v5571_v10  ;;  %v5265_v11 = vld [vmem:[%s6680_s9 + $0x84] sm:$0xf]  ;;  %v2251_v10 = vor.u32 %v2250_v44, %v2247_v31  ;;  %v2320_v31 = vshll.u32 %v5268_v17, 16 }
 0x141   : > { %5887 = vmatprep.mubr.msk.bf16.mxu1 %vm675_vm3, %v6425_v45  ;;  %v2261_v2 = vor.u32 %v2260_v20, %v2256_v14  ;;  %v2293_v24 = vshrl.u32 %v5265_v11, 16  ;;  %v2296_v13 = vshll.u32 %v5265_v11, 16  ;;  %v6478_v45 = vld [vmem:[%s6680_s9 + $0x88] sm:$0xf]  ;;  %v2344_v11 = vshll.u32 %v5271_v59, 16 }
 0x142   : > { %v2302_v18 = vshll.u32 %v6478_v45, 16  ;;  %v2306_v0 = vshrl.u32 %v6478_v45, 16  ;;  %v2252_v57 = vrot.slane %v2251_v10, 4  ;;  %v2350_v10 = vshll.u32 %v6480_v62, 16 }
 0x143   : > { %v2262_v4 = vrot.slane %v2261_v2, 4  ;;  %v2295_v47 = vrot.slane %v2293_v24, 4  ;;  %v2319_v24 = vrot.slane %v2317_v21, 4  ;;  %v2322_v32 = vrot.slane %v2320_v31, 5  ;;  %v6483_v31 = vld [vmem:[%s6680_s9 + $0xa4] sm:$0x1] }
 0x144   : > { %v8228_v50 = vrot.slane %v2302_v18, 5  ;;  %v2308_v9 = vrot.slane %v2306_v0, 4  ;;  %v2257_v44 = vsel %vm6699_vm2, %v2252_v57, %v2256_v14  ;;  %v2346_v45 = vrot.slane %v2344_v11, 5  ;;  %v6430_v18 = vld [vmem:[%s6680_s9 + $0xc0] sm:$0xff]  }
 0x145   : > { %v2267_v14 = vsel %vm6699_vm2, %v2262_v4, %v2266_v48  ;;  %v8251_v17 = vrot.slane %v2350_v10, 5  ;;  %v5274_v4 = vld [vmem:[%s6680_s9 + $0xa8] sm:$0xf] }
 0x146   : > { %v2309_v2 = vor.u32 %v2308_v9, %v8228_v50  ;;  %v5293_v0 = vcombine.low %v2257_v44, %v2267_v14  ;;  %v2360_v44 = vshll.u32 %v6483_v31, 16  ;;  %v2368_v25 = vshll.u32 %v5274_v4, 16 }
 0x147   : > { %6042 = vmatmul.mubr.msk.bf16.gmra.mrb[4].mxu0 %vm675_vm3, %v5572_v33  ;;  %v6479_v33 = vld [vmem:[%s6680_s9 + $0x94] sm:$0xf] }
 0x148   : > { %5888 = vmatmul.mubr.msk.bf16.gmra.mrb[20].mxu1 %vm675_vm3, %v6426_v15  ;;  %6045 = vmatprep.mubr.msk.bf16.mxu0 %vm675_vm3, %v5573_v42  ;;  %v2298_v42 = vrot.slane %v2296_v13, 5  ;;  %v2326_v15 = vshll.u32 %v6479_v33, 16  ;;  %v2330_v20 = vshrl.u32 %v6479_v33, 16  ;;  %v2310_v48 = vrot.slane %v2309_v2, 4 }
 0x149   : > { %5891 = vmatprep.mubr.msk.bf16.mxu1 %vm675_vm3, %v6427_v60  ;;  %v2341_v60 = vshrl.u32 %v5271_v59, 16  ;;  %v6482_v59 = vld [vmem:[%s6680_s9 + $0x98] sm:$0x1]  ;;  %v2365_v33 = vshrl.u32 %v5274_v4, 16  ;;  %v5280_v4 = vld [vmem:[%s6680_s9 + $0xc0] sm:$0xf] }
 0x14a   : > { %v2299_v37 = vor.u32 %v2298_v42, %v2295_v47  ;;  %v8248_v41 = vrot.slane %v2326_v15, 5  ;;  %v2314_v47 = vrot.slane %v2312_v53, 5  ;;  %v2323_v42 = vor.u32 %v2322_v32, %v2319_v24  ;;  %v5277_v15 = vld [vmem:[%s6680_s9 + $0xb4] sm:$0xf] }
 0x14b   : > { %v2343_v13 = vrot.slane %v2341_v60, 4  ;;  %v2378_v60 = vshrl.u32 %v6484_v19, 16  ;;  %v2389_v1 = vshrl.u32 %v5277_v15, 16  ;;  %v2392_v46 = vshll.u32 %v5277_v15, 16 }
 0x14c   : > { %v2300_v57 = vrot.slane %v2299_v37, 4  ;;  %v2315_v14 = vsel %vm6699_vm2, %v2310_v48, %v2314_v47  ;;  %v2324_v37 = vrot.slane %v2323_v42, 4  ;;  %v2362_v53 = vrot.slane %v2360_v44, 5 }
 0x14d   : > { %v2347_v21 = vor.u32 %v2346_v45, %v2343_v13  ;;  %v2367_v24 = vrot.slane %v2365_v33, 4  ;;  %v2380_v45 = vrot.slane %v2378_v60, 4  ;;  %v6488_v33 = vld [vmem:[%s6680_s9 + $0xbc] sm:$0x1] }
 0x14e   : > { %v2305_v11 = vsel %vm6699_vm2, %v2300_v57, %v8228_v50  ;;  %v2329_v48 = vsel %vm6699_vm2, %v2324_v37, %v8248_v41  ;;  %v2408_v40 = vshll.u32 %v6488_v33, 16 }
 0x14f   : > { %6046 = vmatmul.mubr.msk.bf16.gmra.mrb[8].mxu0 %vm675_vm3, %v5574_v56  ;;  %v2354_v56 = vshrl.u32 %v6480_v62, 16  ;;  %v2348_v6 = vrot.slane %v2347_v21, 4  ;;  %v5295_v50 = vcombine.low %v2305_v11, %v2315_v14 }
 0x150   : > { %5892 = vmatmul.mubr.msk.bf16.gmra.mrb[24].mxu1 %vm675_vm3, %v6428_v26  ;;  %6049 = vmatprep.mubr.msk.bf16.mxu0 %vm675_vm3, %v5575_v23  ;;  %v2332_v23 = vrot.slane %v2330_v20, 4 }
 0x151   : > { %5895 = vmatprep.mubr.msk.bf16.mxu1 %vm675_vm3, %v6429_v38  ;;  %v2356_v26 = vrot.slane %v2354_v56, 4  ;;  %v2336_v38 = vshll.u32 %v6482_v59, 16  ;;  %v2353_v42 = vsel %vm6699_vm2, %v2348_v6, %v8251_v17  ;;  %v2434_v6 = vrot.slane %v2432_v5, 5 }
 0x152   : > { %v2333_v9 = vor.u32 %v2332_v23, %v8248_v41  ;;  %v2370_v23 = vrot.slane %v2368_v25, 5  ;;  %v6486_v41 = vld [vmem:[%s6680_s9 + $0xb0] sm:$0x1] }
 0x153   : > { %v2357_v20 = vor.u32 %v2356_v26, %v8251_v17  ;;  %v2338_v62 = vrot.slane %v2336_v38, 5  ;;  %v2384_v59 = vshll.u32 %v6486_v41, 16  ;;  %v2413_v38 = vshrl.u32 %v5280_v4, 16 }
 0x154   : > { %v2334_v2 = vrot.slane %v2333_v9, 4  ;;  %v2371_v58 = vor.u32 %v2370_v23, %v2367_v24  ;;  %v2416_v17 = vshll.u32 %v5280_v4, 16  ;;  %v6487_v9 = vld [vmem:[%s6680_s9 + $0xc4] sm:$0xf] }
 0x155   : > { %v2358_v32 = vrot.slane %v2357_v20, 4  ;;  %v2422_v21 = vshll.u32 %v6487_v9, 16  ;;  %v2426_v31 = vshrl.u32 %v6487_v9, 16  ;;  %v2386_v25 = vrot.slane %v2384_v59, 5 }
 0x156   : > { %v2339_v47 = vsel %vm6699_vm2, %v2334_v2, %v2338_v62  ;;  %v2372_v15 = vrot.slane %v2371_v58, 4  ;;  %v2410_v62 = vrot.slane %v2408_v40, 5 }
 0x157   : > { %6050 = vmatmul.mubr.msk.bf16.gmra.mrb[12].mxu0 %vm675_vm3, %v5576_v36  ;;  %v2374_v36 = vshll.u32 %v6484_v19, 16  ;;  %v2363_v54 = vsel %vm6699_vm2, %v2358_v32, %v2362_v53  ;;  %v5296_v63 = vcombine.low %v2329_v48, %v2339_v47  ;;  %v2415_v19 = vrot.slane %v2413_v38, 4 }
 0x158   : > { %5896 = vmatmul.mubr.msk.bf16.gmra.mrb[28].mxu1 %vm675_vm3, %v6430_v18  ;;  %6053 = vmatprep.mubr.msk.bf16.mxu0 %vm675_vm3, %v5577_v43  ;;  %v6485_v43 = vld [vmem:[%s6680_s9 + $0xb8] sm:$0xf]  ;;  %v2391_v18 = vrot.slane %v2389_v1, 4  ;;  %v2424_v60 = vrot.slane %v2422_v21, 5  ;;  %v2428_v11 = vrot.slane %v2426_v31, 4  ;;  %s5609_s9 = sshll.u32 %s6631_s16, 12 }
 0x159   : > { %5917 = vmatprep.mubr.msk.bf16.mxu1 %vm675_vm3, %v5293_v0  ;;  %v2398_v10 = vshll.u32 %v6485_v43, 16  ;;  %v2402_v56 = vshrl.u32 %v6485_v43, 16  ;;  %v2376_v13 = vrot.slane %v2374_v36, 5  ;;  %v2394_v0 = vrot.slane %v2392_v46, 5  ;;  %s8394_s19 = scalar_lea.hbm %s8475_s2, %s5609_s9 }
 0x15a   : > { %v2418_v36 = vrot.slane %v2416_v17, 5 }
 0x15b   : > { %v2400_v57 = vrot.slane %v2398_v10, 5  ;;  %v2404_v26 = vrot.slane %v2402_v56, 4  ;;  %v2377_v1 = vsel %vm6699_vm2, %v2372_v15, %v2376_v13  ;;  %v2429_v10 = vor.u32 %v2428_v11, %v2424_v60 }
 0x15c   : > { %v2419_v43 = vor.u32 %v2418_v36, %v2415_v19 }
 0x15d   : > { %v2405_v44 = vor.u32 %v2404_v26, %v2400_v57  ;;  %v2430_v2 = vrot.slane %v2429_v10, 4 }
 0x15e   : > { %v2420_v56 = vrot.slane %v2419_v43, 4 }
 0x15f   : > { %6054 = vmatmul.mubr.msk.bf16.gmra.mrb[16].mxu0 %vm675_vm3, %v5578_v61  ;;  %v2381_v61 = vor.u32 %v2380_v45, %v2376_v13  ;;  %v2406_v37 = vrot.slane %v2405_v44, 4  ;;  %v2435_v24 = vsel %vm6699_vm2, %v2430_v2, %v2434_v6 }
 0x160   : > { %5918 = vmatmul.mubr.msk.bf16.vlgmr.msra.gmra.mrb[16].mxu1 %vm675_vm3, %v8057_v8  ;;  %6057 = vmatprep.mubr.msk.bf16.mxu0 %vm675_vm3, %v5579_v12  ;;  %v2395_v8 = vor.u32 %v2394_v0, %v2391_v18  ;;  %v5297_v12 = vcombine.low %v2353_v42, %v2363_v54  ;;  %v2425_v53 = vsel %vm6699_vm2, %v2420_v56, %v2424_v60 }
 0x161   : > { %5921 = vmatprep.mubr.msk.bf16.mxu1 %vm675_vm3, %v5295_v50  ;;  %v2382_v20 = vrot.slane %v2381_v61, 4  ;;  %v2411_v16 = vsel %vm6699_vm2, %v2406_v37, %v2410_v62  ;;  %v5300_v32 = vcombine.low %v2425_v53, %v2435_v24 }
 0x162   : > { %v2396_v14 = vrot.slane %v2395_v8, 4 }
 0x163   : > { %v2387_v46 = vsel %vm6699_vm2, %v2382_v20, %v2386_v25 }
 0x164   : > { %v5298_v34 = vcombine.low %v2377_v1, %v2387_v46 }
 0x167   : > { %6058 = vmatmul.mubr.msk.bf16.gmra.mrb[20].mxu0 %vm675_vm3, %v5580_v27  ;;  %v2401_v27 = vsel %vm6699_vm2, %v2396_v14, %v2400_v57 }
 0x168   : > { %5922 = vmatmul.mubr.msk.bf16.gmra.mrb[20].mxu1 %vm675_vm3, %v5296_v63  ;;  %6061 = vmatprep.mubr.msk.bf16.mxu0 %vm675_vm3, %v5581_v49  ;;  %v5299_v49 = vcombine.low %v2401_v27, %v2411_v16 }
 0x169   : > { %5925 = vmatprep.mubr.msk.bf16.mxu1 %vm675_vm3, %v5297_v12 }
 0x16f   : > { %6062 = vmatmul.mubr.msk.bf16.gmra.mrb[24].mxu0 %vm675_vm3, %v5582_v30 }
 0x170   : > { %5926 = vmatmul.mubr.msk.bf16.gmra.mrb[24].mxu1 %vm675_vm3, %v5298_v34  ;;  %6065 = vmatprep.mubr.msk.bf16.mxu0 %vm675_vm3, %v5583_v35 }
 0x171   : > { %5929 = vmatprep.mubr.msk.bf16.mxu1 %vm675_vm3, %v5299_v49 }
 0x177   : > { %6066 = vmatmul.mubr.msk.bf16.gmra.mrb[28].mxu0 %vm675_vm3, %v5584_v22 }
 0x178   : > { %5930 = vmatmul.mubr.msk.bf16.gmra.mrb[28].mxu1 %vm675_vm3, %v5300_v32 }
 0x1f3   : > { %v5869_v55 = vpop.f32.mrb[0].mxu1 }
 0x1f4   : > { %v1845_v29 = vpop.f32.mrb[1].mxu1 }
 0x1f5   : > { %v5870_v30 = vpop.f32.mrb[2].mxu1 }
 0x1f6   : > { %v1848_v3 = vpop.f32.mrb[3].mxu1 }
 0x1fb   : > { %v5873_v39 = vpop.f32.mrb[4].mxu1 }
 0x1fc   : > { %v1861_v35 = vpop.f32.mrb[5].mxu1 }
 0x1fd   : > { %v5874_v23 = vpop.f32.mrb[6].mxu1 }
 0x1fe   : > { %v1864_v13 = vpop.f32.mrb[7].mxu1 }
 0x203   : > { %v5877_v45 = vpop.f32.mrb[8].mxu1 }
 0x204   : > { %v1877_v28 = vpop.f32.mrb[9].mxu1 }
 0x205   : > { %v5878_v50 = vpop.f32.mrb[10].mxu1 }
 0x206   : > { %v8339_v18 = vpop.f32.mrb[11].mxu1 }
 0x20b   : > { %v8341_v0 = vpop.f32.mrb[12].mxu1 }
 0x20c   : > { %v8343_v7 = vpop.f32.mrb[13].mxu1 }
 0x20d   : > { %v8348_v52 = vpop.f32.mrb[14].mxu1 }
 0x20e   : > { %v8350_v22 = vpop.f32.mrb[15].mxu1 }
 0x212   : > { %v6039_v57 = vpop.f32.mrb[0].mxu0 }
 0x213   : > { %v6071_v26 = vadd.f32 %v6039_v57, %v5869_v55  ;;  %v4616_v4 = vpop.f32.mrb[1].mxu0 }
 0x214   : > { %v6072_v48 = vadd.f32 %v4616_v4, %v1845_v29  ;;  %v6040_v47 = vpop.f32.mrb[2].mxu0 }
 0x215   : > { %4777 = vst [vmem:[%s8353_s8 + $0x10] sm:$0xff] %v6071_v26  ;;  %v6073_v42 = vadd.f32 %v6040_v47, %v5870_v30  ;;  %v4619_v54 = vpop.f32.mrb[3].mxu0  ;;  %v4846_v38 = vmul.f32 %v6071_v26, %v6071_v26 }
 0x216   : > { %4775 = vst [vmem:[%s8353_s8] sm:$0xff] %v6072_v48  ;;  %v6074_v58 = vadd.f32 %v4619_v54, %v1848_v3  ;;  %v4844_v61 = vmul.f32 %v6072_v48, %v6072_v48 }
 0x217   : > { %4778 = vst [vmem:[%s8353_s8 + $0x18] sm:$0xff] %v6073_v42  ;;  %v4847_v44 = vmul.f32 %v6073_v42, %v6073_v42 }
 0x218   : > { %4776 = vst [vmem:[%s8353_s8 + $0x8] sm:$0xff] %v6074_v58  ;;  %v4807_v41 = vadd.f32 %v6074_v58, %v6072_v48  ;;  %v4845_v59 = vmul.f32 %v6074_v58, %v6074_v58 }
 0x21a   : > { %v4808_v17 = vadd.f32 %v6071_v26, %v4807_v41  ;;  %v4876_v9 = vadd.f32 %v4845_v59, %v4844_v61  ;;  %v6043_v21 = vpop.f32.mrb[4].mxu0 }
 0x21b   : > { %v6075_v31 = vadd.f32 %v6043_v21, %v5873_v39  ;;  %v4632_v8 = vpop.f32.mrb[5].mxu0 }
 0x21c   : > { %v4877_v33 = vadd.f32 %v4876_v9, %v4846_v38  ;;  %v6076_v40 = vadd.f32 %v4632_v8, %v1861_v35  ;;  %v4809_v63 = vadd.f32 %v6073_v42, %v4808_v17  ;;  %v6044_v12 = vpop.f32.mrb[6].mxu0 }
 0x21d   : > { %4781 = vst [vmem:[%s8353_s8 + $0x30] sm:$0xff] %v6075_v31  ;;  %v6077_v15 = vadd.f32 %v6044_v12, %v5874_v23  ;;  %v4635_v20 = vpop.f32.mrb[7].mxu0  ;;  %v4850_v62 = vmul.f32 %v6075_v31, %v6075_v31 }
 0x21e   : > { %4779 = vst [vmem:[%s8353_s8 + $0x20] sm:$0xff] %v6076_v40  ;;  %v4810_v25 = vadd.f32 %v6076_v40, %v4809_v63  ;;  %v4848_v19 = vmul.f32 %v6076_v40, %v6076_v40  ;;  %v4878_v36 = vadd.f32 %v4877_v33, %v4847_v44  ;;  %v6078_v60 = vadd.f32 %v4635_v20, %v1864_v13 }
 0x21f   : > { %4782 = vst [vmem:[%s8353_s8 + $0x38] sm:$0xff] %v6077_v15  ;;  %v4851_v5 = vmul.f32 %v6077_v15, %v6077_v15 }
 0x220   : > { %v4879_v11 = vadd.f32 %v4878_v36, %v4848_v19  ;;  %4780 = vst [vmem:[%s8353_s8 + $0x28] sm:$0xff] %v6078_v60  ;;  %v4811_v14 = vadd.f32 %v6078_v60, %v4810_v25  ;;  %v4849_v37 = vmul.f32 %v6078_v60, %v6078_v60 }
 0x222   : > { %v4812_v1 = vadd.f32 %v6075_v31, %v4811_v14  ;;  %v4880_v46 = vadd.f32 %v4879_v11, %v4849_v37  ;;  %v6047_v43 = vpop.f32.mrb[8].mxu0 }
 0x223   : > { %v6079_v10 = vadd.f32 %v6047_v43, %v5877_v45  ;;  %v4648_v51 = vpop.f32.mrb[9].mxu0 }
 0x224   : > { %v4881_v27 = vadd.f32 %v4880_v46, %v4850_v62  ;;  %v6080_v16 = vadd.f32 %v4648_v51, %v1877_v28  ;;  %v4813_v34 = vadd.f32 %v6077_v15, %v4812_v1  ;;  %v6048_v49 = vpop.f32.mrb[10].mxu0 }
 0x225   : > { %4785 = vst [vmem:[%s8353_s8 + $0x50] sm:$0xff] %v6079_v10  ;;  %v6081_v56 = vadd.f32 %v6048_v49, %v5878_v50  ;;  %v4651_v2 = vpop.f32.mrb[11].mxu0  ;;  %v4854_v3 = vmul.f32 %v6079_v10, %v6079_v10 }
 0x226   : > { %4783 = vst [vmem:[%s8353_s8 + $0x40] sm:$0xff] %v6080_v16  ;;  %v4814_v6 = vadd.f32 %v6080_v16, %v4813_v34  ;;  %v4852_v53 = vmul.f32 %v6080_v16, %v6080_v16  ;;  %v4882_v24 = vadd.f32 %v4881_v27, %v4851_v5  ;;  %v6082_v32 = vadd.f32 %v4651_v2, %v8339_v18 }
 0x227   : > { %4786 = vst [vmem:[%s8353_s8 + $0x58] sm:$0xff] %v6081_v56  ;;  %v4855_v28 = vmul.f32 %v6081_v56, %v6081_v56 }
 0x228   : > { %v4883_v55 = vadd.f32 %v4882_v24, %v4852_v53  ;;  %4784 = vst [vmem:[%s8353_s8 + $0x48] sm:$0xff] %v6082_v32  ;;  %v4815_v29 = vadd.f32 %v6082_v32, %v4814_v6  ;;  %v4853_v30 = vmul.f32 %v6082_v32, %v6082_v32 }
 0x22a   : > { %v4816_v39 = vadd.f32 %v6079_v10, %v4815_v29  ;;  %v4884_v35 = vadd.f32 %v4883_v55, %v4853_v30  ;;  %v6051_v23 = vpop.f32.mrb[12].mxu0 }
 0x22b   : > { %v6083_v13 = vadd.f32 %v6051_v23, %v8341_v0  ;;  %v4664_v45 = vpop.f32.mrb[13].mxu0 }
 0x22c   : > { %v4885_v50 = vadd.f32 %v4884_v35, %v4854_v3  ;;  %v6084_v18 = vadd.f32 %v4664_v45, %v8343_v7  ;;  %v4817_v57 = vadd.f32 %v6081_v56, %v4816_v39  ;;  %v6052_v26 = vpop.f32.mrb[14].mxu0 }
 0x22d   : > { %4789 = vst [vmem:[%s8353_s8 + $0x70] sm:$0xff] %v6083_v13  ;;  %v6085_v4 = vadd.f32 %v6052_v26, %v8348_v52  ;;  %v4667_v48 = vpop.f32.mrb[15].mxu0  ;;  %v4858_v59 = vmul.f32 %v6083_v13, %v6083_v13 }
 0x22e   : > { %4787 = vst [vmem:[%s8353_s8 + $0x60] sm:$0xff] %v6084_v18  ;;  %v4818_v47 = vadd.f32 %v6084_v18, %v4817_v57  ;;  %v4856_v42 = vmul.f32 %v6084_v18, %v6084_v18  ;;  %v4886_v54 = vadd.f32 %v4885_v50, %v4855_v28  ;;  %v6086_v58 = vadd.f32 %v4667_v48, %v8350_v22 }
 0x22f   : > { %4790 = vst [vmem:[%s8353_s8 + $0x78] sm:$0xff] %v6085_v4  ;;  %v4859_v21 = vmul.f32 %v6085_v4, %v6085_v4 }
 0x230   : > { %v4887_v0 = vadd.f32 %v4886_v54, %v4856_v42  ;;  %4788 = vst [vmem:[%s8353_s8 + $0x68] sm:$0xff] %v6086_v58  ;;  %v4819_v61 = vadd.f32 %v6086_v58, %v4818_v47  ;;  %v4857_v41 = vmul.f32 %v6086_v58, %v6086_v58 }
 0x232   : > { %v4820_v7 = vadd.f32 %v6083_v13, %v4819_v61  ;;  %v4888_v38 = vadd.f32 %v4887_v0, %v4857_v41  ;;  %v6055_v17 = vpop.f32.mrb[16].mxu0 }
 0x233   : > { %v5919_v9 = vpop.f32.mrb[16].mxu1  ;;  %v4680_v52 = vpop.f32.mrb[17].mxu0 }
 0x234   : > { %v4889_v31 = vadd.f32 %v4888_v38, %v4858_v59  ;;  %v6087_v8 = vadd.f32 %v6055_v17, %v5919_v9  ;;  %v2639_v44 = vpop.f32.mrb[17].mxu1  ;;  %v4821_v22 = vadd.f32 %v6085_v4, %v4820_v7  ;;  %v6056_v33 = vpop.f32.mrb[18].mxu0 }
 0x235   : > { %v6088_v40 = vadd.f32 %v4680_v52, %v2639_v44  ;;  %v5920_v63 = vpop.f32.mrb[18].mxu1  ;;  %v4683_v12 = vpop.f32.mrb[19].mxu0 }
 0x236   : > { %4793 = vst [vmem:[%s8353_s8 + $0x90] sm:$0xff] %v6087_v8  ;;  %v4890_v15 = vadd.f32 %v4889_v31, %v4859_v21  ;;  %v6089_v20 = vadd.f32 %v6056_v33, %v5920_v63  ;;  %v2642_v25 = vpop.f32.mrb[19].mxu1  ;;  %v4862_v1 = vmul.f32 %v6087_v8, %v6087_v8 }
 0x237   : > { %4791 = vst [vmem:[%s8353_s8 + $0x80] sm:$0xff] %v6088_v40  ;;  %v4822_v19 = vadd.f32 %v6088_v40, %v4821_v22  ;;  %v4860_v36 = vmul.f32 %v6088_v40, %v6088_v40  ;;  %v6090_v60 = vadd.f32 %v4683_v12, %v2642_v25 }
 0x238   : > { %4794 = vst [vmem:[%s8353_s8 + $0x98] sm:$0xff] %v6089_v20  ;;  %v4863_v34 = vmul.f32 %v6089_v20, %v6089_v20 }
 0x239   : > { %v4891_v11 = vadd.f32 %v4890_v15, %v4860_v36  ;;  %4792 = vst [vmem:[%s8353_s8 + $0x88] sm:$0xff] %v6090_v60  ;;  %v4823_v14 = vadd.f32 %v6090_v60, %v4822_v19  ;;  %v4861_v37 = vmul.f32 %v6090_v60, %v6090_v60 }
 0x23a   : > { %v6059_v62 = vpop.f32.mrb[20].mxu0 }
 0x23b   : > { %v4824_v46 = vadd.f32 %v6087_v8, %v4823_v14  ;;  %v4892_v43 = vadd.f32 %v4891_v11, %v4861_v37  ;;  %v5923_v10 = vpop.f32.mrb[20].mxu1  ;;  %v4696_v51 = vpop.f32.mrb[21].mxu0 }
 0x23c   : > { %v6091_v5 = vadd.f32 %v6059_v62, %v5923_v10  ;;  %v2655_v27 = vpop.f32.mrb[21].mxu1  ;;  %v6060_v16 = vpop.f32.mrb[22].mxu0 }
 0x23d   : > { %v4893_v49 = vadd.f32 %v4892_v43, %v4862_v1  ;;  %v6092_v56 = vadd.f32 %v4696_v51, %v2655_v27  ;;  %v4825_v2 = vadd.f32 %v6089_v20, %v4824_v46  ;;  %v5924_v6 = vpop.f32.mrb[22].mxu1  ;;  %v4699_v53 = vpop.f32.mrb[23].mxu0 }
 0x23e   : > { %4797 = vst [vmem:[%s8353_s8 + $0xb0] sm:$0xff] %v6091_v5  ;;  %v6093_v24 = vadd.f32 %v6060_v16, %v5924_v6  ;;  %v2658_v32 = vpop.f32.mrb[23].mxu1  ;;  %v4866_v45 = vmul.f32 %v6091_v5, %v6091_v5 }
 0x23f   : > { %4795 = vst [vmem:[%s8353_s8 + $0xa0] sm:$0xff] %v6092_v56  ;;  %v4826_v55 = vadd.f32 %v6092_v56, %v4825_v2  ;;  %v4864_v29 = vmul.f32 %v6092_v56, %v6092_v56  ;;  %v4894_v30 = vadd.f32 %v4893_v49, %v4863_v34  ;;  %v6094_v3 = vadd.f32 %v4699_v53, %v2658_v32 }
 0x240   : > { %4798 = vst [vmem:[%s8353_s8 + $0xb8] sm:$0xff] %v6093_v24  ;;  %v4867_v47 = vmul.f32 %v6093_v24, %v6093_v24 }
 0x241   : > { %v4895_v39 = vadd.f32 %v4894_v30, %v4864_v29  ;;  %4796 = vst [vmem:[%s8353_s8 + $0xa8] sm:$0xff] %v6094_v3  ;;  %v4827_v35 = vadd.f32 %v6094_v3, %v4826_v55  ;;  %v4865_v23 = vmul.f32 %v6094_v3, %v6094_v3 }
 0x242   : > { %v6063_v13 = vpop.f32.mrb[24].mxu0 }
 0x243   : > { %v4828_v28 = vadd.f32 %v6091_v5, %v4827_v35  ;;  %v4896_v50 = vadd.f32 %v4895_v39, %v4865_v23  ;;  %v5927_v18 = vpop.f32.mrb[24].mxu1  ;;  %v4712_v57 = vpop.f32.mrb[25].mxu0 }
 0x244   : > { %v6095_v26 = vadd.f32 %v6063_v13, %v5927_v18  ;;  %v2671_v4 = vpop.f32.mrb[25].mxu1  ;;  %v6064_v48 = vpop.f32.mrb[26].mxu0 }
 0x245   : > { %v4897_v42 = vadd.f32 %v4896_v50, %v4866_v45  ;;  %v6096_v54 = vadd.f32 %v4712_v57, %v2671_v4  ;;  %v4829_v58 = vadd.f32 %v6093_v24, %v4828_v28  ;;  %v5928_v0 = vpop.f32.mrb[26].mxu1  ;;  %v4715_v61 = vpop.f32.mrb[27].mxu0 }
 0x246   : > { %4801 = vst [vmem:[%s8353_s8 + $0xd0] sm:$0xff] %v6095_v26  ;;  %v6097_v41 = vadd.f32 %v6064_v48, %v5928_v0  ;;  %v2674_v59 = vpop.f32.mrb[27].mxu1  ;;  %v4870_v44 = vmul.f32 %v6095_v26, %v6095_v26 }
 0x247   : > { %4799 = vst [vmem:[%s8353_s8 + $0xc0] sm:$0xff] %v6096_v54  ;;  %v4830_v7 = vadd.f32 %v6096_v54, %v4829_v58  ;;  %v4868_v38 = vmul.f32 %v6096_v54, %v6096_v54  ;;  %v4898_v17 = vadd.f32 %v4897_v42, %v4867_v47  ;;  %v6098_v9 = vadd.f32 %v4715_v61, %v2674_v59 }
 0x248   : > { %4802 = vst [vmem:[%s8353_s8 + $0xd8] sm:$0xff] %v6097_v41  ;;  %v4871_v25 = vmul.f32 %v6097_v41, %v6097_v41 }
 0x249   : > { %v4899_v52 = vadd.f32 %v4898_v17, %v4868_v38  ;;  %4800 = vst [vmem:[%s8353_s8 + $0xc8] sm:$0xff] %v6098_v9  ;;  %v4831_v21 = vadd.f32 %v6098_v9, %v4830_v7  ;;  %v4869_v31 = vmul.f32 %v6098_v9, %v6098_v9 }
 0x24a   : > { %v6067_v8 = vpop.f32.mrb[28].mxu0 }
 0x24b   : > { %v4832_v22 = vadd.f32 %v6095_v26, %v4831_v21  ;;  %v4900_v33 = vadd.f32 %v4899_v52, %v4869_v31  ;;  %v5931_v40 = vpop.f32.mrb[28].mxu1  ;;  %v4728_v63 = vpop.f32.mrb[29].mxu0 }
 0x24c   : > { %v6099_v12 = vadd.f32 %v6067_v8, %v5931_v40  ;;  %v2687_v15 = vpop.f32.mrb[29].mxu1  ;;  %v6068_v20 = vpop.f32.mrb[30].mxu0 }
 0x24d   : > { %v4901_v19 = vadd.f32 %v4900_v33, %v4870_v44  ;;  %v6100_v36 = vadd.f32 %v4728_v63, %v2687_v15  ;;  %v4833_v60 = vadd.f32 %v6097_v41, %v4832_v22  ;;  %v5932_v11 = vpop.f32.mrb[30].mxu1  ;;  %v4731_v14 = vpop.f32.mrb[31].mxu0 }
 0x24e   : > { %4805 = vst [vmem:[%s8353_s8 + $0xf0] sm:$0xff] %v6099_v12  ;;  %v6101_v37 = vadd.f32 %v6068_v20, %v5932_v11  ;;  %v2690_v62 = vpop.f32.mrb[31].mxu1 }
 0x24f   : > { %4803 = vst [vmem:[%s8353_s8 + $0xe0] sm:$0xff] %v6100_v36  ;;  %v4834_v1 = vadd.f32 %v6100_v36, %v4833_v60  ;;  %v4872_v46 = vmul.f32 %v6100_v36, %v6100_v36  ;;  %v4902_v43 = vadd.f32 %v4901_v19, %v4871_v25  ;;  %v6102_v10 = vadd.f32 %v4731_v14, %v2690_v62 }
 0x250   : > { %4806 = vst [vmem:[%s8353_s8 + $0xf8] sm:$0xff] %v6101_v37 }
 0x251   : > { %v4903_v51 = vadd.f32 %v4902_v43, %v4872_v46  ;;  %4804 = vst [vmem:[%s8353_s8 + $0xe8] sm:$0xff] %v6102_v10  ;;  %v4835_v5 = vadd.f32 %v6102_v10, %v4834_v1  ;;  %v4873_v27 = vmul.f32 %v6102_v10, %v6102_v10 }
 0x252   : > { %6503 = shalt.err (!%p6500_p3)
}
 0x253   : > { %s6504_s28 = scalar_lea.hbm %s8394_s19, 4096  ;;  %s6508_s4 = scalar_lea.hbm %s8475_s2, 8192 }
 0x254   : > { %p6505_p4 = scmp.ne.s32.totalorder %s8394_s19, %s6504_s28  ;;  %p6509_p9 = scmp.lt.u32.totalorder %s8394_s19, %s8475_s2 }
 0x255   : > { %p6510_p10 = scmp.lt.u32.totalorder %s6508_s4, %s6504_s28  ;;  %p6512_p12 = scmp.lt.u32.totalorder %s6504_s28, %s8394_s19 }
 0x256   : > { %p6506_p7 = pnand %p6505_p4, %p6648_p5 }
 0x257   : > { %p6511_p11 = por %p6510_p10, %p6509_p9 }
 0x258   : > { %p6507_p8 = pneg %p6506_p7 }
 0x259   : > { %p6513_p13 = por %p6512_p12, %p6511_p11 }
 0x25b   : > { %p6514_p0 = pnand %p6513_p13, %p6507_p8 }
 0x25d   : > { %6517 = shalt.err (!%p6514_p0)
}
 0x25e   : > { %s6587_s8 = smov 128   ;;  %s6588_s9 = smov 8   ;;  %v4874_v16 = vmul.f32 %v6099_v12, %v6099_v12  ;;  %v4836_v34 = vadd.f32 %v6099_v12, %v4835_v5  ;;  %v4904_v49 = vadd.f32 %v4903_v51, %v4873_v27  ;;  %v4875_v56 = vmul.f32 %v6101_v37, %v6101_v37 }
 0x25f   : > { %6328 = dma.vmem_to_hbm [thread:$0]  (%p6648_p5), %s8396_s10, 4096, %s8394_s19, %s4917_s20, %s6587_s8, %s6587_s8, %s6588_s9   ;;  %vm4913_vm7 = vcmask 1040384  }
 0x260   : > { %v4837_v2 = vadd.f32 %v6101_v37, %v4836_v34  ;;  %v4905_v6 = vadd.f32 %v4904_v49, %v4874_v16  ;;  %s5047_s11 = sshll.u32 %s8346_s6, 1  ;;  %s5606_s10 = sshll.u32 %s6631_s16, 5 }
 0x261   : > { %s174_s17 = scalar_lea.vmem [#allocation4], %s5047_s11  ;;  %s8430_s25 = scalar_lea.hbm %s8476_s3, %s5606_s10 }
 0x262   : > { %v4838_v53 = vrot.slane %v4837_v2, 4  ;;  %v4906_v24 = vadd.f32 %v4905_v6, %v4875_v56  ;;  %s4951_s19 = sshll.u32 %s174_s17, 4  ;;  %s4922_s26 = scalar_lea.sflag [#allocation5], %s8346_s6  ;;  %s8432_s19 = int_to_ptr.vmem [resolvable:$true] %s4951_s19 }
 0x263   : > { %s6518_s27 = scalar_lea.vmem %s8432_s19, 32  ;;  %s6589_s16 = smov [#allocation4]  }
 0x264   : > { %v4839_v32 = vadd.f32 %v4838_v53, %v4837_v2  ;;  %v4907_v55 = vrot.slane %v4906_v24, 4  ;;  %p6519_p1 = scmp.ne.s32.totalorder %s8432_s19, %s6518_s27  ;;  %s6522_s28 = sshll.u32 %s6589_s16, 4  ;;  %s6523_s28 = int_to_ptr.vmem [resolvable:$false] %s6522_s28 }
 0x265   : > { %s6524_s29 = scalar_lea.vmem %s6523_s28, 64  ;;  %p6525_p4 = scmp.lt.s32.totalorder %s8432_s19, %s6523_s28 }
 0x266   : > { %v4840_v29 = vrot.slane %v4839_v32, 2  ;;  %v4908_v30 = vadd.f32 %v4907_v55, %v4906_v24  ;;  %p6520_p2 = pnand %p6519_p1, %p6648_p5  ;;  %p6526_p7 = scmp.lt.s32.totalorder %s6524_s29, %s6518_s27 }
 0x268   : > { %v4841_v3 = vadd.f32 %v4840_v29, %v4839_v32  ;;  %v4909_v39 = vrot.slane %v4908_v30, 2  ;;  %p6521_p3 = pneg %p6520_p2  ;;  %p6527_p8 = por %p6526_p7, %p6525_p4 }
 0x26a   : > { %v4842_v35 = vrot.slane %v4841_v3, 1  ;;  %v4910_v23 = vadd.f32 %v4909_v39, %v4908_v30  ;;  %p6528_p9 = pnand %p6527_p8, %p6521_p3 }
 0x26c   : > { %v4911_v13 = vrot.slane %v4910_v23, 1  ;;  %v4843_v45 = vadd.f32 %v4842_v35, %v4841_v3 }
 0x26e   : > { %v4912_v28 = vadd.f32 %v4911_v13, %v4910_v23 }
 0x270   : > { %v4914_v50 = vsel %vm4913_vm7, %v4843_v45, %v4912_v28 }
 0x271   : > { %4915 = vst [vmem:[%s174_s17] sm:$0x3] %v4914_v50 }
 0x272   : > { %6531 = shalt.err (!%p6528_p9)
}
 0x273   : > { %s6532_s6 = scalar_lea.hbm %s8430_s25, 32  ;;  %s6536_s5 = scalar_lea.hbm %s8476_s3, 64 }
 0x274   : > { %p6533_p10 = scmp.ne.s32.totalorder %s8430_s25, %s6532_s6  ;;  %p6537_p13 = scmp.lt.u32.totalorder %s8430_s25, %s8476_s3 }
 0x275   : > { %p6538_p0 = scmp.lt.u32.totalorder %s6536_s5, %s6532_s6  ;;  %p6540_p2 = scmp.lt.u32.totalorder %s6532_s6, %s8430_s25 }
 0x276   : > { %p6534_p11 = pnand %p6533_p10, %p6648_p5 }
 0x277   : > { %p6539_p1 = por %p6538_p0, %p6537_p13 }
 0x278   : > { %p6535_p12 = pneg %p6534_p11 }
 0x279   : > { %p6541_p3 = por %p6540_p2, %p6539_p1 }
 0x27b   : > { %p6542_p4 = pnand %p6541_p3, %p6535_p12 }
 0x27d   : > { %6545 = shalt.err (!%p6542_p4)
}
 0x27e   : > { %6329 = dma.vmem_to_hbm [thread:$0]  (%p6648_p5), %s8432_s19, 32, %s8430_s25, %s4922_s26  }
 0x27f PF: > { %p6339_p7 = scmp.ge.s32.totalorder %s6584_s15, 2  ;;  %s4963_s9 = sand.u32 1, %s6572_s12  }
 0x280   : > { %s4964_s11 = scalar_lea.sflag [#allocation3], %s4963_s9 }
 0x281   : > { %p6333_p8 = pnand %p6339_p7, %p6652_p6 }
 0x283   : > { %6563 = dma.done.wait (!%p6333_p8), %s4964_s11, 4096  }
 0x284   : > { %6565 = vsyncadd (!%p6333_p8), %s4964_s11, 4294963200  ;;  %s4973_s10 = scalar_lea.sflag [#allocation5], %s4963_s9 }
 0x285   : > { %6567 = dma.done.wait (!%p6333_p8), %s4973_s10, 32  }
 0x286   : > { %6569 = vsyncadd (!%p6333_p8), %s4973_s10, 4294967264  ;;  %p17_p5 = scmp.ge.s32.totalorder %s6635_s18, 4   ;;  %s8543_s12 = smov %s6576_s13 }
 0x287   : > { %s8544_s13 = smov %s6580_s14  ;;  %s8545_s14 = smov %s6646_s21 }
 0x288   : > { %s8546_s15 = smov %s6635_s18  ;;  %19 = sbr.rel (!%p17_p5) target bundleno = 5 (0x5), region = 90 }
 0x28f   :  { %4978 = vsyncpa [#allocation3], 1 }
 0x290   :  { %4980 = vsyncpa [#allocation3 + $0x1], 1 }
 0x291   :  { %4981 = vsyncpa [#allocation5], 1 }
 0x292   :  { %4983 = vsyncpa [#allocation5 + $0x1], 1 }

</bundles_post_ra>
